<compile_context>
chip_gen: v7x
topology: tpu7x:2x2x1
jax: 0.10.0
libtpu: 0.0.40
codegen_flags: <defaults>
</compile_context>

<pallas_src>
import functools

import jax
import jax.numpy as jnp
from jax.experimental import pallas as pl
from jax.experimental.pallas import tpu as pltpu

# Module sizes: feat_dim == seq_len, hidden_dim, num_heads.
FEAT = 8                      # feat_dim (also the attention sequence length)
HID = 32                      # hidden_dim
NHEAD = 8                     # num_heads
HD = HID // NHEAD             # per-head dim = 4

Q_SIZE = HD * FEAT * NHEAD    # 256 rows of Q, laid out as (d, i, h)
K_OFF = Q_SIZE                # K rows start here, laid out as (d, j, h)
V_OFF = 2 * Q_SIZE            # folded-V rows start here, laid out as (j, h)
TOTAL_ROWS = V_OFF + FEAT * NHEAD   # 576 fused projection rows


def _round_up(n, m):
    return (n + m - 1) // m * m


def fold_params(params):
    """Fold embed + QKV + scale + out_proj + fc + all biases into one (576, FEAT+1) weight.

    Row layout (heads h on consecutive sublanes inside every 8-row group):
      rows [0, 256)   : Q, row = (d*FEAT + i)*NHEAD + h   (pre-scaled by 1/sqrt(HD))
      rows [256, 512) : K, row = (d*FEAT + j)*NHEAD + h
      rows [512, 576) : folded V scalar, row = j*NHEAD + h
    Column FEAT (the 9th) holds the folded bias; the kernel input carries a constant-1 row.
    """
    we, be, wq, bq, wk, bk, wv, bv, wo, bo, wf, bf = params
    f32 = jnp.float32
    we3 = we.astype(f32).reshape(FEAT, HID, FEAT)      # [s, h_embed, f]
    be2 = be.astype(f32).reshape(FEAT, HID)            # [s, h_embed]

    def fold_proj(w, b):
        # per-seq folded projection: p[b, s, o] = sum_f w_f[s, o, f] x[b, f] + b_f[s, o]
        w_f = jnp.einsum("oh,shf->sof", w.astype(f32), we3)
        b_f = jnp.einsum("oh,sh->so", w.astype(f32), be2) + b.astype(f32)[None, :]
        return w_f, b_f

    def pack_qk(w, b, scale=1.0):
        w_f, b_f = fold_proj(w, b)
        w4 = w_f.reshape(FEAT, NHEAD, HD, FEAT)        # [i, h, d, f]  (o = h*HD + d)
        b3 = b_f.reshape(FEAT, NHEAD, HD)              # [i, h, d]
        w_pack = jnp.transpose(w4, (2, 0, 1, 3)).reshape(HD * FEAT * NHEAD, FEAT)
        b_pack = jnp.transpose(b3, (2, 0, 1)).reshape(HD * FEAT * NHEAD)
        return w_pack * scale, b_pack * scale

    scale = 1.0 / (HD ** 0.5)
    wq_pack, bq_pack = pack_qk(wq, bq, scale)          # attention scale folded into Q
    wk_pack, bk_pack = pack_qk(wk, bk)

    # out_proj + fc fold: logits = ctx @ (wf @ wo).T + (wf @ bo + bf)
    w_of = (wf.astype(f32) @ wo.astype(f32))[0]        # (HID,)
    b_of = jnp.dot(wf.astype(f32)[0], bo.astype(f32)) + bf.astype(f32)[0]

    # value rows with out_proj/fc folded over the per-head dim d, row order (j, h)
    wv_f, bv_f = fold_proj(wv, bv)
    wv4 = wv_f.reshape(FEAT, NHEAD, HD, FEAT)          # [j, h, d, f]
    bv3 = bv_f.reshape(FEAT, NHEAD, HD)                # [j, h, d]
    wofh = w_of.reshape(NHEAD, HD)                     # [h, d]
    wvs = jnp.einsum("jhdf,hd->jhf", wv4, wofh).reshape(FEAT * NHEAD, FEAT)
    bvs = jnp.einsum("jhd,hd->jh", bv3, wofh).reshape(FEAT * NHEAD)
    # softmax rows sum to 1 -> adding b_of/NHEAD to every value row adds exactly b_of
    bvs = bvs + b_of / NHEAD

    w_all = jnp.concatenate([wq_pack, wk_pack, wvs], axis=0)             # (576, FEAT)
    b_all = jnp.concatenate([bq_pack, bk_pack, bvs], axis=0)             # (576,)
    w_aug = jnp.concatenate([w_all, b_all[:, None]], axis=1).astype(f32)  # (576, FEAT+1)
    return w_aug


def masknet_kernel(x_ref, w_ref, o_ref):
    """x_ref: (FEAT+1, TB) batch tile (batch on lanes, last row is constant 1).
    w_ref: (576, FEAT+1) folded weights (bias in the last column).
    o_ref: (FEAT, TB) sigmoid mask tile (transposed; wrapper transposes back)."""
    x = x_ref[...]

    # Single MXU matmul: every projection (+ bias, via the ones row) at once.
    acts = jnp.dot(w_ref[...], x, preferred_element_type=jnp.float32)   # (576, TB)

    # Heads live on sublanes: every slab below is an (NHEAD=8, TB) vreg-aligned tile.
    v = [acts[V_OFF + j * NHEAD: V_OFF + (j + 1) * NHEAD, :] for j in range(FEAT)]
    k = [[acts[K_OFF + (d * FEAT + j) * NHEAD: K_OFF + (d * FEAT + j + 1) * NHEAD, :]
          for j in range(FEAT)] for d in range(HD)]

    rows = []
    for i in range(FEAT):                       # per-query loop bounds live intermediates
        q = [acts[(d * FEAT + i) * NHEAD: (d * FEAT + i + 1) * NHEAD, :]
             for d in range(HD)]
        # scores per key j: pure VALU tile-by-tile multiplies, no sublane broadcasts
        s = []
        for j in range(FEAT):
            sj = q[0] * k[0][j]
            for d in range(1, HD):
                sj = sj + q[d] * k[d][j]
            s.append(sj)                        # (NHEAD, TB), scale already folded into Q
        # softmax over keys j: cross-tile tree max / sum on the VALU
        m = s[0]
        for j in range(1, FEAT):
            m = jnp.maximum(m, s[j])
        den = None
        num = None
        for j in range(FEAT):
            e = jnp.exp(s[j] - m)
            den = e if den is None else den + e
            ev = e * v[j]
            num = ev if num is None else num + ev
        # normalize once after the key-sum (no full-tensor divide)
        weighted = num * pl.reciprocal(den, approx=False)               # (NHEAD, TB)
        rows.append(jnp.sum(weighted, axis=0, keepdims=True))           # head-sum -> (1, TB)

    o_ref[...] = jax.nn.sigmoid(jnp.concatenate(rows, axis=0))          # single lane-dense store


def masknet_1d_pallas(x, params, *, block_b=1024):
    """x: (B, FEAT) float32 -> mask (B, FEAT) float32."""
    w_aug = fold_params(params)
    B = x.shape[0]

    b128 = _round_up(max(B, 1), 128)
    tb = min(block_b, b128)
    # Keep >= 2 grid steps when the batch allows it (v7x has 2 TensorCores sharing the
    # "parallel" batch axis; on v5e/v6e the extra step just pipelines normally).
    if tb == b128 and b128 >= 256:
        tb = _round_up(b128 // 2, 128)
    b_pad = _round_up(b128, tb)

    x_t = jnp.pad(x.astype(jnp.float32).T, ((0, 0), (0, b_pad - B)))    # (FEAT, b_pad)
    x_aug = jnp.concatenate([x_t, jnp.ones((1, b_pad), jnp.float32)], axis=0)

    flops_per_elem = (2 * TOTAL_ROWS * (FEAT + 1)        # fused projection matmul (+bias row)
                      + 2 * NHEAD * FEAT * FEAT * HD     # q·k scores
                      + 6 * NHEAD * FEAT * FEAT          # softmax max/sub/sum + weighting
                      + 2 * FEAT * NHEAD + 4 * FEAT)     # head-sum + sigmoid
    cost = pl.CostEstimate(
        flops=flops_per_elem * b_pad,
        transcendentals=(NHEAD * FEAT * FEAT + NHEAD * FEAT + FEAT) * b_pad,
        bytes_accessed=((2 * FEAT + 1) * b_pad + TOTAL_ROWS * (FEAT + 1)) * 4,
    )

    out = pl.pallas_call(
        masknet_kernel,
        out_shape=jax.ShapeDtypeStruct((FEAT, b_pad), jnp.float32),
        grid=(b_pad // tb,),
        in_specs=[
            pl.BlockSpec((FEAT + 1, tb), lambda b: (0, b)),             # x tile (batch on lanes)
            pl.BlockSpec((TOTAL_ROWS, FEAT + 1), lambda b: (0, 0)),     # folded weights (resident)
        ],
        out_specs=pl.BlockSpec((FEAT, tb), lambda b: (0, b)),           # lane-dense output
        compiler_params=pltpu.CompilerParams(
            dimension_semantics=("parallel",),
            vmem_limit_bytes=32 * 1024 * 1024,
        ),
        cost_estimate=cost,
    )(x_aug, w_aug)
    return out[:, :B].T


def masknet_1d_ref(x, params):
    """Plain-JAX reference mirroring the PyTorch forward (unfused)."""
    we, be, wq, bq, wk, bk, wv, bv, wo, bo, wf, bf = params
    B = x.shape[0]
    y = (x @ we.T + be).reshape(B, FEAT, HID)          # embed -> (B, seq, hidden)
    q = y @ wq.T + bq
    k = y @ wk.T + bk
    v = y @ wv.T + bv

    def split(t):
        return t.reshape(B, FEAT, NHEAD, HD).transpose(0, 2, 1, 3)   # (B, H, S, D)

    qh, kh, vh = split(q), split(k), split(v)
    s = jnp.einsum("bhqd,bhkd->bhqk", qh, kh) / jnp.sqrt(jnp.float32(HD))
    p = jax.nn.softmax(s, axis=-1)
    ctx = jnp.einsum("bhqk,bhkd->bhqd", p, vh)
    ctx = ctx.transpose(0, 2, 1, 3).reshape(B, FEAT, HID)
    out = ctx @ wo.T + bo                              # attn out_proj
    logits = out @ wf.T + bf                           # fc head -> (B, FEAT, 1)
    return jax.nn.sigmoid(logits[..., 0])


def make_params(key):
    ks = jax.random.split(key, 12)
    n = lambda k, shp, s=0.1: jax.random.normal(k, shp, jnp.float32) * s
    we = n(ks[0], (HID * FEAT, FEAT))
    be = n(ks[1], (HID * FEAT,))
    wq = n(ks[2], (HID, HID)); bq = n(ks[3], (HID,))
    wk = n(ks[4], (HID, HID)); bk = n(ks[5], (HID,))
    wv = n(ks[6], (HID, HID)); bv = n(ks[7], (HID,))
    wo = n(ks[8], (HID, HID)); bo = n(ks[9], (HID,))
    wf = n(ks[10], (1, HID)); bf = n(ks[11], (1,))
    return (we, be, wq, bq, wk, bk, wv, bv, wo, bo, wf, bf)


if __name__ == "__main__":
    key = jax.random.PRNGKey(0)
    k_param, k_x = jax.random.split(key)
    params = make_params(k_param)

    # small example consistent with the module: batch=2, feat=8, hidden=32, heads=8
    B = 2
    x = jax.random.normal(k_x, (B, FEAT), jnp.float32)
    fwd = jax.jit(functools.partial(masknet_1d_pallas, params=params))
    mask = jax.block_until_ready(fwd(x))
    ref = masknet_1d_ref(x, params)
    assert mask.shape == (B, FEAT), mask.shape
    assert jnp.allclose(mask, ref, atol=1e-4, rtol=1e-4), float(jnp.max(jnp.abs(mask - ref)))

    # multi-step grid with default block sizing (exercises the >=2-step heuristic + padding)
    B2 = 300
    x2 = jax.random.normal(jax.random.PRNGKey(1), (B2, FEAT), jnp.float32)
    mask2 = jax.block_until_ready(fwd(x2))
    ref2 = masknet_1d_ref(x2, params)
    assert mask2.shape == (B2, FEAT), mask2.shape
    assert jnp.allclose(mask2, ref2, atol=1e-4, rtol=1e-4), float(jnp.max(jnp.abs(mask2 - ref2)))

    # small-tile multi-step grid with a ragged (padded) final tile
    fwd3 = jax.jit(functools.partial(masknet_1d_pallas, params=params, block_b=128))
    mask3 = jax.block_until_ready(fwd3(x2))
    assert mask3.shape == (B2, FEAT), mask3.shape
    assert jnp.allclose(mask3, ref2, atol=1e-4, rtol=1e-4), float(jnp.max(jnp.abs(mask3 - ref2)))

    print("KERNEL_OK")
</pallas_src>

<mosaic_0001>
module attributes {stable_mosaic.version = 11 : i64} {
  func.func @masknet_kernel(%arg0: i32, %arg1: memref<9x128xf32, #tpu.memory_space<vmem>>, %arg2: memref<576x9xf32, #tpu.memory_space<vmem>>, %arg3: memref<8x128xf32, #tpu.memory_space<vmem>>) attributes {dimension_semantics = [#tpu.dimension_semantics<parallel>], iteration_bounds = array<i64: 1>, scalar_prefetch = 0 : i64, scratch_operands = 0 : i64, tpu.core_type = #tpu.core_type<tc>, window_params = [{transform_indices = @transform_0, window_bounds = array<i64: 9, 128>}, {pipeline_mode = #tpu.pipeline_mode<synchronous>, transform_indices = @transform_1, window_bounds = array<i64: 576, 9>}, {transform_indices = @transform_2, window_bounds = array<i64: 8, 128>}]} {
    %c0 = arith.constant 0 : index
    %c0_0 = arith.constant 0 : index
    %0 = vector.load %arg1[%c0, %c0_0] : memref<9x128xf32, #tpu.memory_space<vmem>>, vector<9x128xf32>
    %c0_1 = arith.constant 0 : index
    %c0_2 = arith.constant 0 : index
    %1 = vector.load %arg2[%c0_1, %c0_2] : memref<576x9xf32, #tpu.memory_space<vmem>>, vector<576x9xf32>
    %cst = arith.constant dense<0.000000e+00> : vector<576x128xf32>
    %2 = tpu.matmul %1, %0, %cst {dimension_numbers = #tpu.dot_dimension_numbers<[1], [0], [0], [1], [0, 0, 1, 1], [], []>} : vector<576x9xf32>, vector<9x128xf32>, vector<576x128xf32> -> vector<576x128xf32>
    %3 = vector.extract_strided_slice %2 {offsets = [512, 0], sizes = [8, 128], strides = [1, 1]} : vector<576x128xf32> to vector<8x128xf32>
    %4 = vector.extract_strided_slice %2 {offsets = [520, 0], sizes = [8, 128], strides = [1, 1]} : vector<576x128xf32> to vector<8x128xf32>
    %5 = vector.extract_strided_slice %2 {offsets = [528, 0], sizes = [8, 128], strides = [1, 1]} : vector<576x128xf32> to vector<8x128xf32>
    %6 = vector.extract_strided_slice %2 {offsets = [536, 0], sizes = [8, 128], strides = [1, 1]} : vector<576x128xf32> to vector<8x128xf32>
    %7 = vector.extract_strided_slice %2 {offsets = [544, 0], sizes = [8, 128], strides = [1, 1]} : vector<576x128xf32> to vector<8x128xf32>
    %8 = vector.extract_strided_slice %2 {offsets = [552, 0], sizes = [8, 128], strides = [1, 1]} : vector<576x128xf32> to vector<8x128xf32>
    %9 = vector.extract_strided_slice %2 {offsets = [560, 0], sizes = [8, 128], strides = [1, 1]} : vector<576x128xf32> to vector<8x128xf32>
    %10 = vector.extract_strided_slice %2 {offsets = [568, 0], sizes = [8, 128], strides = [1, 1]} : vector<576x128xf32> to vector<8x128xf32>
    %11 = vector.extract_strided_slice %2 {offsets = [256, 0], sizes = [8, 128], strides = [1, 1]} : vector<576x128xf32> to vector<8x128xf32>
    %12 = vector.extract_strided_slice %2 {offsets = [264, 0], sizes = [8, 128], strides = [1, 1]} : vector<576x128xf32> to vector<8x128xf32>
    %13 = vector.extract_strided_slice %2 {offsets = [272, 0], sizes = [8, 128], strides = [1, 1]} : vector<576x128xf32> to vector<8x128xf32>
    %14 = vector.extract_strided_slice %2 {offsets = [280, 0], sizes = [8, 128], strides = [1, 1]} : vector<576x128xf32> to vector<8x128xf32>
    %15 = vector.extract_strided_slice %2 {offsets = [288, 0], sizes = [8, 128], strides = [1, 1]} : vector<576x128xf32> to vector<8x128xf32>
    %16 = vector.extract_strided_slice %2 {offsets = [296, 0], sizes = [8, 128], strides = [1, 1]} : vector<576x128xf32> to vector<8x128xf32>
    %17 = vector.extract_strided_slice %2 {offsets = [304, 0], sizes = [8, 128], strides = [1, 1]} : vector<576x128xf32> to vector<8x128xf32>
    %18 = vector.extract_strided_slice %2 {offsets = [312, 0], sizes = [8, 128], strides = [1, 1]} : vector<576x128xf32> to vector<8x128xf32>
    %19 = vector.extract_strided_slice %2 {offsets = [320, 0], sizes = [8, 128], strides = [1, 1]} : vector<576x128xf32> to vector<8x128xf32>
    %20 = vector.extract_strided_slice %2 {offsets = [328, 0], sizes = [8, 128], strides = [1, 1]} : vector<576x128xf32> to vector<8x128xf32>
    %21 = vector.extract_strided_slice %2 {offsets = [336, 0], sizes = [8, 128], strides = [1, 1]} : vector<576x128xf32> to vector<8x128xf32>
    %22 = vector.extract_strided_slice %2 {offsets = [344, 0], sizes = [8, 128], strides = [1, 1]} : vector<576x128xf32> to vector<8x128xf32>
    %23 = vector.extract_strided_slice %2 {offsets = [352, 0], sizes = [8, 128], strides = [1, 1]} : vector<576x128xf32> to vector<8x128xf32>
    %24 = vector.extract_strided_slice %2 {offsets = [360, 0], sizes = [8, 128], strides = [1, 1]} : vector<576x128xf32> to vector<8x128xf32>
    %25 = vector.extract_strided_slice %2 {offsets = [368, 0], sizes = [8, 128], strides = [1, 1]} : vector<576x128xf32> to vector<8x128xf32>
    %26 = vector.extract_strided_slice %2 {offsets = [376, 0], sizes = [8, 128], strides = [1, 1]} : vector<576x128xf32> to vector<8x128xf32>
    %27 = vector.extract_strided_slice %2 {offsets = [384, 0], sizes = [8, 128], strides = [1, 1]} : vector<576x128xf32> to vector<8x128xf32>
    %28 = vector.extract_strided_slice %2 {offsets = [392, 0], sizes = [8, 128], strides = [1, 1]} : vector<576x128xf32> to vector<8x128xf32>
    %29 = vector.extract_strided_slice %2 {offsets = [400, 0], sizes = [8, 128], strides = [1, 1]} : vector<576x128xf32> to vector<8x128xf32>
    %30 = vector.extract_strided_slice %2 {offsets = [408, 0], sizes = [8, 128], strides = [1, 1]} : vector<576x128xf32> to vector<8x128xf32>
    %31 = vector.extract_strided_slice %2 {offsets = [416, 0], sizes = [8, 128], strides = [1, 1]} : vector<576x128xf32> to vector<8x128xf32>
    %32 = vector.extract_strided_slice %2 {offsets = [424, 0], sizes = [8, 128], strides = [1, 1]} : vector<576x128xf32> to vector<8x128xf32>
    %33 = vector.extract_strided_slice %2 {offsets = [432, 0], sizes = [8, 128], strides = [1, 1]} : vector<576x128xf32> to vector<8x128xf32>
    %34 = vector.extract_strided_slice %2 {offsets = [440, 0], sizes = [8, 128], strides = [1, 1]} : vector<576x128xf32> to vector<8x128xf32>
    %35 = vector.extract_strided_slice %2 {offsets = [448, 0], sizes = [8, 128], strides = [1, 1]} : vector<576x128xf32> to vector<8x128xf32>
    %36 = vector.extract_strided_slice %2 {offsets = [456, 0], sizes = [8, 128], strides = [1, 1]} : vector<576x128xf32> to vector<8x128xf32>
    %37 = vector.extract_strided_slice %2 {offsets = [464, 0], sizes = [8, 128], strides = [1, 1]} : vector<576x128xf32> to vector<8x128xf32>
    %38 = vector.extract_strided_slice %2 {offsets = [472, 0], sizes = [8, 128], strides = [1, 1]} : vector<576x128xf32> to vector<8x128xf32>
    %39 = vector.extract_strided_slice %2 {offsets = [480, 0], sizes = [8, 128], strides = [1, 1]} : vector<576x128xf32> to vector<8x128xf32>
    %40 = vector.extract_strided_slice %2 {offsets = [488, 0], sizes = [8, 128], strides = [1, 1]} : vector<576x128xf32> to vector<8x128xf32>
    %41 = vector.extract_strided_slice %2 {offsets = [496, 0], sizes = [8, 128], strides = [1, 1]} : vector<576x128xf32> to vector<8x128xf32>
    %42 = vector.extract_strided_slice %2 {offsets = [504, 0], sizes = [8, 128], strides = [1, 1]} : vector<576x128xf32> to vector<8x128xf32>
    %43 = vector.extract_strided_slice %2 {offsets = [0, 0], sizes = [8, 128], strides = [1, 1]} : vector<576x128xf32> to vector<8x128xf32>
    %44 = vector.extract_strided_slice %2 {offsets = [64, 0], sizes = [8, 128], strides = [1, 1]} : vector<576x128xf32> to vector<8x128xf32>
    %45 = vector.extract_strided_slice %2 {offsets = [128, 0], sizes = [8, 128], strides = [1, 1]} : vector<576x128xf32> to vector<8x128xf32>
    %46 = vector.extract_strided_slice %2 {offsets = [192, 0], sizes = [8, 128], strides = [1, 1]} : vector<576x128xf32> to vector<8x128xf32>
    %47 = arith.mulf %43, %11 : vector<8x128xf32>
    %48 = arith.mulf %44, %19 : vector<8x128xf32>
    %49 = arith.addf %47, %48 : vector<8x128xf32>
    %50 = arith.mulf %45, %27 : vector<8x128xf32>
    %51 = arith.addf %49, %50 : vector<8x128xf32>
    %52 = arith.mulf %46, %35 : vector<8x128xf32>
    %53 = arith.addf %51, %52 : vector<8x128xf32>
    %54 = arith.mulf %43, %12 : vector<8x128xf32>
    %55 = arith.mulf %44, %20 : vector<8x128xf32>
    %56 = arith.addf %54, %55 : vector<8x128xf32>
    %57 = arith.mulf %45, %28 : vector<8x128xf32>
    %58 = arith.addf %56, %57 : vector<8x128xf32>
    %59 = arith.mulf %46, %36 : vector<8x128xf32>
    %60 = arith.addf %58, %59 : vector<8x128xf32>
    %61 = arith.mulf %43, %13 : vector<8x128xf32>
    %62 = arith.mulf %44, %21 : vector<8x128xf32>
    %63 = arith.addf %61, %62 : vector<8x128xf32>
    %64 = arith.mulf %45, %29 : vector<8x128xf32>
    %65 = arith.addf %63, %64 : vector<8x128xf32>
    %66 = arith.mulf %46, %37 : vector<8x128xf32>
    %67 = arith.addf %65, %66 : vector<8x128xf32>
    %68 = arith.mulf %43, %14 : vector<8x128xf32>
    %69 = arith.mulf %44, %22 : vector<8x128xf32>
    %70 = arith.addf %68, %69 : vector<8x128xf32>
    %71 = arith.mulf %45, %30 : vector<8x128xf32>
    %72 = arith.addf %70, %71 : vector<8x128xf32>
    %73 = arith.mulf %46, %38 : vector<8x128xf32>
    %74 = arith.addf %72, %73 : vector<8x128xf32>
    %75 = arith.mulf %43, %15 : vector<8x128xf32>
    %76 = arith.mulf %44, %23 : vector<8x128xf32>
    %77 = arith.addf %75, %76 : vector<8x128xf32>
    %78 = arith.mulf %45, %31 : vector<8x128xf32>
    %79 = arith.addf %77, %78 : vector<8x128xf32>
    %80 = arith.mulf %46, %39 : vector<8x128xf32>
    %81 = arith.addf %79, %80 : vector<8x128xf32>
    %82 = arith.mulf %43, %16 : vector<8x128xf32>
    %83 = arith.mulf %44, %24 : vector<8x128xf32>
    %84 = arith.addf %82, %83 : vector<8x128xf32>
    %85 = arith.mulf %45, %32 : vector<8x128xf32>
    %86 = arith.addf %84, %85 : vector<8x128xf32>
    %87 = arith.mulf %46, %40 : vector<8x128xf32>
    %88 = arith.addf %86, %87 : vector<8x128xf32>
    %89 = arith.mulf %43, %17 : vector<8x128xf32>
    %90 = arith.mulf %44, %25 : vector<8x128xf32>
    %91 = arith.addf %89, %90 : vector<8x128xf32>
    %92 = arith.mulf %45, %33 : vector<8x128xf32>
    %93 = arith.addf %91, %92 : vector<8x128xf32>
    %94 = arith.mulf %46, %41 : vector<8x128xf32>
    %95 = arith.addf %93, %94 : vector<8x128xf32>
    %96 = arith.mulf %43, %18 : vector<8x128xf32>
    %97 = arith.mulf %44, %26 : vector<8x128xf32>
    %98 = arith.addf %96, %97 : vector<8x128xf32>
    %99 = arith.mulf %45, %34 : vector<8x128xf32>
    %100 = arith.addf %98, %99 : vector<8x128xf32>
    %101 = arith.mulf %46, %42 : vector<8x128xf32>
    %102 = arith.addf %100, %101 : vector<8x128xf32>
    %103 = arith.maximumf %53, %60 : vector<8x128xf32>
    %104 = arith.maximumf %103, %67 : vector<8x128xf32>
    %105 = arith.maximumf %104, %74 : vector<8x128xf32>
    %106 = arith.maximumf %105, %81 : vector<8x128xf32>
    %107 = arith.maximumf %106, %88 : vector<8x128xf32>
    %108 = arith.maximumf %107, %95 : vector<8x128xf32>
    %109 = arith.maximumf %108, %102 : vector<8x128xf32>
    %110 = arith.subf %53, %109 : vector<8x128xf32>
    %111 = math.exp %110 : vector<8x128xf32>
    %112 = arith.mulf %111, %3 : vector<8x128xf32>
    %113 = arith.subf %60, %109 : vector<8x128xf32>
    %114 = math.exp %113 : vector<8x128xf32>
    %115 = arith.addf %111, %114 : vector<8x128xf32>
    %116 = arith.mulf %114, %4 : vector<8x128xf32>
    %117 = arith.addf %112, %116 : vector<8x128xf32>
    %118 = arith.subf %67, %109 : vector<8x128xf32>
    %119 = math.exp %118 : vector<8x128xf32>
    %120 = arith.addf %115, %119 : vector<8x128xf32>
    %121 = arith.mulf %119, %5 : vector<8x128xf32>
    %122 = arith.addf %117, %121 : vector<8x128xf32>
    %123 = arith.subf %74, %109 : vector<8x128xf32>
    %124 = math.exp %123 : vector<8x128xf32>
    %125 = arith.addf %120, %124 : vector<8x128xf32>
    %126 = arith.mulf %124, %6 : vector<8x128xf32>
    %127 = arith.addf %122, %126 : vector<8x128xf32>
    %128 = arith.subf %81, %109 : vector<8x128xf32>
    %129 = math.exp %128 : vector<8x128xf32>
    %130 = arith.addf %125, %129 : vector<8x128xf32>
    %131 = arith.mulf %129, %7 : vector<8x128xf32>
    %132 = arith.addf %127, %131 : vector<8x128xf32>
    %133 = arith.subf %88, %109 : vector<8x128xf32>
    %134 = math.exp %133 : vector<8x128xf32>
    %135 = arith.addf %130, %134 : vector<8x128xf32>
    %136 = arith.mulf %134, %8 : vector<8x128xf32>
    %137 = arith.addf %132, %136 : vector<8x128xf32>
    %138 = arith.subf %95, %109 : vector<8x128xf32>
    %139 = math.exp %138 : vector<8x128xf32>
    %140 = arith.addf %135, %139 : vector<8x128xf32>
    %141 = arith.mulf %139, %9 : vector<8x128xf32>
    %142 = arith.addf %137, %141 : vector<8x128xf32>
    %143 = arith.subf %102, %109 : vector<8x128xf32>
    %144 = math.exp %143 : vector<8x128xf32>
    %145 = arith.addf %140, %144 : vector<8x128xf32>
    %146 = arith.mulf %144, %10 : vector<8x128xf32>
    %147 = arith.addf %142, %146 : vector<8x128xf32>
    %148 = tpu.reciprocal %145 : vector<8x128xf32> -> vector<8x128xf32>
    %149 = arith.mulf %147, %148 : vector<8x128xf32>
    %cst_3 = arith.constant dense<0.000000e+00> : vector<128xf32>
    %150 = vector.multi_reduction <add>, %149, %cst_3 [0] : vector<8x128xf32> to vector<128xf32>
    %151 = vector.shape_cast %150 : vector<128xf32> to vector<1x128xf32>
    %152 = vector.extract_strided_slice %2 {offsets = [8, 0], sizes = [8, 128], strides = [1, 1]} : vector<576x128xf32> to vector<8x128xf32>
    %153 = vector.extract_strided_slice %2 {offsets = [72, 0], sizes = [8, 128], strides = [1, 1]} : vector<576x128xf32> to vector<8x128xf32>
    %154 = vector.extract_strided_slice %2 {offsets = [136, 0], sizes = [8, 128], strides = [1, 1]} : vector<576x128xf32> to vector<8x128xf32>
    %155 = vector.extract_strided_slice %2 {offsets = [200, 0], sizes = [8, 128], strides = [1, 1]} : vector<576x128xf32> to vector<8x128xf32>
    %156 = arith.mulf %152, %11 : vector<8x128xf32>
    %157 = arith.mulf %153, %19 : vector<8x128xf32>
    %158 = arith.addf %156, %157 : vector<8x128xf32>
    %159 = arith.mulf %154, %27 : vector<8x128xf32>
    %160 = arith.addf %158, %159 : vector<8x128xf32>
    %161 = arith.mulf %155, %35 : vector<8x128xf32>
    %162 = arith.addf %160, %161 : vector<8x128xf32>
    %163 = arith.mulf %152, %12 : vector<8x128xf32>
    %164 = arith.mulf %153, %20 : vector<8x128xf32>
    %165 = arith.addf %163, %164 : vector<8x128xf32>
    %166 = arith.mulf %154, %28 : vector<8x128xf32>
    %167 = arith.addf %165, %166 : vector<8x128xf32>
    %168 = arith.mulf %155, %36 : vector<8x128xf32>
    %169 = arith.addf %167, %168 : vector<8x128xf32>
    %170 = arith.mulf %152, %13 : vector<8x128xf32>
    %171 = arith.mulf %153, %21 : vector<8x128xf32>
    %172 = arith.addf %170, %171 : vector<8x128xf32>
    %173 = arith.mulf %154, %29 : vector<8x128xf32>
    %174 = arith.addf %172, %173 : vector<8x128xf32>
    %175 = arith.mulf %155, %37 : vector<8x128xf32>
    %176 = arith.addf %174, %175 : vector<8x128xf32>
    %177 = arith.mulf %152, %14 : vector<8x128xf32>
    %178 = arith.mulf %153, %22 : vector<8x128xf32>
    %179 = arith.addf %177, %178 : vector<8x128xf32>
    %180 = arith.mulf %154, %30 : vector<8x128xf32>
    %181 = arith.addf %179, %180 : vector<8x128xf32>
    %182 = arith.mulf %155, %38 : vector<8x128xf32>
    %183 = arith.addf %181, %182 : vector<8x128xf32>
    %184 = arith.mulf %152, %15 : vector<8x128xf32>
    %185 = arith.mulf %153, %23 : vector<8x128xf32>
    %186 = arith.addf %184, %185 : vector<8x128xf32>
    %187 = arith.mulf %154, %31 : vector<8x128xf32>
    %188 = arith.addf %186, %187 : vector<8x128xf32>
    %189 = arith.mulf %155, %39 : vector<8x128xf32>
    %190 = arith.addf %188, %189 : vector<8x128xf32>
    %191 = arith.mulf %152, %16 : vector<8x128xf32>
    %192 = arith.mulf %153, %24 : vector<8x128xf32>
    %193 = arith.addf %191, %192 : vector<8x128xf32>
    %194 = arith.mulf %154, %32 : vector<8x128xf32>
    %195 = arith.addf %193, %194 : vector<8x128xf32>
    %196 = arith.mulf %155, %40 : vector<8x128xf32>
    %197 = arith.addf %195, %196 : vector<8x128xf32>
    %198 = arith.mulf %152, %17 : vector<8x128xf32>
    %199 = arith.mulf %153, %25 : vector<8x128xf32>
    %200 = arith.addf %198, %199 : vector<8x128xf32>
    %201 = arith.mulf %154, %33 : vector<8x128xf32>
    %202 = arith.addf %200, %201 : vector<8x128xf32>
    %203 = arith.mulf %155, %41 : vector<8x128xf32>
    %204 = arith.addf %202, %203 : vector<8x128xf32>
    %205 = arith.mulf %152, %18 : vector<8x128xf32>
    %206 = arith.mulf %153, %26 : vector<8x128xf32>
    %207 = arith.addf %205, %206 : vector<8x128xf32>
    %208 = arith.mulf %154, %34 : vector<8x128xf32>
    %209 = arith.addf %207, %208 : vector<8x128xf32>
    %210 = arith.mulf %155, %42 : vector<8x128xf32>
    %211 = arith.addf %209, %210 : vector<8x128xf32>
    %212 = arith.maximumf %162, %169 : vector<8x128xf32>
    %213 = arith.maximumf %212, %176 : vector<8x128xf32>
    %214 = arith.maximumf %213, %183 : vector<8x128xf32>
    %215 = arith.maximumf %214, %190 : vector<8x128xf32>
    %216 = arith.maximumf %215, %197 : vector<8x128xf32>
    %217 = arith.maximumf %216, %204 : vector<8x128xf32>
    %218 = arith.maximumf %217, %211 : vector<8x128xf32>
    %219 = arith.subf %162, %218 : vector<8x128xf32>
    %220 = math.exp %219 : vector<8x128xf32>
    %221 = arith.mulf %220, %3 : vector<8x128xf32>
    %222 = arith.subf %169, %218 : vector<8x128xf32>
    %223 = math.exp %222 : vector<8x128xf32>
    %224 = arith.addf %220, %223 : vector<8x128xf32>
    %225 = arith.mulf %223, %4 : vector<8x128xf32>
    %226 = arith.addf %221, %225 : vector<8x128xf32>
    %227 = arith.subf %176, %218 : vector<8x128xf32>
    %228 = math.exp %227 : vector<8x128xf32>
    %229 = arith.addf %224, %228 : vector<8x128xf32>
    %230 = arith.mulf %228, %5 : vector<8x128xf32>
    %231 = arith.addf %226, %230 : vector<8x128xf32>
    %232 = arith.subf %183, %218 : vector<8x128xf32>
    %233 = math.exp %232 : vector<8x128xf32>
    %234 = arith.addf %229, %233 : vector<8x128xf32>
    %235 = arith.mulf %233, %6 : vector<8x128xf32>
    %236 = arith.addf %231, %235 : vector<8x128xf32>
    %237 = arith.subf %190, %218 : vector<8x128xf32>
    %238 = math.exp %237 : vector<8x128xf32>
    %239 = arith.addf %234, %238 : vector<8x128xf32>
    %240 = arith.mulf %238, %7 : vector<8x128xf32>
    %241 = arith.addf %236, %240 : vector<8x128xf32>
    %242 = arith.subf %197, %218 : vector<8x128xf32>
    %243 = math.exp %242 : vector<8x128xf32>
    %244 = arith.addf %239, %243 : vector<8x128xf32>
    %245 = arith.mulf %243, %8 : vector<8x128xf32>
    %246 = arith.addf %241, %245 : vector<8x128xf32>
    %247 = arith.subf %204, %218 : vector<8x128xf32>
    %248 = math.exp %247 : vector<8x128xf32>
    %249 = arith.addf %244, %248 : vector<8x128xf32>
    %250 = arith.mulf %248, %9 : vector<8x128xf32>
    %251 = arith.addf %246, %250 : vector<8x128xf32>
    %252 = arith.subf %211, %218 : vector<8x128xf32>
    %253 = math.exp %252 : vector<8x128xf32>
    %254 = arith.addf %249, %253 : vector<8x128xf32>
    %255 = arith.mulf %253, %10 : vector<8x128xf32>
    %256 = arith.addf %251, %255 : vector<8x128xf32>
    %257 = tpu.reciprocal %254 : vector<8x128xf32> -> vector<8x128xf32>
    %258 = arith.mulf %256, %257 : vector<8x128xf32>
    %cst_4 = arith.constant dense<0.000000e+00> : vector<128xf32>
    %259 = vector.multi_reduction <add>, %258, %cst_4 [0] : vector<8x128xf32> to vector<128xf32>
    %260 = vector.shape_cast %259 : vector<128xf32> to vector<1x128xf32>
    %261 = vector.extract_strided_slice %2 {offsets = [16, 0], sizes = [8, 128], strides = [1, 1]} : vector<576x128xf32> to vector<8x128xf32>
    %262 = vector.extract_strided_slice %2 {offsets = [80, 0], sizes = [8, 128], strides = [1, 1]} : vector<576x128xf32> to vector<8x128xf32>
    %263 = vector.extract_strided_slice %2 {offsets = [144, 0], sizes = [8, 128], strides = [1, 1]} : vector<576x128xf32> to vector<8x128xf32>
    %264 = vector.extract_strided_slice %2 {offsets = [208, 0], sizes = [8, 128], strides = [1, 1]} : vector<576x128xf32> to vector<8x128xf32>
    %265 = arith.mulf %261, %11 : vector<8x128xf32>
    %266 = arith.mulf %262, %19 : vector<8x128xf32>
    %267 = arith.addf %265, %266 : vector<8x128xf32>
    %268 = arith.mulf %263, %27 : vector<8x128xf32>
    %269 = arith.addf %267, %268 : vector<8x128xf32>
    %270 = arith.mulf %264, %35 : vector<8x128xf32>
    %271 = arith.addf %269, %270 : vector<8x128xf32>
    %272 = arith.mulf %261, %12 : vector<8x128xf32>
    %273 = arith.mulf %262, %20 : vector<8x128xf32>
    %274 = arith.addf %272, %273 : vector<8x128xf32>
    %275 = arith.mulf %263, %28 : vector<8x128xf32>
    %276 = arith.addf %274, %275 : vector<8x128xf32>
    %277 = arith.mulf %264, %36 : vector<8x128xf32>
    %278 = arith.addf %276, %277 : vector<8x128xf32>
    %279 = arith.mulf %261, %13 : vector<8x128xf32>
    %280 = arith.mulf %262, %21 : vector<8x128xf32>
    %281 = arith.addf %279, %280 : vector<8x128xf32>
    %282 = arith.mulf %263, %29 : vector<8x128xf32>
    %283 = arith.addf %281, %282 : vector<8x128xf32>
    %284 = arith.mulf %264, %37 : vector<8x128xf32>
    %285 = arith.addf %283, %284 : vector<8x128xf32>
    %286 = arith.mulf %261, %14 : vector<8x128xf32>
    %287 = arith.mulf %262, %22 : vector<8x128xf32>
    %288 = arith.addf %286, %287 : vector<8x128xf32>
    %289 = arith.mulf %263, %30 : vector<8x128xf32>
    %290 = arith.addf %288, %289 : vector<8x128xf32>
    %291 = arith.mulf %264, %38 : vector<8x128xf32>
    %292 = arith.addf %290, %291 : vector<8x128xf32>
    %293 = arith.mulf %261, %15 : vector<8x128xf32>
    %294 = arith.mulf %262, %23 : vector<8x128xf32>
    %295 = arith.addf %293, %294 : vector<8x128xf32>
    %296 = arith.mulf %263, %31 : vector<8x128xf32>
    %297 = arith.addf %295, %296 : vector<8x128xf32>
    %298 = arith.mulf %264, %39 : vector<8x128xf32>
    %299 = arith.addf %297, %298 : vector<8x128xf32>
    %300 = arith.mulf %261, %16 : vector<8x128xf32>
    %301 = arith.mulf %262, %24 : vector<8x128xf32>
    %302 = arith.addf %300, %301 : vector<8x128xf32>
    %303 = arith.mulf %263, %32 : vector<8x128xf32>
    %304 = arith.addf %302, %303 : vector<8x128xf32>
    %305 = arith.mulf %264, %40 : vector<8x128xf32>
    %306 = arith.addf %304, %305 : vector<8x128xf32>
    %307 = arith.mulf %261, %17 : vector<8x128xf32>
    %308 = arith.mulf %262, %25 : vector<8x128xf32>
    %309 = arith.addf %307, %308 : vector<8x128xf32>
    %310 = arith.mulf %263, %33 : vector<8x128xf32>
    %311 = arith.addf %309, %310 : vector<8x128xf32>
    %312 = arith.mulf %264, %41 : vector<8x128xf32>
    %313 = arith.addf %311, %312 : vector<8x128xf32>
    %314 = arith.mulf %261, %18 : vector<8x128xf32>
    %315 = arith.mulf %262, %26 : vector<8x128xf32>
    %316 = arith.addf %314, %315 : vector<8x128xf32>
    %317 = arith.mulf %263, %34 : vector<8x128xf32>
    %318 = arith.addf %316, %317 : vector<8x128xf32>
    %319 = arith.mulf %264, %42 : vector<8x128xf32>
    %320 = arith.addf %318, %319 : vector<8x128xf32>
    %321 = arith.maximumf %271, %278 : vector<8x128xf32>
    %322 = arith.maximumf %321, %285 : vector<8x128xf32>
    %323 = arith.maximumf %322, %292 : vector<8x128xf32>
    %324 = arith.maximumf %323, %299 : vector<8x128xf32>
    %325 = arith.maximumf %324, %306 : vector<8x128xf32>
    %326 = arith.maximumf %325, %313 : vector<8x128xf32>
    %327 = arith.maximumf %326, %320 : vector<8x128xf32>
    %328 = arith.subf %271, %327 : vector<8x128xf32>
    %329 = math.exp %328 : vector<8x128xf32>
    %330 = arith.mulf %329, %3 : vector<8x128xf32>
    %331 = arith.subf %278, %327 : vector<8x128xf32>
    %332 = math.exp %331 : vector<8x128xf32>
    %333 = arith.addf %329, %332 : vector<8x128xf32>
    %334 = arith.mulf %332, %4 : vector<8x128xf32>
    %335 = arith.addf %330, %334 : vector<8x128xf32>
    %336 = arith.subf %285, %327 : vector<8x128xf32>
    %337 = math.exp %336 : vector<8x128xf32>
    %338 = arith.addf %333, %337 : vector<8x128xf32>
    %339 = arith.mulf %337, %5 : vector<8x128xf32>
    %340 = arith.addf %335, %339 : vector<8x128xf32>
    %341 = arith.subf %292, %327 : vector<8x128xf32>
    %342 = math.exp %341 : vector<8x128xf32>
    %343 = arith.addf %338, %342 : vector<8x128xf32>
    %344 = arith.mulf %342, %6 : vector<8x128xf32>
    %345 = arith.addf %340, %344 : vector<8x128xf32>
    %346 = arith.subf %299, %327 : vector<8x128xf32>
    %347 = math.exp %346 : vector<8x128xf32>
    %348 = arith.addf %343, %347 : vector<8x128xf32>
    %349 = arith.mulf %347, %7 : vector<8x128xf32>
    %350 = arith.addf %345, %349 : vector<8x128xf32>
    %351 = arith.subf %306, %327 : vector<8x128xf32>
    %352 = math.exp %351 : vector<8x128xf32>
    %353 = arith.addf %348, %352 : vector<8x128xf32>
    %354 = arith.mulf %352, %8 : vector<8x128xf32>
    %355 = arith.addf %350, %354 : vector<8x128xf32>
    %356 = arith.subf %313, %327 : vector<8x128xf32>
    %357 = math.exp %356 : vector<8x128xf32>
    %358 = arith.addf %353, %357 : vector<8x128xf32>
    %359 = arith.mulf %357, %9 : vector<8x128xf32>
    %360 = arith.addf %355, %359 : vector<8x128xf32>
    %361 = arith.subf %320, %327 : vector<8x128xf32>
    %362 = math.exp %361 : vector<8x128xf32>
    %363 = arith.addf %358, %362 : vector<8x128xf32>
    %364 = arith.mulf %362, %10 : vector<8x128xf32>
    %365 = arith.addf %360, %364 : vector<8x128xf32>
    %366 = tpu.reciprocal %363 : vector<8x128xf32> -> vector<8x128xf32>
    %367 = arith.mulf %365, %366 : vector<8x128xf32>
    %cst_5 = arith.constant dense<0.000000e+00> : vector<128xf32>
    %368 = vector.multi_reduction <add>, %367, %cst_5 [0] : vector<8x128xf32> to vector<128xf32>
    %369 = vector.shape_cast %368 : vector<128xf32> to vector<1x128xf32>
    %370 = vector.extract_strided_slice %2 {offsets = [24, 0], sizes = [8, 128], strides = [1, 1]} : vector<576x128xf32> to vector<8x128xf32>
    %371 = vector.extract_strided_slice %2 {offsets = [88, 0], sizes = [8, 128], strides = [1, 1]} : vector<576x128xf32> to vector<8x128xf32>
    %372 = vector.extract_strided_slice %2 {offsets = [152, 0], sizes = [8, 128], strides = [1, 1]} : vector<576x128xf32> to vector<8x128xf32>
    %373 = vector.extract_strided_slice %2 {offsets = [216, 0], sizes = [8, 128], strides = [1, 1]} : vector<576x128xf32> to vector<8x128xf32>
    %374 = arith.mulf %370, %11 : vector<8x128xf32>
    %375 = arith.mulf %371, %19 : vector<8x128xf32>
    %376 = arith.addf %374, %375 : vector<8x128xf32>
    %377 = arith.mulf %372, %27 : vector<8x128xf32>
    %378 = arith.addf %376, %377 : vector<8x128xf32>
    %379 = arith.mulf %373, %35 : vector<8x128xf32>
    %380 = arith.addf %378, %379 : vector<8x128xf32>
    %381 = arith.mulf %370, %12 : vector<8x128xf32>
    %382 = arith.mulf %371, %20 : vector<8x128xf32>
    %383 = arith.addf %381, %382 : vector<8x128xf32>
    %384 = arith.mulf %372, %28 : vector<8x128xf32>
    %385 = arith.addf %383, %384 : vector<8x128xf32>
    %386 = arith.mulf %373, %36 : vector<8x128xf32>
    %387 = arith.addf %385, %386 : vector<8x128xf32>
    %388 = arith.mulf %370, %13 : vector<8x128xf32>
    %389 = arith.mulf %371, %21 : vector<8x128xf32>
    %390 = arith.addf %388, %389 : vector<8x128xf32>
    %391 = arith.mulf %372, %29 : vector<8x128xf32>
    %392 = arith.addf %390, %391 : vector<8x128xf32>
    %393 = arith.mulf %373, %37 : vector<8x128xf32>
    %394 = arith.addf %392, %393 : vector<8x128xf32>
    %395 = arith.mulf %370, %14 : vector<8x128xf32>
    %396 = arith.mulf %371, %22 : vector<8x128xf32>
    %397 = arith.addf %395, %396 : vector<8x128xf32>
    %398 = arith.mulf %372, %30 : vector<8x128xf32>
    %399 = arith.addf %397, %398 : vector<8x128xf32>
    %400 = arith.mulf %373, %38 : vector<8x128xf32>
    %401 = arith.addf %399, %400 : vector<8x128xf32>
    %402 = arith.mulf %370, %15 : vector<8x128xf32>
    %403 = arith.mulf %371, %23 : vector<8x128xf32>
    %404 = arith.addf %402, %403 : vector<8x128xf32>
    %405 = arith.mulf %372, %31 : vector<8x128xf32>
    %406 = arith.addf %404, %405 : vector<8x128xf32>
    %407 = arith.mulf %373, %39 : vector<8x128xf32>
    %408 = arith.addf %406, %407 : vector<8x128xf32>
    %409 = arith.mulf %370, %16 : vector<8x128xf32>
    %410 = arith.mulf %371, %24 : vector<8x128xf32>
    %411 = arith.addf %409, %410 : vector<8x128xf32>
    %412 = arith.mulf %372, %32 : vector<8x128xf32>
    %413 = arith.addf %411, %412 : vector<8x128xf32>
    %414 = arith.mulf %373, %40 : vector<8x128xf32>
    %415 = arith.addf %413, %414 : vector<8x128xf32>
    %416 = arith.mulf %370, %17 : vector<8x128xf32>
    %417 = arith.mulf %371, %25 : vector<8x128xf32>
    %418 = arith.addf %416, %417 : vector<8x128xf32>
    %419 = arith.mulf %372, %33 : vector<8x128xf32>
    %420 = arith.addf %418, %419 : vector<8x128xf32>
    %421 = arith.mulf %373, %41 : vector<8x128xf32>
    %422 = arith.addf %420, %421 : vector<8x128xf32>
    %423 = arith.mulf %370, %18 : vector<8x128xf32>
    %424 = arith.mulf %371, %26 : vector<8x128xf32>
    %425 = arith.addf %423, %424 : vector<8x128xf32>
    %426 = arith.mulf %372, %34 : vector<8x128xf32>
    %427 = arith.addf %425, %426 : vector<8x128xf32>
    %428 = arith.mulf %373, %42 : vector<8x128xf32>
    %429 = arith.addf %427, %428 : vector<8x128xf32>
    %430 = arith.maximumf %380, %387 : vector<8x128xf32>
    %431 = arith.maximumf %430, %394 : vector<8x128xf32>
    %432 = arith.maximumf %431, %401 : vector<8x128xf32>
    %433 = arith.maximumf %432, %408 : vector<8x128xf32>
    %434 = arith.maximumf %433, %415 : vector<8x128xf32>
    %435 = arith.maximumf %434, %422 : vector<8x128xf32>
    %436 = arith.maximumf %435, %429 : vector<8x128xf32>
    %437 = arith.subf %380, %436 : vector<8x128xf32>
    %438 = math.exp %437 : vector<8x128xf32>
    %439 = arith.mulf %438, %3 : vector<8x128xf32>
    %440 = arith.subf %387, %436 : vector<8x128xf32>
    %441 = math.exp %440 : vector<8x128xf32>
    %442 = arith.addf %438, %441 : vector<8x128xf32>
    %443 = arith.mulf %441, %4 : vector<8x128xf32>
    %444 = arith.addf %439, %443 : vector<8x128xf32>
    %445 = arith.subf %394, %436 : vector<8x128xf32>
    %446 = math.exp %445 : vector<8x128xf32>
    %447 = arith.addf %442, %446 : vector<8x128xf32>
    %448 = arith.mulf %446, %5 : vector<8x128xf32>
    %449 = arith.addf %444, %448 : vector<8x128xf32>
    %450 = arith.subf %401, %436 : vector<8x128xf32>
    %451 = math.exp %450 : vector<8x128xf32>
    %452 = arith.addf %447, %451 : vector<8x128xf32>
    %453 = arith.mulf %451, %6 : vector<8x128xf32>
    %454 = arith.addf %449, %453 : vector<8x128xf32>
    %455 = arith.subf %408, %436 : vector<8x128xf32>
    %456 = math.exp %455 : vector<8x128xf32>
    %457 = arith.addf %452, %456 : vector<8x128xf32>
    %458 = arith.mulf %456, %7 : vector<8x128xf32>
    %459 = arith.addf %454, %458 : vector<8x128xf32>
    %460 = arith.subf %415, %436 : vector<8x128xf32>
    %461 = math.exp %460 : vector<8x128xf32>
    %462 = arith.addf %457, %461 : vector<8x128xf32>
    %463 = arith.mulf %461, %8 : vector<8x128xf32>
    %464 = arith.addf %459, %463 : vector<8x128xf32>
    %465 = arith.subf %422, %436 : vector<8x128xf32>
    %466 = math.exp %465 : vector<8x128xf32>
    %467 = arith.addf %462, %466 : vector<8x128xf32>
    %468 = arith.mulf %466, %9 : vector<8x128xf32>
    %469 = arith.addf %464, %468 : vector<8x128xf32>
    %470 = arith.subf %429, %436 : vector<8x128xf32>
    %471 = math.exp %470 : vector<8x128xf32>
    %472 = arith.addf %467, %471 : vector<8x128xf32>
    %473 = arith.mulf %471, %10 : vector<8x128xf32>
    %474 = arith.addf %469, %473 : vector<8x128xf32>
    %475 = tpu.reciprocal %472 : vector<8x128xf32> -> vector<8x128xf32>
    %476 = arith.mulf %474, %475 : vector<8x128xf32>
    %cst_6 = arith.constant dense<0.000000e+00> : vector<128xf32>
    %477 = vector.multi_reduction <add>, %476, %cst_6 [0] : vector<8x128xf32> to vector<128xf32>
    %478 = vector.shape_cast %477 : vector<128xf32> to vector<1x128xf32>
    %479 = vector.extract_strided_slice %2 {offsets = [32, 0], sizes = [8, 128], strides = [1, 1]} : vector<576x128xf32> to vector<8x128xf32>
    %480 = vector.extract_strided_slice %2 {offsets = [96, 0], sizes = [8, 128], strides = [1, 1]} : vector<576x128xf32> to vector<8x128xf32>
    %481 = vector.extract_strided_slice %2 {offsets = [160, 0], sizes = [8, 128], strides = [1, 1]} : vector<576x128xf32> to vector<8x128xf32>
    %482 = vector.extract_strided_slice %2 {offsets = [224, 0], sizes = [8, 128], strides = [1, 1]} : vector<576x128xf32> to vector<8x128xf32>
    %483 = arith.mulf %479, %11 : vector<8x128xf32>
    %484 = arith.mulf %480, %19 : vector<8x128xf32>
    %485 = arith.addf %483, %484 : vector<8x128xf32>
    %486 = arith.mulf %481, %27 : vector<8x128xf32>
    %487 = arith.addf %485, %486 : vector<8x128xf32>
    %488 = arith.mulf %482, %35 : vector<8x128xf32>
    %489 = arith.addf %487, %488 : vector<8x128xf32>
    %490 = arith.mulf %479, %12 : vector<8x128xf32>
    %491 = arith.mulf %480, %20 : vector<8x128xf32>
    %492 = arith.addf %490, %491 : vector<8x128xf32>
    %493 = arith.mulf %481, %28 : vector<8x128xf32>
    %494 = arith.addf %492, %493 : vector<8x128xf32>
    %495 = arith.mulf %482, %36 : vector<8x128xf32>
    %496 = arith.addf %494, %495 : vector<8x128xf32>
    %497 = arith.mulf %479, %13 : vector<8x128xf32>
    %498 = arith.mulf %480, %21 : vector<8x128xf32>
    %499 = arith.addf %497, %498 : vector<8x128xf32>
    %500 = arith.mulf %481, %29 : vector<8x128xf32>
    %501 = arith.addf %499, %500 : vector<8x128xf32>
    %502 = arith.mulf %482, %37 : vector<8x128xf32>
    %503 = arith.addf %501, %502 : vector<8x128xf32>
    %504 = arith.mulf %479, %14 : vector<8x128xf32>
    %505 = arith.mulf %480, %22 : vector<8x128xf32>
    %506 = arith.addf %504, %505 : vector<8x128xf32>
    %507 = arith.mulf %481, %30 : vector<8x128xf32>
    %508 = arith.addf %506, %507 : vector<8x128xf32>
    %509 = arith.mulf %482, %38 : vector<8x128xf32>
    %510 = arith.addf %508, %509 : vector<8x128xf32>
    %511 = arith.mulf %479, %15 : vector<8x128xf32>
    %512 = arith.mulf %480, %23 : vector<8x128xf32>
    %513 = arith.addf %511, %512 : vector<8x128xf32>
    %514 = arith.mulf %481, %31 : vector<8x128xf32>
    %515 = arith.addf %513, %514 : vector<8x128xf32>
    %516 = arith.mulf %482, %39 : vector<8x128xf32>
    %517 = arith.addf %515, %516 : vector<8x128xf32>
    %518 = arith.mulf %479, %16 : vector<8x128xf32>
    %519 = arith.mulf %480, %24 : vector<8x128xf32>
    %520 = arith.addf %518, %519 : vector<8x128xf32>
    %521 = arith.mulf %481, %32 : vector<8x128xf32>
    %522 = arith.addf %520, %521 : vector<8x128xf32>
    %523 = arith.mulf %482, %40 : vector<8x128xf32>
    %524 = arith.addf %522, %523 : vector<8x128xf32>
    %525 = arith.mulf %479, %17 : vector<8x128xf32>
    %526 = arith.mulf %480, %25 : vector<8x128xf32>
    %527 = arith.addf %525, %526 : vector<8x128xf32>
    %528 = arith.mulf %481, %33 : vector<8x128xf32>
    %529 = arith.addf %527, %528 : vector<8x128xf32>
    %530 = arith.mulf %482, %41 : vector<8x128xf32>
    %531 = arith.addf %529, %530 : vector<8x128xf32>
    %532 = arith.mulf %479, %18 : vector<8x128xf32>
    %533 = arith.mulf %480, %26 : vector<8x128xf32>
    %534 = arith.addf %532, %533 : vector<8x128xf32>
    %535 = arith.mulf %481, %34 : vector<8x128xf32>
    %536 = arith.addf %534, %535 : vector<8x128xf32>
    %537 = arith.mulf %482, %42 : vector<8x128xf32>
    %538 = arith.addf %536, %537 : vector<8x128xf32>
    %539 = arith.maximumf %489, %496 : vector<8x128xf32>
    %540 = arith.maximumf %539, %503 : vector<8x128xf32>
    %541 = arith.maximumf %540, %510 : vector<8x128xf32>
    %542 = arith.maximumf %541, %517 : vector<8x128xf32>
    %543 = arith.maximumf %542, %524 : vector<8x128xf32>
    %544 = arith.maximumf %543, %531 : vector<8x128xf32>
    %545 = arith.maximumf %544, %538 : vector<8x128xf32>
    %546 = arith.subf %489, %545 : vector<8x128xf32>
    %547 = math.exp %546 : vector<8x128xf32>
    %548 = arith.mulf %547, %3 : vector<8x128xf32>
    %549 = arith.subf %496, %545 : vector<8x128xf32>
    %550 = math.exp %549 : vector<8x128xf32>
    %551 = arith.addf %547, %550 : vector<8x128xf32>
    %552 = arith.mulf %550, %4 : vector<8x128xf32>
    %553 = arith.addf %548, %552 : vector<8x128xf32>
    %554 = arith.subf %503, %545 : vector<8x128xf32>
    %555 = math.exp %554 : vector<8x128xf32>
    %556 = arith.addf %551, %555 : vector<8x128xf32>
    %557 = arith.mulf %555, %5 : vector<8x128xf32>
    %558 = arith.addf %553, %557 : vector<8x128xf32>
    %559 = arith.subf %510, %545 : vector<8x128xf32>
    %560 = math.exp %559 : vector<8x128xf32>
    %561 = arith.addf %556, %560 : vector<8x128xf32>
    %562 = arith.mulf %560, %6 : vector<8x128xf32>
    %563 = arith.addf %558, %562 : vector<8x128xf32>
    %564 = arith.subf %517, %545 : vector<8x128xf32>
    %565 = math.exp %564 : vector<8x128xf32>
    %566 = arith.addf %561, %565 : vector<8x128xf32>
    %567 = arith.mulf %565, %7 : vector<8x128xf32>
    %568 = arith.addf %563, %567 : vector<8x128xf32>
    %569 = arith.subf %524, %545 : vector<8x128xf32>
    %570 = math.exp %569 : vector<8x128xf32>
    %571 = arith.addf %566, %570 : vector<8x128xf32>
    %572 = arith.mulf %570, %8 : vector<8x128xf32>
    %573 = arith.addf %568, %572 : vector<8x128xf32>
    %574 = arith.subf %531, %545 : vector<8x128xf32>
    %575 = math.exp %574 : vector<8x128xf32>
    %576 = arith.addf %571, %575 : vector<8x128xf32>
    %577 = arith.mulf %575, %9 : vector<8x128xf32>
    %578 = arith.addf %573, %577 : vector<8x128xf32>
    %579 = arith.subf %538, %545 : vector<8x128xf32>
    %580 = math.exp %579 : vector<8x128xf32>
    %581 = arith.addf %576, %580 : vector<8x128xf32>
    %582 = arith.mulf %580, %10 : vector<8x128xf32>
    %583 = arith.addf %578, %582 : vector<8x128xf32>
    %584 = tpu.reciprocal %581 : vector<8x128xf32> -> vector<8x128xf32>
    %585 = arith.mulf %583, %584 : vector<8x128xf32>
    %cst_7 = arith.constant dense<0.000000e+00> : vector<128xf32>
    %586 = vector.multi_reduction <add>, %585, %cst_7 [0] : vector<8x128xf32> to vector<128xf32>
    %587 = vector.shape_cast %586 : vector<128xf32> to vector<1x128xf32>
    %588 = vector.extract_strided_slice %2 {offsets = [40, 0], sizes = [8, 128], strides = [1, 1]} : vector<576x128xf32> to vector<8x128xf32>
    %589 = vector.extract_strided_slice %2 {offsets = [104, 0], sizes = [8, 128], strides = [1, 1]} : vector<576x128xf32> to vector<8x128xf32>
    %590 = vector.extract_strided_slice %2 {offsets = [168, 0], sizes = [8, 128], strides = [1, 1]} : vector<576x128xf32> to vector<8x128xf32>
    %591 = vector.extract_strided_slice %2 {offsets = [232, 0], sizes = [8, 128], strides = [1, 1]} : vector<576x128xf32> to vector<8x128xf32>
    %592 = arith.mulf %588, %11 : vector<8x128xf32>
    %593 = arith.mulf %589, %19 : vector<8x128xf32>
    %594 = arith.addf %592, %593 : vector<8x128xf32>
    %595 = arith.mulf %590, %27 : vector<8x128xf32>
    %596 = arith.addf %594, %595 : vector<8x128xf32>
    %597 = arith.mulf %591, %35 : vector<8x128xf32>
    %598 = arith.addf %596, %597 : vector<8x128xf32>
    %599 = arith.mulf %588, %12 : vector<8x128xf32>
    %600 = arith.mulf %589, %20 : vector<8x128xf32>
    %601 = arith.addf %599, %600 : vector<8x128xf32>
    %602 = arith.mulf %590, %28 : vector<8x128xf32>
    %603 = arith.addf %601, %602 : vector<8x128xf32>
    %604 = arith.mulf %591, %36 : vector<8x128xf32>
    %605 = arith.addf %603, %604 : vector<8x128xf32>
    %606 = arith.mulf %588, %13 : vector<8x128xf32>
    %607 = arith.mulf %589, %21 : vector<8x128xf32>
    %608 = arith.addf %606, %607 : vector<8x128xf32>
    %609 = arith.mulf %590, %29 : vector<8x128xf32>
    %610 = arith.addf %608, %609 : vector<8x128xf32>
    %611 = arith.mulf %591, %37 : vector<8x128xf32>
    %612 = arith.addf %610, %611 : vector<8x128xf32>
    %613 = arith.mulf %588, %14 : vector<8x128xf32>
    %614 = arith.mulf %589, %22 : vector<8x128xf32>
    %615 = arith.addf %613, %614 : vector<8x128xf32>
    %616 = arith.mulf %590, %30 : vector<8x128xf32>
    %617 = arith.addf %615, %616 : vector<8x128xf32>
    %618 = arith.mulf %591, %38 : vector<8x128xf32>
    %619 = arith.addf %617, %618 : vector<8x128xf32>
    %620 = arith.mulf %588, %15 : vector<8x128xf32>
    %621 = arith.mulf %589, %23 : vector<8x128xf32>
    %622 = arith.addf %620, %621 : vector<8x128xf32>
    %623 = arith.mulf %590, %31 : vector<8x128xf32>
    %624 = arith.addf %622, %623 : vector<8x128xf32>
    %625 = arith.mulf %591, %39 : vector<8x128xf32>
    %626 = arith.addf %624, %625 : vector<8x128xf32>
    %627 = arith.mulf %588, %16 : vector<8x128xf32>
    %628 = arith.mulf %589, %24 : vector<8x128xf32>
    %629 = arith.addf %627, %628 : vector<8x128xf32>
    %630 = arith.mulf %590, %32 : vector<8x128xf32>
    %631 = arith.addf %629, %630 : vector<8x128xf32>
    %632 = arith.mulf %591, %40 : vector<8x128xf32>
    %633 = arith.addf %631, %632 : vector<8x128xf32>
    %634 = arith.mulf %588, %17 : vector<8x128xf32>
    %635 = arith.mulf %589, %25 : vector<8x128xf32>
    %636 = arith.addf %634, %635 : vector<8x128xf32>
    %637 = arith.mulf %590, %33 : vector<8x128xf32>
    %638 = arith.addf %636, %637 : vector<8x128xf32>
    %639 = arith.mulf %591, %41 : vector<8x128xf32>
    %640 = arith.addf %638, %639 : vector<8x128xf32>
    %641 = arith.mulf %588, %18 : vector<8x128xf32>
    %642 = arith.mulf %589, %26 : vector<8x128xf32>
    %643 = arith.addf %641, %642 : vector<8x128xf32>
    %644 = arith.mulf %590, %34 : vector<8x128xf32>
    %645 = arith.addf %643, %644 : vector<8x128xf32>
    %646 = arith.mulf %591, %42 : vector<8x128xf32>
    %647 = arith.addf %645, %646 : vector<8x128xf32>
    %648 = arith.maximumf %598, %605 : vector<8x128xf32>
    %649 = arith.maximumf %648, %612 : vector<8x128xf32>
    %650 = arith.maximumf %649, %619 : vector<8x128xf32>
    %651 = arith.maximumf %650, %626 : vector<8x128xf32>
    %652 = arith.maximumf %651, %633 : vector<8x128xf32>
    %653 = arith.maximumf %652, %640 : vector<8x128xf32>
    %654 = arith.maximumf %653, %647 : vector<8x128xf32>
    %655 = arith.subf %598, %654 : vector<8x128xf32>
    %656 = math.exp %655 : vector<8x128xf32>
    %657 = arith.mulf %656, %3 : vector<8x128xf32>
    %658 = arith.subf %605, %654 : vector<8x128xf32>
    %659 = math.exp %658 : vector<8x128xf32>
    %660 = arith.addf %656, %659 : vector<8x128xf32>
    %661 = arith.mulf %659, %4 : vector<8x128xf32>
    %662 = arith.addf %657, %661 : vector<8x128xf32>
    %663 = arith.subf %612, %654 : vector<8x128xf32>
    %664 = math.exp %663 : vector<8x128xf32>
    %665 = arith.addf %660, %664 : vector<8x128xf32>
    %666 = arith.mulf %664, %5 : vector<8x128xf32>
    %667 = arith.addf %662, %666 : vector<8x128xf32>
    %668 = arith.subf %619, %654 : vector<8x128xf32>
    %669 = math.exp %668 : vector<8x128xf32>
    %670 = arith.addf %665, %669 : vector<8x128xf32>
    %671 = arith.mulf %669, %6 : vector<8x128xf32>
    %672 = arith.addf %667, %671 : vector<8x128xf32>
    %673 = arith.subf %626, %654 : vector<8x128xf32>
    %674 = math.exp %673 : vector<8x128xf32>
    %675 = arith.addf %670, %674 : vector<8x128xf32>
    %676 = arith.mulf %674, %7 : vector<8x128xf32>
    %677 = arith.addf %672, %676 : vector<8x128xf32>
    %678 = arith.subf %633, %654 : vector<8x128xf32>
    %679 = math.exp %678 : vector<8x128xf32>
    %680 = arith.addf %675, %679 : vector<8x128xf32>
    %681 = arith.mulf %679, %8 : vector<8x128xf32>
    %682 = arith.addf %677, %681 : vector<8x128xf32>
    %683 = arith.subf %640, %654 : vector<8x128xf32>
    %684 = math.exp %683 : vector<8x128xf32>
    %685 = arith.addf %680, %684 : vector<8x128xf32>
    %686 = arith.mulf %684, %9 : vector<8x128xf32>
    %687 = arith.addf %682, %686 : vector<8x128xf32>
    %688 = arith.subf %647, %654 : vector<8x128xf32>
    %689 = math.exp %688 : vector<8x128xf32>
    %690 = arith.addf %685, %689 : vector<8x128xf32>
    %691 = arith.mulf %689, %10 : vector<8x128xf32>
    %692 = arith.addf %687, %691 : vector<8x128xf32>
    %693 = tpu.reciprocal %690 : vector<8x128xf32> -> vector<8x128xf32>
    %694 = arith.mulf %692, %693 : vector<8x128xf32>
    %cst_8 = arith.constant dense<0.000000e+00> : vector<128xf32>
    %695 = vector.multi_reduction <add>, %694, %cst_8 [0] : vector<8x128xf32> to vector<128xf32>
    %696 = vector.shape_cast %695 : vector<128xf32> to vector<1x128xf32>
    %697 = vector.extract_strided_slice %2 {offsets = [48, 0], sizes = [8, 128], strides = [1, 1]} : vector<576x128xf32> to vector<8x128xf32>
    %698 = vector.extract_strided_slice %2 {offsets = [112, 0], sizes = [8, 128], strides = [1, 1]} : vector<576x128xf32> to vector<8x128xf32>
    %699 = vector.extract_strided_slice %2 {offsets = [176, 0], sizes = [8, 128], strides = [1, 1]} : vector<576x128xf32> to vector<8x128xf32>
    %700 = vector.extract_strided_slice %2 {offsets = [240, 0], sizes = [8, 128], strides = [1, 1]} : vector<576x128xf32> to vector<8x128xf32>
    %701 = arith.mulf %697, %11 : vector<8x128xf32>
    %702 = arith.mulf %698, %19 : vector<8x128xf32>
    %703 = arith.addf %701, %702 : vector<8x128xf32>
    %704 = arith.mulf %699, %27 : vector<8x128xf32>
    %705 = arith.addf %703, %704 : vector<8x128xf32>
    %706 = arith.mulf %700, %35 : vector<8x128xf32>
    %707 = arith.addf %705, %706 : vector<8x128xf32>
    %708 = arith.mulf %697, %12 : vector<8x128xf32>
    %709 = arith.mulf %698, %20 : vector<8x128xf32>
    %710 = arith.addf %708, %709 : vector<8x128xf32>
    %711 = arith.mulf %699, %28 : vector<8x128xf32>
    %712 = arith.addf %710, %711 : vector<8x128xf32>
    %713 = arith.mulf %700, %36 : vector<8x128xf32>
    %714 = arith.addf %712, %713 : vector<8x128xf32>
    %715 = arith.mulf %697, %13 : vector<8x128xf32>
    %716 = arith.mulf %698, %21 : vector<8x128xf32>
    %717 = arith.addf %715, %716 : vector<8x128xf32>
    %718 = arith.mulf %699, %29 : vector<8x128xf32>
    %719 = arith.addf %717, %718 : vector<8x128xf32>
    %720 = arith.mulf %700, %37 : vector<8x128xf32>
    %721 = arith.addf %719, %720 : vector<8x128xf32>
    %722 = arith.mulf %697, %14 : vector<8x128xf32>
    %723 = arith.mulf %698, %22 : vector<8x128xf32>
    %724 = arith.addf %722, %723 : vector<8x128xf32>
    %725 = arith.mulf %699, %30 : vector<8x128xf32>
    %726 = arith.addf %724, %725 : vector<8x128xf32>
    %727 = arith.mulf %700, %38 : vector<8x128xf32>
    %728 = arith.addf %726, %727 : vector<8x128xf32>
    %729 = arith.mulf %697, %15 : vector<8x128xf32>
    %730 = arith.mulf %698, %23 : vector<8x128xf32>
    %731 = arith.addf %729, %730 : vector<8x128xf32>
    %732 = arith.mulf %699, %31 : vector<8x128xf32>
    %733 = arith.addf %731, %732 : vector<8x128xf32>
    %734 = arith.mulf %700, %39 : vector<8x128xf32>
    %735 = arith.addf %733, %734 : vector<8x128xf32>
    %736 = arith.mulf %697, %16 : vector<8x128xf32>
    %737 = arith.mulf %698, %24 : vector<8x128xf32>
    %738 = arith.addf %736, %737 : vector<8x128xf32>
    %739 = arith.mulf %699, %32 : vector<8x128xf32>
    %740 = arith.addf %738, %739 : vector<8x128xf32>
    %741 = arith.mulf %700, %40 : vector<8x128xf32>
    %742 = arith.addf %740, %741 : vector<8x128xf32>
    %743 = arith.mulf %697, %17 : vector<8x128xf32>
    %744 = arith.mulf %698, %25 : vector<8x128xf32>
    %745 = arith.addf %743, %744 : vector<8x128xf32>
    %746 = arith.mulf %699, %33 : vector<8x128xf32>
    %747 = arith.addf %745, %746 : vector<8x128xf32>
    %748 = arith.mulf %700, %41 : vector<8x128xf32>
    %749 = arith.addf %747, %748 : vector<8x128xf32>
    %750 = arith.mulf %697, %18 : vector<8x128xf32>
    %751 = arith.mulf %698, %26 : vector<8x128xf32>
    %752 = arith.addf %750, %751 : vector<8x128xf32>
    %753 = arith.mulf %699, %34 : vector<8x128xf32>
    %754 = arith.addf %752, %753 : vector<8x128xf32>
    %755 = arith.mulf %700, %42 : vector<8x128xf32>
    %756 = arith.addf %754, %755 : vector<8x128xf32>
    %757 = arith.maximumf %707, %714 : vector<8x128xf32>
    %758 = arith.maximumf %757, %721 : vector<8x128xf32>
    %759 = arith.maximumf %758, %728 : vector<8x128xf32>
    %760 = arith.maximumf %759, %735 : vector<8x128xf32>
    %761 = arith.maximumf %760, %742 : vector<8x128xf32>
    %762 = arith.maximumf %761, %749 : vector<8x128xf32>
    %763 = arith.maximumf %762, %756 : vector<8x128xf32>
    %764 = arith.subf %707, %763 : vector<8x128xf32>
    %765 = math.exp %764 : vector<8x128xf32>
    %766 = arith.mulf %765, %3 : vector<8x128xf32>
    %767 = arith.subf %714, %763 : vector<8x128xf32>
    %768 = math.exp %767 : vector<8x128xf32>
    %769 = arith.addf %765, %768 : vector<8x128xf32>
    %770 = arith.mulf %768, %4 : vector<8x128xf32>
    %771 = arith.addf %766, %770 : vector<8x128xf32>
    %772 = arith.subf %721, %763 : vector<8x128xf32>
    %773 = math.exp %772 : vector<8x128xf32>
    %774 = arith.addf %769, %773 : vector<8x128xf32>
    %775 = arith.mulf %773, %5 : vector<8x128xf32>
    %776 = arith.addf %771, %775 : vector<8x128xf32>
    %777 = arith.subf %728, %763 : vector<8x128xf32>
    %778 = math.exp %777 : vector<8x128xf32>
    %779 = arith.addf %774, %778 : vector<8x128xf32>
    %780 = arith.mulf %778, %6 : vector<8x128xf32>
    %781 = arith.addf %776, %780 : vector<8x128xf32>
    %782 = arith.subf %735, %763 : vector<8x128xf32>
    %783 = math.exp %782 : vector<8x128xf32>
    %784 = arith.addf %779, %783 : vector<8x128xf32>
    %785 = arith.mulf %783, %7 : vector<8x128xf32>
    %786 = arith.addf %781, %785 : vector<8x128xf32>
    %787 = arith.subf %742, %763 : vector<8x128xf32>
    %788 = math.exp %787 : vector<8x128xf32>
    %789 = arith.addf %784, %788 : vector<8x128xf32>
    %790 = arith.mulf %788, %8 : vector<8x128xf32>
    %791 = arith.addf %786, %790 : vector<8x128xf32>
    %792 = arith.subf %749, %763 : vector<8x128xf32>
    %793 = math.exp %792 : vector<8x128xf32>
    %794 = arith.addf %789, %793 : vector<8x128xf32>
    %795 = arith.mulf %793, %9 : vector<8x128xf32>
    %796 = arith.addf %791, %795 : vector<8x128xf32>
    %797 = arith.subf %756, %763 : vector<8x128xf32>
    %798 = math.exp %797 : vector<8x128xf32>
    %799 = arith.addf %794, %798 : vector<8x128xf32>
    %800 = arith.mulf %798, %10 : vector<8x128xf32>
    %801 = arith.addf %796, %800 : vector<8x128xf32>
    %802 = tpu.reciprocal %799 : vector<8x128xf32> -> vector<8x128xf32>
    %803 = arith.mulf %801, %802 : vector<8x128xf32>
    %cst_9 = arith.constant dense<0.000000e+00> : vector<128xf32>
    %804 = vector.multi_reduction <add>, %803, %cst_9 [0] : vector<8x128xf32> to vector<128xf32>
    %805 = vector.shape_cast %804 : vector<128xf32> to vector<1x128xf32>
    %806 = vector.extract_strided_slice %2 {offsets = [56, 0], sizes = [8, 128], strides = [1, 1]} : vector<576x128xf32> to vector<8x128xf32>
    %807 = vector.extract_strided_slice %2 {offsets = [120, 0], sizes = [8, 128], strides = [1, 1]} : vector<576x128xf32> to vector<8x128xf32>
    %808 = vector.extract_strided_slice %2 {offsets = [184, 0], sizes = [8, 128], strides = [1, 1]} : vector<576x128xf32> to vector<8x128xf32>
    %809 = vector.extract_strided_slice %2 {offsets = [248, 0], sizes = [8, 128], strides = [1, 1]} : vector<576x128xf32> to vector<8x128xf32>
    %810 = arith.mulf %806, %11 : vector<8x128xf32>
    %811 = arith.mulf %807, %19 : vector<8x128xf32>
    %812 = arith.addf %810, %811 : vector<8x128xf32>
    %813 = arith.mulf %808, %27 : vector<8x128xf32>
    %814 = arith.addf %812, %813 : vector<8x128xf32>
    %815 = arith.mulf %809, %35 : vector<8x128xf32>
    %816 = arith.addf %814, %815 : vector<8x128xf32>
    %817 = arith.mulf %806, %12 : vector<8x128xf32>
    %818 = arith.mulf %807, %20 : vector<8x128xf32>
    %819 = arith.addf %817, %818 : vector<8x128xf32>
    %820 = arith.mulf %808, %28 : vector<8x128xf32>
    %821 = arith.addf %819, %820 : vector<8x128xf32>
    %822 = arith.mulf %809, %36 : vector<8x128xf32>
    %823 = arith.addf %821, %822 : vector<8x128xf32>
    %824 = arith.mulf %806, %13 : vector<8x128xf32>
    %825 = arith.mulf %807, %21 : vector<8x128xf32>
    %826 = arith.addf %824, %825 : vector<8x128xf32>
    %827 = arith.mulf %808, %29 : vector<8x128xf32>
    %828 = arith.addf %826, %827 : vector<8x128xf32>
    %829 = arith.mulf %809, %37 : vector<8x128xf32>
    %830 = arith.addf %828, %829 : vector<8x128xf32>
    %831 = arith.mulf %806, %14 : vector<8x128xf32>
    %832 = arith.mulf %807, %22 : vector<8x128xf32>
    %833 = arith.addf %831, %832 : vector<8x128xf32>
    %834 = arith.mulf %808, %30 : vector<8x128xf32>
    %835 = arith.addf %833, %834 : vector<8x128xf32>
    %836 = arith.mulf %809, %38 : vector<8x128xf32>
    %837 = arith.addf %835, %836 : vector<8x128xf32>
    %838 = arith.mulf %806, %15 : vector<8x128xf32>
    %839 = arith.mulf %807, %23 : vector<8x128xf32>
    %840 = arith.addf %838, %839 : vector<8x128xf32>
    %841 = arith.mulf %808, %31 : vector<8x128xf32>
    %842 = arith.addf %840, %841 : vector<8x128xf32>
    %843 = arith.mulf %809, %39 : vector<8x128xf32>
    %844 = arith.addf %842, %843 : vector<8x128xf32>
    %845 = arith.mulf %806, %16 : vector<8x128xf32>
    %846 = arith.mulf %807, %24 : vector<8x128xf32>
    %847 = arith.addf %845, %846 : vector<8x128xf32>
    %848 = arith.mulf %808, %32 : vector<8x128xf32>
    %849 = arith.addf %847, %848 : vector<8x128xf32>
    %850 = arith.mulf %809, %40 : vector<8x128xf32>
    %851 = arith.addf %849, %850 : vector<8x128xf32>
    %852 = arith.mulf %806, %17 : vector<8x128xf32>
    %853 = arith.mulf %807, %25 : vector<8x128xf32>
    %854 = arith.addf %852, %853 : vector<8x128xf32>
    %855 = arith.mulf %808, %33 : vector<8x128xf32>
    %856 = arith.addf %854, %855 : vector<8x128xf32>
    %857 = arith.mulf %809, %41 : vector<8x128xf32>
    %858 = arith.addf %856, %857 : vector<8x128xf32>
    %859 = arith.mulf %806, %18 : vector<8x128xf32>
    %860 = arith.mulf %807, %26 : vector<8x128xf32>
    %861 = arith.addf %859, %860 : vector<8x128xf32>
    %862 = arith.mulf %808, %34 : vector<8x128xf32>
    %863 = arith.addf %861, %862 : vector<8x128xf32>
    %864 = arith.mulf %809, %42 : vector<8x128xf32>
    %865 = arith.addf %863, %864 : vector<8x128xf32>
    %866 = arith.maximumf %816, %823 : vector<8x128xf32>
    %867 = arith.maximumf %866, %830 : vector<8x128xf32>
    %868 = arith.maximumf %867, %837 : vector<8x128xf32>
    %869 = arith.maximumf %868, %844 : vector<8x128xf32>
    %870 = arith.maximumf %869, %851 : vector<8x128xf32>
    %871 = arith.maximumf %870, %858 : vector<8x128xf32>
    %872 = arith.maximumf %871, %865 : vector<8x128xf32>
    %873 = arith.subf %816, %872 : vector<8x128xf32>
    %874 = math.exp %873 : vector<8x128xf32>
    %875 = arith.mulf %874, %3 : vector<8x128xf32>
    %876 = arith.subf %823, %872 : vector<8x128xf32>
    %877 = math.exp %876 : vector<8x128xf32>
    %878 = arith.addf %874, %877 : vector<8x128xf32>
    %879 = arith.mulf %877, %4 : vector<8x128xf32>
    %880 = arith.addf %875, %879 : vector<8x128xf32>
    %881 = arith.subf %830, %872 : vector<8x128xf32>
    %882 = math.exp %881 : vector<8x128xf32>
    %883 = arith.addf %878, %882 : vector<8x128xf32>
    %884 = arith.mulf %882, %5 : vector<8x128xf32>
    %885 = arith.addf %880, %884 : vector<8x128xf32>
    %886 = arith.subf %837, %872 : vector<8x128xf32>
    %887 = math.exp %886 : vector<8x128xf32>
    %888 = arith.addf %883, %887 : vector<8x128xf32>
    %889 = arith.mulf %887, %6 : vector<8x128xf32>
    %890 = arith.addf %885, %889 : vector<8x128xf32>
    %891 = arith.subf %844, %872 : vector<8x128xf32>
    %892 = math.exp %891 : vector<8x128xf32>
    %893 = arith.addf %888, %892 : vector<8x128xf32>
    %894 = arith.mulf %892, %7 : vector<8x128xf32>
    %895 = arith.addf %890, %894 : vector<8x128xf32>
    %896 = arith.subf %851, %872 : vector<8x128xf32>
    %897 = math.exp %896 : vector<8x128xf32>
    %898 = arith.addf %893, %897 : vector<8x128xf32>
    %899 = arith.mulf %897, %8 : vector<8x128xf32>
    %900 = arith.addf %895, %899 : vector<8x128xf32>
    %901 = arith.subf %858, %872 : vector<8x128xf32>
    %902 = math.exp %901 : vector<8x128xf32>
    %903 = arith.addf %898, %902 : vector<8x128xf32>
    %904 = arith.mulf %902, %9 : vector<8x128xf32>
    %905 = arith.addf %900, %904 : vector<8x128xf32>
    %906 = arith.subf %865, %872 : vector<8x128xf32>
    %907 = math.exp %906 : vector<8x128xf32>
    %908 = arith.addf %903, %907 : vector<8x128xf32>
    %909 = arith.mulf %907, %10 : vector<8x128xf32>
    %910 = arith.addf %905, %909 : vector<8x128xf32>
    %911 = tpu.reciprocal %908 : vector<8x128xf32> -> vector<8x128xf32>
    %912 = arith.mulf %910, %911 : vector<8x128xf32>
    %cst_10 = arith.constant dense<0.000000e+00> : vector<128xf32>
    %913 = vector.multi_reduction <add>, %912, %cst_10 [0] : vector<8x128xf32> to vector<128xf32>
    %914 = vector.shape_cast %913 : vector<128xf32> to vector<1x128xf32>
    %915 = tpu.concatenate %151, %260, %369, %478, %587, %696, %805, %914 in 0 : vector<1x128xf32>, vector<1x128xf32>, vector<1x128xf32>, vector<1x128xf32>, vector<1x128xf32>, vector<1x128xf32>, vector<1x128xf32>, vector<1x128xf32> -> vector<8x128xf32>
    %916 = arith.negf %915 : vector<8x128xf32>
    %917 = math.exp %916 : vector<8x128xf32>
    %cst_11 = arith.constant 1.000000e+00 : f32
    %918 = vector.broadcast %cst_11 : f32 to vector<8x128xf32>
    %919 = arith.addf %918, %917 : vector<8x128xf32>
    %920 = arith.divf %918, %919 : vector<8x128xf32>
    %c0_12 = arith.constant 0 : index
    %c0_13 = arith.constant 0 : index
    %921 = vector.load %arg3[%c0_12, %c0_13] : memref<8x128xf32, #tpu.memory_space<vmem>>, vector<8x128xf32>
    tpu.vector_store %arg3[%c0_12, %c0_13], %920 {strides = array<i32>} : memref<8x128xf32, #tpu.memory_space<vmem>>, vector<8x128xf32>,
    return
  }
  func.func @transform_0(%arg0: i32) -> (i32, i32) {
    %c0_i32 = arith.constant 0 : i32
    %c0_i32_0 = arith.constant 0 : i32
    return %c0_i32, %arg0 : i32, i32
  }
  func.func @transform_1(%arg0: i32) -> (i32, i32) {
    %c0_i32 = arith.constant 0 : i32
    %c0_i32_0 = arith.constant 0 : i32
    %c0_i32_1 = arith.constant 0 : i32
    return %c0_i32, %c0_i32_0 : i32, i32
  }
  func.func @transform_2(%arg0: i32) -> (i32, i32) {
    %c0_i32 = arith.constant 0 : i32
    %c0_i32_0 = arith.constant 0 : i32
    return %c0_i32, %arg0 : i32, i32
  }
}

</mosaic_0001>

<bundles_post_ra>
// kernel: masknet_1d_pallas.1
= control target key start
LH: loop header
LB: loop body
LE: loop exit
PB: predicated region body
PF: predicated region fallthrough
CT: control target
= control target key end

     0   :  { %7 = vsyncpa [#allocation3], 0  ;;  %s2150_s9 = smov [#allocation2]   ;;  %s4057_s0 = inlined_call_operand.vmem [shape: f32[9,128], index: 0, kind: input, shape index: {}]   ;;  %s4058_s1 = inlined_call_operand.hbm [shape: f32[576,9], index: 1, kind: input, shape index: {}]   ;;  %s4059_s2 = inlined_call_operand.vmem [shape: f32[8,128], index: 2, kind: output, shape index: {}]  }
   0x1   :  { %s15_s10 = sshll.u32 %s2150_s9, 4  ;;  %s2126_s13 = scalar_lea.hbm %s4058_s1, 9216  ;;  %s16_s10 = int_to_ptr.vmem [resolvable:$true] %s15_s10 }
   0x2   :  { %p2127_p0 = scmp.ne.s32.totalorder %s4058_s1, %s2126_s13  ;;  %p2130_p1 = scmp.lt.u32.totalorder %s2126_s13, %s4058_s1 }
   0x4   :  { %p2132_p2 = pnand %p2130_p1, %p2127_p0 }
   0x6   :  { %2135 = shalt.err (!%p2132_p2)
}
   0x7   :  { %s2136_s18 = scalar_lea.vmem %s16_s10, 9216  ;;  %p2141_p4 = scmp.lt.s32.totalorder %s16_s10, %s16_s10 }
   0x8   :  { %p2137_p3 = scmp.ne.s32.totalorder %s16_s10, %s2136_s18  ;;  %p2142_p5 = scmp.lt.s32.totalorder %s2136_s18, %s2136_s18 }
   0xa   :  { %p2143_p6 = por %p2142_p5, %p2141_p4 }
   0xc   :  { %p2144_p7 = pnand %p2143_p6, %p2137_p3 }
   0xe   :  { %2147 = shalt.err (!%p2144_p7)
}
   0xf   :  { %s2151_s19 = smov 128   ;;  %s2152_s20 = smov 8  }
  0x10   :  { %21 = dma.hbm_to_vmem [thread:$0]  %s4058_s1, 9216, %s16_s10, [#allocation3], %s2151_s19, %s2151_s19, %s2152_s20  }
  0x11   :  { %2148 = dma.done.wait [#allocation3], 9216  }
  0x12   :  { %2149 = vsyncadd [#allocation3], 4294958080  ;;  %vm316_vm0 = vcmask 1040384   ;;  %vm99_vm1 = vcmask 72704   ;;  %vm2153_vm2 = vmmov 1   ;;  %v25_v0 = vld [vmem:[%s4057_s0] sm:$0xff] }
  0x13   :  { %vm1967_vm3 = vmpackc.low %vm316_vm0, %vm2153_vm2  ;;  %v26_v1 = vld [vmem:[%s4057_s0 + $0x8] sm:$0x1]  ;;  %v27_v2 = vld [vmem:[#allocation2] sm:$0xff]  ;;  %vm1682_vm4 = vcmask 1041408   ;;  %vm1684_vm5 = vcmask 1042432   ;;  %vm1686_vm6 = vcmask 1043456  }
  0x14   :  { %v1966_v3 = vpack.c.bf16 %v26_v1, %v25_v0  ;;  %1858 = vmatprep.mubr.msk.f32.mxu0 %vm99_vm1, %v27_v2  ;;  %v63_v4 = vld [vmem:[#allocation2 + $0x120] sm:$0xff]  ;;  %v28_v5 = vld [vmem:[#allocation2 + $0x8] sm:$0xff]  ;;  %v29_v7 = vld [vmem:[#allocation2 + $0x10] sm:$0xff]  ;;  %vm1688_vm7 = vcmask 1044480   ;;  %vm1690_vm8 = vcmask 1045504   ;;  %vm1692_vm9 = vcmask 1046528  }
  0x15   :  { %1912 = vmatprep.mubr.msk.f32.mxu1 %vm99_vm1, %v63_v4  ;;  %v64_v6 = vld [vmem:[#allocation2 + $0x128] sm:$0xff]  ;;  %v65_v8 = vld [vmem:[#allocation2 + $0x130] sm:$0xff]  ;;  %v30_v9 = vld [vmem:[#allocation2 + $0x18] sm:$0xff] }
  0x16   :  { %1968 = vmatprep.subr.msk.bf16.mxu0 %vm1967_vm3, %v1966_v3  ;;  %1972 = vmatprep.subr.msk.bf16.mxu1 %vm1967_vm3, %v1966_v3  ;;  %v66_v10 = vld [vmem:[#allocation2 + $0x138] sm:$0xff]  ;;  %v31_v11 = vld [vmem:[#allocation2 + $0x20] sm:$0xff]  ;;  %v32_v13 = vld [vmem:[#allocation2 + $0x28] sm:$0xff] }
  0x17   :  { %1971 = vmatpush3.bf16.msk.msra.mxu0 %vm1967_vm3, %v1966_v3  ;;  %1973 = vmatpush3.bf16.msk.msra.mxu1 %vm1967_vm3, %v1966_v3  ;;  %v67_v12 = vld [vmem:[#allocation2 + $0x140] sm:$0xff]  ;;  %v68_v14 = vld [vmem:[#allocation2 + $0x148] sm:$0xff]  ;;  %v33_v15 = vld [vmem:[#allocation2 + $0x30] sm:$0xff] }
  0x18   :  { %v69_v16 = vld [vmem:[#allocation2 + $0x150] sm:$0xff]  ;;  %v34_v17 = vld [vmem:[#allocation2 + $0x38] sm:$0xff]  ;;  %v35_v19 = vld [vmem:[#allocation2 + $0x40] sm:$0xff] }
  0x19   :  { %v70_v18 = vld [vmem:[#allocation2 + $0x158] sm:$0xff]  ;;  %v71_v20 = vld [vmem:[#allocation2 + $0x160] sm:$0xff]  ;;  %v36_v21 = vld [vmem:[#allocation2 + $0x48] sm:$0xff] }
  0x1a   :  { %1859 = vmatmul.mubr.msk.f32.vlgmr.msra.gmra.mrb[0].mxu0 %vm99_vm1, %v28_v5  ;;  %1913 = vmatmul.mubr.msk.f32.vlgmr.msra.gmra.mrb[0].mxu1 %vm99_vm1, %v64_v6  ;;  %v72_v22 = vld [vmem:[#allocation2 + $0x168] sm:$0xff]  ;;  %v37_v23 = vld [vmem:[#allocation2 + $0x50] sm:$0xff]  ;;  %v38_v25 = vld [vmem:[#allocation2 + $0x58] sm:$0xff] }
  0x1b   :  { %1861 = vmatprep.mubr.msk.f32.mxu0 %vm99_vm1, %v29_v7  ;;  %1915 = vmatprep.mubr.msk.f32.mxu1 %vm99_vm1, %v65_v8  ;;  %v73_v24 = vld [vmem:[#allocation2 + $0x170] sm:$0xff]  ;;  %v74_v26 = vld [vmem:[#allocation2 + $0x178] sm:$0xff]  ;;  %v39_v27 = vld [vmem:[#allocation2 + $0x60] sm:$0xff] }
  0x1c   :  { %v75_v28 = vld [vmem:[#allocation2 + $0x180] sm:$0xff]  ;;  %v40_v29 = vld [vmem:[#allocation2 + $0x68] sm:$0xff]  ;;  %v41_v31 = vld [vmem:[#allocation2 + $0x70] sm:$0xff] }
  0x1d   :  { %v76_v30 = vld [vmem:[#allocation2 + $0x188] sm:$0xff]  ;;  %v77_v32 = vld [vmem:[#allocation2 + $0x190] sm:$0xff]  ;;  %v42_v33 = vld [vmem:[#allocation2 + $0x78] sm:$0xff] }
  0x1e   :  { %1862 = vmatmul.mubr.msk.f32.gmra.mrb[2].mxu0 %vm99_vm1, %v30_v9  ;;  %1916 = vmatmul.mubr.msk.f32.gmra.mrb[2].mxu1 %vm99_vm1, %v66_v10  ;;  %v78_v34 = vld [vmem:[#allocation2 + $0x198] sm:$0xff]  ;;  %v43_v35 = vld [vmem:[#allocation2 + $0x80] sm:$0xff]  ;;  %v44_v37 = vld [vmem:[#allocation2 + $0x88] sm:$0xff] }
  0x1f   :  { %1864 = vmatprep.mubr.msk.f32.mxu0 %vm99_vm1, %v31_v11  ;;  %1918 = vmatprep.mubr.msk.f32.mxu1 %vm99_vm1, %v67_v12  ;;  %v79_v36 = vld [vmem:[#allocation2 + $0x1a0] sm:$0xff]  ;;  %v80_v38 = vld [vmem:[#allocation2 + $0x1a8] sm:$0xff]  ;;  %v45_v39 = vld [vmem:[#allocation2 + $0x90] sm:$0xff] }
  0x20   :  { %v81_v40 = vld [vmem:[#allocation2 + $0x1b0] sm:$0xff]  ;;  %v46_v41 = vld [vmem:[#allocation2 + $0x98] sm:$0xff]  ;;  %v47_v43 = vld [vmem:[#allocation2 + $0xa0] sm:$0xff] }
  0x21   :  { %v82_v42 = vld [vmem:[#allocation2 + $0x1b8] sm:$0xff]  ;;  %v83_v44 = vld [vmem:[#allocation2 + $0x1c0] sm:$0xff]  ;;  %v48_v45 = vld [vmem:[#allocation2 + $0xa8] sm:$0xff] }
  0x22   :  { %1865 = vmatmul.mubr.msk.f32.gmra.mrb[4].mxu0 %vm99_vm1, %v32_v13  ;;  %1919 = vmatmul.mubr.msk.f32.gmra.mrb[4].mxu1 %vm99_vm1, %v68_v14  ;;  %v84_v46 = vld [vmem:[#allocation2 + $0x1c8] sm:$0xff]  ;;  %v49_v47 = vld [vmem:[#allocation2 + $0xb0] sm:$0xff]  ;;  %v50_v49 = vld [vmem:[#allocation2 + $0xb8] sm:$0xff] }
  0x23   :  { %1867 = vmatprep.mubr.msk.f32.mxu0 %vm99_vm1, %v33_v15  ;;  %1921 = vmatprep.mubr.msk.f32.mxu1 %vm99_vm1, %v69_v16  ;;  %v85_v48 = vld [vmem:[#allocation2 + $0x1d0] sm:$0xff]  ;;  %v86_v50 = vld [vmem:[#allocation2 + $0x1d8] sm:$0xff]  ;;  %v51_v51 = vld [vmem:[#allocation2 + $0xc0] sm:$0xff] }
  0x24   :  { %v87_v52 = vld [vmem:[#allocation2 + $0x1e0] sm:$0xff]  ;;  %v52_v53 = vld [vmem:[#allocation2 + $0xc8] sm:$0xff]  ;;  %v53_v55 = vld [vmem:[#allocation2 + $0xd0] sm:$0xff] }
  0x25   :  { %v88_v54 = vld [vmem:[#allocation2 + $0x1e8] sm:$0xff]  ;;  %v89_v56 = vld [vmem:[#allocation2 + $0x1f0] sm:$0xff]  ;;  %v54_v57 = vld [vmem:[#allocation2 + $0xd8] sm:$0xff] }
  0x26   :  { %1868 = vmatmul.mubr.msk.f32.gmra.mrb[6].mxu0 %vm99_vm1, %v34_v17  ;;  %1922 = vmatmul.mubr.msk.f32.gmra.mrb[6].mxu1 %vm99_vm1, %v70_v18  ;;  %v90_v58 = vld [vmem:[#allocation2 + $0x1f8] sm:$0xff]  ;;  %v55_v59 = vld [vmem:[#allocation2 + $0xe0] sm:$0xff]  ;;  %v56_v61 = vld [vmem:[#allocation2 + $0xe8] sm:$0xff] }
  0x27   :  { %1870 = vmatprep.mubr.msk.f32.mxu0 %vm99_vm1, %v35_v19  ;;  %1924 = vmatprep.mubr.msk.f32.mxu1 %vm99_vm1, %v71_v20  ;;  %v91_v60 = vld [vmem:[#allocation2 + $0x200] sm:$0xff]  ;;  %v92_v62 = vld [vmem:[#allocation2 + $0x208] sm:$0xff]  ;;  %v57_v63 = vld [vmem:[#allocation2 + $0xf0] sm:$0xff] }
  0x28   :  { %v93_v0 = vld [vmem:[#allocation2 + $0x210] sm:$0xff]  ;;  %v58_v1 = vld [vmem:[#allocation2 + $0xf8] sm:$0xff]  ;;  %v59_v3 = vld [vmem:[#allocation2 + $0x100] sm:$0xff] }
  0x29   :  { %v94_v2 = vld [vmem:[#allocation2 + $0x218] sm:$0xff]  ;;  %v95_v4 = vld [vmem:[#allocation2 + $0x220] sm:$0xff]  ;;  %v60_v5 = vld [vmem:[#allocation2 + $0x108] sm:$0xff] }
  0x2a   :  { %1871 = vmatmul.mubr.msk.f32.gmra.mrb[8].mxu0 %vm99_vm1, %v36_v21  ;;  %1925 = vmatmul.mubr.msk.f32.gmra.mrb[8].mxu1 %vm99_vm1, %v72_v22  ;;  %v96_v6 = vld [vmem:[#allocation2 + $0x228] sm:$0xff]  ;;  %v61_v7 = vld [vmem:[#allocation2 + $0x110] sm:$0xff]  ;;  %v62_v9 = vld [vmem:[#allocation2 + $0x118] sm:$0xff] }
  0x2b   :  { %1873 = vmatprep.mubr.msk.f32.mxu0 %vm99_vm1, %v37_v23  ;;  %1927 = vmatprep.mubr.msk.f32.mxu1 %vm99_vm1, %v73_v24  ;;  %v97_v8 = vld [vmem:[#allocation2 + $0x230] sm:$0xff]  ;;  %v98_v10 = vld [vmem:[#allocation2 + $0x238] sm:$0xff] }
  0x2e   :  { %1874 = vmatmul.mubr.msk.f32.gmra.mrb[10].mxu0 %vm99_vm1, %v38_v25  ;;  %1928 = vmatmul.mubr.msk.f32.gmra.mrb[10].mxu1 %vm99_vm1, %v74_v26 }
  0x2f   :  { %1876 = vmatprep.mubr.msk.f32.mxu0 %vm99_vm1, %v39_v27  ;;  %1930 = vmatprep.mubr.msk.f32.mxu1 %vm99_vm1, %v75_v28 }
  0x32   :  { %1877 = vmatmul.mubr.msk.f32.gmra.mrb[12].mxu0 %vm99_vm1, %v40_v29  ;;  %1931 = vmatmul.mubr.msk.f32.gmra.mrb[12].mxu1 %vm99_vm1, %v76_v30 }
  0x33   :  { %1879 = vmatprep.mubr.msk.f32.mxu0 %vm99_vm1, %v41_v31  ;;  %1933 = vmatprep.mubr.msk.f32.mxu1 %vm99_vm1, %v77_v32 }
  0x36   :  { %1880 = vmatmul.mubr.msk.f32.gmra.mrb[14].mxu0 %vm99_vm1, %v42_v33  ;;  %1934 = vmatmul.mubr.msk.f32.gmra.mrb[14].mxu1 %vm99_vm1, %v78_v34 }
  0x37   :  { %1882 = vmatprep.mubr.msk.f32.mxu0 %vm99_vm1, %v43_v35  ;;  %1936 = vmatprep.mubr.msk.f32.mxu1 %vm99_vm1, %v79_v36 }
  0x3a   :  { %1883 = vmatmul.mubr.msk.f32.gmra.mrb[16].mxu0 %vm99_vm1, %v44_v37  ;;  %1937 = vmatmul.mubr.msk.f32.gmra.mrb[16].mxu1 %vm99_vm1, %v80_v38 }
  0x3b   :  { %1885 = vmatprep.mubr.msk.f32.mxu0 %vm99_vm1, %v45_v39  ;;  %1939 = vmatprep.mubr.msk.f32.mxu1 %vm99_vm1, %v81_v40 }
  0x3e   :  { %1886 = vmatmul.mubr.msk.f32.gmra.mrb[18].mxu0 %vm99_vm1, %v46_v41  ;;  %1940 = vmatmul.mubr.msk.f32.gmra.mrb[18].mxu1 %vm99_vm1, %v82_v42 }
  0x3f   :  { %1888 = vmatprep.mubr.msk.f32.mxu0 %vm99_vm1, %v47_v43  ;;  %1942 = vmatprep.mubr.msk.f32.mxu1 %vm99_vm1, %v83_v44 }
  0x42   :  { %1889 = vmatmul.mubr.msk.f32.gmra.mrb[20].mxu0 %vm99_vm1, %v48_v45  ;;  %1943 = vmatmul.mubr.msk.f32.gmra.mrb[20].mxu1 %vm99_vm1, %v84_v46 }
  0x43   :  { %1891 = vmatprep.mubr.msk.f32.mxu0 %vm99_vm1, %v49_v47  ;;  %1945 = vmatprep.mubr.msk.f32.mxu1 %vm99_vm1, %v85_v48 }
  0x46   :  { %1892 = vmatmul.mubr.msk.f32.gmra.mrb[22].mxu0 %vm99_vm1, %v50_v49  ;;  %1946 = vmatmul.mubr.msk.f32.gmra.mrb[22].mxu1 %vm99_vm1, %v86_v50 }
  0x47   :  { %1894 = vmatprep.mubr.msk.f32.mxu0 %vm99_vm1, %v51_v51  ;;  %1948 = vmatprep.mubr.msk.f32.mxu1 %vm99_vm1, %v87_v52 }
  0x4a   :  { %1895 = vmatmul.mubr.msk.f32.gmra.mrb[24].mxu0 %vm99_vm1, %v52_v53  ;;  %1949 = vmatmul.mubr.msk.f32.gmra.mrb[24].mxu1 %vm99_vm1, %v88_v54 }
  0x4b   :  { %1897 = vmatprep.mubr.msk.f32.mxu0 %vm99_vm1, %v53_v55  ;;  %1951 = vmatprep.mubr.msk.f32.mxu1 %vm99_vm1, %v89_v56 }
  0x4e   :  { %1898 = vmatmul.mubr.msk.f32.gmra.mrb[26].mxu0 %vm99_vm1, %v54_v57  ;;  %1952 = vmatmul.mubr.msk.f32.gmra.mrb[26].mxu1 %vm99_vm1, %v90_v58 }
  0x4f   :  { %1900 = vmatprep.mubr.msk.f32.mxu0 %vm99_vm1, %v55_v59  ;;  %1954 = vmatprep.mubr.msk.f32.mxu1 %vm99_vm1, %v91_v60 }
  0x52   :  { %1901 = vmatmul.mubr.msk.f32.gmra.mrb[28].mxu0 %vm99_vm1, %v56_v61  ;;  %1955 = vmatmul.mubr.msk.f32.gmra.mrb[28].mxu1 %vm99_vm1, %v92_v62 }
  0x53   :  { %1903 = vmatprep.mubr.msk.f32.mxu0 %vm99_vm1, %v57_v63  ;;  %1957 = vmatprep.mubr.msk.f32.mxu1 %vm99_vm1, %v93_v0 }
  0x56   :  { %1904 = vmatmul.mubr.msk.f32.gmra.mrb[30].mxu0 %vm99_vm1, %v58_v1  ;;  %1958 = vmatmul.mubr.msk.f32.gmra.mrb[30].mxu1 %vm99_vm1, %v94_v2 }
  0x57   :  { %1906 = vmatprep.mubr.msk.f32.mxu0 %vm99_vm1, %v59_v3  ;;  %1960 = vmatprep.mubr.msk.f32.mxu1 %vm99_vm1, %v95_v4 }
  0x5a   :  { %1907 = vmatmul.mubr.msk.f32.gmra.mrb[32].mxu0 %vm99_vm1, %v60_v5  ;;  %1961 = vmatmul.mubr.msk.f32.gmra.mrb[32].mxu1 %vm99_vm1, %v96_v6 }
  0x5b   :  { %1909 = vmatprep.mubr.msk.f32.mxu0 %vm99_vm1, %v61_v7  ;;  %1963 = vmatprep.mubr.msk.f32.mxu1 %vm99_vm1, %v97_v8 }
  0x5e   :  { %1910 = vmatmul.mubr.msk.f32.gmra.mrb[34].mxu0 %vm99_vm1, %v62_v9  ;;  %1964 = vmatmul.mubr.msk.f32.gmra.mrb[34].mxu1 %vm99_vm1, %v98_v10 }
  0xed   :  { %v2260_v11 = vpop.f32.mrb[0].mxu0  ;;  %v1914_v12 = vpop.f32.mrb[0].mxu1 }
  0xee   :  { %4137 = vst [vmem:[#allocation5_spill] sm:$0xff] %v2260_v11  ;;  %v897_v13 = vmul.f32 %v1914_v12, %v2260_v11  ;;  %v2263_v14 = vpop.f32.mrb[1].mxu0  ;;  %v566_v15 = vpop.f32.mrb[1].mxu1 }
  0xef   :  { %4138 = vst [vmem:[#allocation6_spill] sm:$0xff] %v2263_v14  ;;  %v780_v16 = vmul.f32 %v1914_v12, %v2263_v14  ;;  %v773_v17 = vmul.f32 %v566_v15, %v2263_v14  ;;  %v890_v18 = vmul.f32 %v2260_v11, %v566_v15 }
  0xf1   :  { %v2268_v19 = vpop.f32.mrb[2].mxu0  ;;  %v1917_v20 = vpop.f32.mrb[2].mxu1 }
  0xf2   :  { %4139 = vst [vmem:[#allocation7_spill] sm:$0xff] %v2268_v19  ;;  %v2271_v21 = vmul.f32 %v2268_v19, %v566_v15  ;;  %v2274_v22 = vmul.f32 %v1914_v12, %v2268_v19  ;;  %v2277_v23 = vmul.f32 %v1917_v20, %v2263_v14  ;;  %v2280_v24 = vmul.f32 %v1917_v20, %v2260_v11  ;;  %v2282_v25 = vpop.f32.mrb[3].mxu0  ;;  %v576_v26 = vpop.f32.mrb[3].mxu1 }
  0xf3   :  { %4140 = vst [vmem:[#allocation8_spill] sm:$0xff] %v2282_v25  ;;  %v2285_v27 = vmul.f32 %v1917_v20, %v2268_v19  ;;  %v2288_v28 = vmul.f32 %v566_v15, %v2282_v25  ;;  %v2291_v29 = vmul.f32 %v1914_v12, %v2282_v25  ;;  %v2294_v30 = vmul.f32 %v1917_v20, %v2282_v25 }
  0xf4   :  { %v2297_v31 = vmul.f32 %v576_v26, %v2263_v14  ;;  %v2300_v32 = vmul.f32 %v2260_v11, %v576_v26  ;;  %v2303_v33 = vmul.f32 %v576_v26, %v2282_v25  ;;  %v2306_v34 = vmul.f32 %v2268_v19, %v576_v26 }
  0xf5   :  { %v2308_v35 = vpop.f32.mrb[4].mxu0  ;;  %v2310_v36 = vpop.f32.mrb[4].mxu1 }
  0xf6   :  { %4141 = vst [vmem:[#allocation9_spill] sm:$0xff] %v2308_v35  ;;  %v2313_v37 = vmul.f32 %v2308_v35, %v566_v15  ;;  %v2316_v38 = vmul.f32 %v1914_v12, %v2308_v35  ;;  %v2319_v39 = vmul.f32 %v2308_v35, %v576_v26  ;;  %v2322_v40 = vmul.f32 %v1917_v20, %v2308_v35  ;;  %v2324_v41 = vpop.f32.mrb[5].mxu0  ;;  %v2326_v42 = vpop.f32.mrb[5].mxu1 }
  0xf7   :  { %4142 = vst [vmem:[#allocation10_spill] sm:$0xff] %v2324_v41  ;;  %v2329_v43 = vmul.f32 %v566_v15, %v2324_v41  ;;  %v2332_v44 = vmul.f32 %v1914_v12, %v2324_v41  ;;  %v2335_v45 = vmul.f32 %v576_v26, %v2324_v41  ;;  %v2338_v46 = vmul.f32 %v1917_v20, %v2324_v41 }
  0xf9   :  { %v2340_v47 = vpop.f32.mrb[6].mxu0  ;;  %v2342_v48 = vpop.f32.mrb[6].mxu1 }
  0xfa   :  { %4143 = vst [vmem:[#allocation11_spill] sm:$0xff] %v2340_v47  ;;  %v2345_v49 = vmul.f32 %v2340_v47, %v566_v15  ;;  %v2348_v50 = vmul.f32 %v1914_v12, %v2340_v47  ;;  %v2351_v51 = vmul.f32 %v2340_v47, %v576_v26  ;;  %v2354_v52 = vmul.f32 %v1917_v20, %v2340_v47  ;;  %v2356_v53 = vpop.f32.mrb[7].mxu0  ;;  %v2358_v54 = vpop.f32.mrb[7].mxu1 }
  0xfb   :  { %4144 = vst [vmem:[#allocation12_spill] sm:$0xff] %v2356_v53  ;;  %4145 = vst [vmem:[#allocation13_spill] sm:$0xff] %v2358_v54  ;;  %v2361_v55 = vmul.f32 %v566_v15, %v2356_v53  ;;  %v2364_v56 = vmul.f32 %v1914_v12, %v2356_v53  ;;  %v2367_v57 = vmul.f32 %v576_v26, %v2356_v53 }
  0xfc   :  { %v2370_v58 = vmul.f32 %v1917_v20, %v2356_v53 }
  0xfd   :  { %v1872_v59 = vpop.f32.mrb[8].mxu0  ;;  %v2372_v60 = vpop.f32.mrb[8].mxu1 }
  0xfe   :  { %v2375_v61 = vmul.f32 %v1872_v59, %v2326_v42  ;;  %v2378_v62 = vmul.f32 %v2310_v36, %v1872_v59  ;;  %v2381_v63 = vmul.f32 %v2342_v48, %v1872_v59  ;;  %v898_v0 = vmul.f32 %v2372_v60, %v1872_v59  ;;  %v426_v1 = vpop.f32.mrb[9].mxu0  ;;  %v2384_v2 = vpop.f32.mrb[9].mxu1 }
  0xff   :  { %v2387_v3 = vmul.f32 %v2326_v42, %v426_v1  ;;  %v2390_v4 = vmul.f32 %v2310_v36, %v426_v1  ;;  %v2393_v5 = vmul.f32 %v2342_v48, %v426_v1  ;;  %v781_v6 = vmul.f32 %v2372_v60, %v426_v1 }
 0x100   :  { %4146 = vst [vmem:[#allocation14_spill] sm:$0xff] %v2375_v61  ;;  %4147 = vst [vmem:[#allocation15_spill] sm:$0xff] %v2378_v62  ;;  %v2396_v7 = vadd.f32 %v898_v0, %v897_v13  ;;  %v774_v8 = vmul.f32 %v2384_v2, %v426_v1  ;;  %v891_v9 = vmul.f32 %v1872_v59, %v2384_v2 }
 0x101   :  { %4148 = vst [vmem:[#allocation16_spill] sm:$0xff] %v2381_v63  ;;  %4149 = vst [vmem:[#allocation17_spill] sm:$0xff] %v2387_v3  ;;  %v2401_v10 = vmul.f32 %v2358_v54, %v426_v1  ;;  %v2403_v12 = vadd.f32 %v781_v6, %v780_v16  ;;  %v2405_v15 = vpop.f32.mrb[10].mxu0  ;;  %v2407_v20 = vpop.f32.mrb[10].mxu1  ;;  %v2410_v26 = vmul.f32 %v1872_v59, %v2358_v54 }
 0x102   :  { %4150 = vst [vmem:[#allocation18_spill] sm:$0xff] %v2390_v4  ;;  %4151 = vst [vmem:[#allocation19_spill] sm:$0xff] %v2393_v5  ;;  %v2412_v63 = vadd.f32 %v774_v8, %v773_v17  ;;  %v2414_v13 = vadd.f32 %v891_v9, %v890_v18  ;;  %v2418_v0 = vmul.f32 %v2405_v15, %v2326_v42  ;;  %v2424_v16 = vpop.f32.mrb[11].mxu0  ;;  %v2426_v6 = vpop.f32.mrb[11].mxu1 }
 0x103   :  { %4152 = vst [vmem:[#allocation20_spill] sm:$0xff] %v2401_v10  ;;  %4153 = vst [vmem:[#allocation21_spill] sm:$0xff] %v2405_v15  ;;  %v2422_v10 = vmul.f32 %v2310_v36, %v2405_v15  ;;  %v2430_v54 = vmul.f32 %v2342_v48, %v2405_v15  ;;  %v1125_v17 = vmul.f32 %v2405_v15, %v2384_v2 }
 0x104   :  { %4154 = vst [vmem:[#allocation22_spill] sm:$0xff] %v2410_v26  ;;  %4155 = vst [vmem:[#allocation23_spill] sm:$0xff] %v2418_v0  ;;  %v1132_v18 = vmul.f32 %v2372_v60, %v2405_v15  ;;  %v795_v8 = vmul.f32 %v2407_v20, %v426_v1  ;;  %v912_v9 = vmul.f32 %v2407_v20, %v1872_v59 }
 0x105   :  { %4156 = vst [vmem:[#allocation24_spill] sm:$0xff] %v2422_v10  ;;  %4157 = vst [vmem:[#allocation25_spill] sm:$0xff] %v2424_v16  ;;  %v1146_v26 = vmul.f32 %v2407_v20, %v2405_v15  ;;  %v2442_v5 = vmul.f32 %v2326_v42, %v2424_v16  ;;  %v2449_v0 = vadd.f32 %v1125_v17, %v2271_v21  ;;  %v2461_v53 = vpop.f32.mrb[12].mxu0 }
 0x106   :  { %4158 = vst [vmem:[#allocation26_spill] sm:$0xff] %v2430_v54  ;;  %v2446_v54 = vmul.f32 %v2310_v36, %v2424_v16  ;;  %v2452_v61 = vadd.f32 %v1132_v18, %v2274_v22  ;;  %v2455_v3 = vadd.f32 %v795_v8, %v2277_v23  ;;  %v2459_v47 = vmul.f32 %v2342_v48, %v2424_v16  ;;  %v2475_v17 = vpop.f32.mrb[13].mxu0 }
 0x107   :  { %4159 = vst [vmem:[#allocation27_spill] sm:$0xff] %v2442_v5  ;;  %4162 = vst [vmem:[#allocation30_spill] sm:$0xff] %v2461_v53  ;;  %v2463_v5 = vpop.f32.mrb[12].mxu1  ;;  %v2466_v35 = vadd.f32 %v912_v9, %v2280_v24  ;;  %v2469_v21 = vadd.f32 %v1146_v26, %v2285_v27  ;;  %v1008_v22 = vmul.f32 %v2384_v2, %v2424_v16 }
 0x108   :  { %4160 = vst [vmem:[#allocation28_spill] sm:$0xff] %v2446_v54  ;;  %4161 = vst [vmem:[#allocation29_spill] sm:$0xff] %v2459_v47  ;;  %v1015_v23 = vmul.f32 %v2372_v60, %v2424_v16  ;;  %v2477_v18 = vpop.f32.mrb[13].mxu1  ;;  %v1029_v8 = vmul.f32 %v2407_v20, %v2424_v16  ;;  %v788_v47 = vmul.f32 %v2426_v6, %v426_v1 }
 0x109   :  { %4163 = vst [vmem:[#allocation31_spill] sm:$0xff] %v2475_v17  ;;  %v905_v24 = vmul.f32 %v1872_v59, %v2426_v6  ;;  %v1022_v27 = vmul.f32 %v2426_v6, %v2424_v16  ;;  %v2486_v26 = vadd.f32 %v1008_v22, %v2288_v28  ;;  %v1139_v41 = vmul.f32 %v2405_v15, %v2426_v6  ;;  %v2511_v22 = vpop.f32.mrb[14].mxu1 }
 0x10a   :  { %v2489_v9 = vadd.f32 %v1015_v23, %v2291_v29  ;;  %v2495_v10 = vmul.f32 %v2461_v53, %v2326_v42  ;;  %v2498_v1 = vadd.f32 %v1029_v8, %v2294_v30  ;;  %v2501_v59 = vadd.f32 %v788_v47, %v2297_v31  ;;  %v2509_v29 = vpop.f32.mrb[14].mxu0  ;;  %v2528_v47 = vpop.f32.mrb[15].mxu1 }
 0x10b   :  { %v2504_v16 = vadd.f32 %v905_v24, %v2300_v32  ;;  %v2507_v28 = vadd.f32 %v1022_v27, %v2303_v33  ;;  %4165 = vst [vmem:[#allocation33_spill] sm:$0xff] %v2509_v29  ;;  %v2514_v23 = vadd.f32 %v1139_v41, %v2306_v34  ;;  %v2518_v30 = vmul.f32 %v2310_v36, %v2461_v53  ;;  %v2526_v33 = vpop.f32.mrb[15].mxu0 }
 0x10c   :  { %4164 = vst [vmem:[#allocation32_spill] sm:$0xff] %v2495_v10  ;;  %v2522_v31 = vmul.f32 %v2342_v48, %v2461_v53  ;;  %v1359_v32 = vmul.f32 %v2461_v53, %v2384_v2  ;;  %4168 = vst [vmem:[#allocation36_spill] sm:$0xff] %v2526_v33  ;;  %v1366_v8 = vmul.f32 %v2372_v60, %v2461_v53 }
 0x10d   :  { %4166 = vst [vmem:[#allocation34_spill] sm:$0xff] %v2518_v30  ;;  %v1373_v34 = vmul.f32 %v2461_v53, %v2426_v6  ;;  %v1380_v41 = vmul.f32 %v2407_v20, %v2461_v53  ;;  %v2538_v24 = vmul.f32 %v2326_v42, %v2475_v17  ;;  %v2545_v15 = vmul.f32 %v2310_v36, %v2475_v17 }
 0x10e   :  { %4167 = vst [vmem:[#allocation35_spill] sm:$0xff] %v2522_v31  ;;  %v2541_v27 = vadd.f32 %v1359_v32, %v2313_v37  ;;  %v2549_v31 = vmul.f32 %v2342_v48, %v2475_v17  ;;  %v1242_v10 = vmul.f32 %v2384_v2, %v2475_v17  ;;  %v2554_v53 = vadd.f32 %v1366_v8, %v2316_v38 }
 0x10f   :  { %4169 = vst [vmem:[#allocation37_spill] sm:$0xff] %v2538_v24  ;;  %4170 = vst [vmem:[#allocation38_spill] sm:$0xff] %v2545_v15  ;;  %v2557_v30 = vadd.f32 %v1373_v34, %v2319_v39  ;;  %v2560_v37 = vadd.f32 %v1380_v41, %v2322_v40  ;;  %v1249_v32 = vmul.f32 %v2372_v60, %v2475_v17  ;;  %v2564_v24 = vpop.f32.mrb[16].mxu0  ;;  %v2566_v15 = vpop.f32.mrb[16].mxu1 }
 0x110   :  { %4171 = vst [vmem:[#allocation39_spill] sm:$0xff] %v2549_v31  ;;  %v2569_v31 = vadd.f32 %v1242_v10, %v2329_v43  ;;  %v1256_v38 = vmul.f32 %v2426_v6, %v2475_v17  ;;  %v1263_v39 = vmul.f32 %v2407_v20, %v2475_v17  ;;  %v2577_v40 = vmul.f32 %v2509_v29, %v2326_v42  ;;  %v2579_v8 = vpop.f32.mrb[17].mxu0  ;;  %v2581_v34 = vpop.f32.mrb[17].mxu1 }
 0x111   :  { %v2584_v41 = vadd.f32 %v1249_v32, %v2332_v44  ;;  %v2588_v43 = vmul.f32 %v2310_v36, %v2509_v29  ;;  %v2592_v10 = vmul.f32 %v2342_v48, %v2509_v29  ;;  %v1593_v17 = vmul.f32 %v2509_v29, %v2384_v2 }
 0x112   :  { %4172 = vst [vmem:[#allocation40_spill] sm:$0xff] %v2577_v40  ;;  %v2597_v40 = vadd.f32 %v1256_v38, %v2335_v45  ;;  %v2600_v54 = vadd.f32 %v1263_v39, %v2338_v46  ;;  %v1600_v44 = vmul.f32 %v2372_v60, %v2509_v29  ;;  %v1607_v32 = vmul.f32 %v2509_v29, %v2426_v6  ;;  %v2619_v46 = vpop.f32.mrb[18].mxu0  ;;  %v2621_v38 = vpop.f32.mrb[18].mxu1 }
 0x113   :  { %4173 = vst [vmem:[#allocation41_spill] sm:$0xff] %v2588_v43  ;;  %4174 = vst [vmem:[#allocation42_spill] sm:$0xff] %v2592_v10  ;;  %v2607_v43 = vadd.f32 %v1593_v17, %v2345_v49  ;;  %v1614_v10 = vmul.f32 %v2407_v20, %v2509_v29  ;;  %v2613_v62 = vmul.f32 %v2326_v42, %v2526_v33  ;;  %v476_v29 = vpop.f32.mrb[19].mxu0 }
 0x114   :  { %v2617_v45 = vmul.f32 %v2310_v36, %v2526_v33  ;;  %v2624_v39 = vadd.f32 %v1600_v44, %v2348_v50  ;;  %v2627_v49 = vadd.f32 %v1607_v32, %v2351_v51  ;;  %v2631_v17 = vmul.f32 %v2342_v48, %v2526_v33  ;;  %v2635_v36 = vpop.f32.mrb[19].mxu1 }
 0x115   :  { %4175 = vst [vmem:[#allocation43_spill] sm:$0xff] %v2613_v62  ;;  %v1476_v42 = vmul.f32 %v2384_v2, %v2526_v33  ;;  %v2638_v62 = vadd.f32 %v1614_v10, %v2354_v52  ;;  %v1483_v50 = vmul.f32 %v2372_v60, %v2526_v33  ;;  %v1490_v51 = vmul.f32 %v2426_v6, %v2526_v33  ;;  %v2674_v32 = vpop.f32.mrb[20].mxu0 }
 0x116   :  { %4176 = vst [vmem:[#allocation44_spill] sm:$0xff] %v2617_v45  ;;  %4177 = vst [vmem:[#allocation45_spill] sm:$0xff] %v2631_v17  ;;  %v1497_v44 = vmul.f32 %v2407_v20, %v2526_v33  ;;  %v2651_v2 = vmul.f32 %v2564_v24, %v2477_v18  ;;  %v2655_v52 = vmul.f32 %v2463_v5, %v2564_v24 }
 0x117   :  { %v2647_v48 = vadd.f32 %v1476_v42, %v2361_v55  ;;  %v2659_v60 = vmul.f32 %v2564_v24, %v2528_v47  ;;  %v2662_v6 = vadd.f32 %v1483_v50, %v2364_v56  ;;  %v2665_v20 = vadd.f32 %v1490_v51, %v2367_v57  ;;  %v2676_v42 = vpop.f32.mrb[20].mxu1  ;;  %v2692_v50 = vpop.f32.mrb[21].mxu0 }
 0x118   :  { %4178 = vst [vmem:[#allocation46_spill] sm:$0xff] %v2651_v2  ;;  %4179 = vst [vmem:[#allocation47_spill] sm:$0xff] %v2655_v52  ;;  %v2668_v55 = vadd.f32 %v1497_v44, %v2370_v58  ;;  %v2672_v10 = vmul.f32 %v2511_v22, %v2564_v24  ;;  %v900_v33 = vmul.f32 %v2566_v15, %v2564_v24  ;;  %v2694_v51 = vpop.f32.mrb[21].mxu1 }
 0x119   :  { %4180 = vst [vmem:[#allocation48_spill] sm:$0xff] %v2659_v60  ;;  %v2682_v56 = vmul.f32 %v2477_v18, %v2579_v8  ;;  %v2686_v57 = vmul.f32 %v2463_v5, %v2579_v8  ;;  %v2690_v58 = vmul.f32 %v2528_v47, %v2579_v8  ;;  %v2698_v44 = vmul.f32 %v2511_v22, %v2579_v8 }
 0x11a   :  { %4181 = vst [vmem:[#allocation49_spill] sm:$0xff] %v2672_v10  ;;  %v783_v60 = vmul.f32 %v2566_v15, %v2579_v8  ;;  %v776_v17 = vmul.f32 %v2581_v34, %v2579_v8  ;;  %v893_v10 = vmul.f32 %v2564_v24, %v2581_v34  ;;  %v2707_v2 = vadd.f32 %v900_v33, %v2396_v7 }
 0x11b   :  { %4182 = vst [vmem:[#allocation50_spill] sm:$0xff] %v2682_v56  ;;  %4183 = vst [vmem:[#allocation51_spill] sm:$0xff] %v2686_v57  ;;  %v2715_v56 = vmul.f32 %v2463_v5, %v2619_v46  ;;  %v2732_v33 = vmul.f32 %v2511_v22, %v2619_v46  ;;  %v2756_v57 = vmul.f32 %v2463_v5, %v476_v29 }
 0x11c   :  { %4184 = vst [vmem:[#allocation52_spill] sm:$0xff] %v2690_v58  ;;  %4185 = vst [vmem:[#allocation53_spill] sm:$0xff] %v2698_v44  ;;  %v2711_v58 = vmul.f32 %v2619_v46, %v2477_v18  ;;  %v2719_v44 = vmul.f32 %v2619_v46, %v2528_v47  ;;  %v2722_v45 = vadd.f32 %v783_v60, %v2403_v12 }
 0x11d   :  { %4187 = vst [vmem:[#allocation55_spill] sm:$0xff] %v2715_v56  ;;  %v2725_v52 = vadd.f32 %v776_v17, %v2412_v63  ;;  %v2728_v7 = vadd.f32 %v893_v10, %v2414_v13  ;;  %4189 = vst [vmem:[#allocation57_spill] sm:$0xff] %v2732_v33  ;;  %v2736_v56 = vpop.f32.mrb[22].mxu1  ;;  %v1134_v12 = vmul.f32 %v2566_v15, %v2619_v46 }
 0x11e   :  { %4186 = vst [vmem:[#allocation54_spill] sm:$0xff] %v2711_v58  ;;  %4188 = vst [vmem:[#allocation56_spill] sm:$0xff] %v2719_v44  ;;  %v2734_v58 = vpop.f32.mrb[22].mxu0  ;;  %v1127_v44 = vmul.f32 %v2619_v46, %v2581_v34  ;;  %v797_v63 = vmul.f32 %v2621_v38, %v2579_v8  ;;  %v914_v13 = vmul.f32 %v2621_v38, %v2564_v24  ;;  %v2748_v60 = vpop.f32.mrb[23].mxu1 }
 0x11f   :  { %v2746_v17 = vpop.f32.mrb[23].mxu0  ;;  %v1148_v10 = vmul.f32 %v2621_v38, %v2619_v46  ;;  %v2753_v33 = vmul.f32 %v2477_v18, %v476_v29  ;;  %4191 = vst [vmem:[#allocation59_spill] sm:$0xff] %v2756_v57  ;;  %v2759_v4 = vmul.f32 %v2528_v47, %v476_v29  ;;  %v2765_v25 = vadd.f32 %v1134_v12, %v2452_v61  ;;  %v2783_v61 = vpop.f32.mrb[24].mxu1 }
 0x120   :  { %v2762_v19 = vadd.f32 %v1127_v44, %v2449_v0  ;;  %v2768_v11 = vadd.f32 %v797_v63, %v2455_v3  ;;  %v2771_v14 = vadd.f32 %v914_v13, %v2466_v35  ;;  %v2777_v57 = vmul.f32 %v2511_v22, %v476_v29  ;;  %v2781_v44 = vpop.f32.mrb[24].mxu0  ;;  %v2793_v13 = vpop.f32.mrb[25].mxu1 }
 0x121   :  { %4190 = vst [vmem:[#allocation58_spill] sm:$0xff] %v2753_v33  ;;  %4192 = vst [vmem:[#allocation60_spill] sm:$0xff] %v2759_v4  ;;  %v2774_v33 = vadd.f32 %v1148_v10, %v2469_v21  ;;  %v1010_v4 = vmul.f32 %v2581_v34, %v476_v29  ;;  %v1017_v0 = vmul.f32 %v2566_v15, %v476_v29  ;;  %v2791_v63 = vpop.f32.mrb[25].mxu0 }
 0x122   :  { %4193 = vst [vmem:[#allocation61_spill] sm:$0xff] %v2771_v14  ;;  %4195 = vst [vmem:[#allocation63_spill] sm:$0xff] %v2777_v57  ;;  %v1031_v3 = vmul.f32 %v2621_v38, %v476_v29  ;;  %v790_v35 = vmul.f32 %v2635_v36, %v2579_v8  ;;  %v907_v21 = vmul.f32 %v2564_v24, %v2635_v36 }
 0x123   :  { %4194 = vst [vmem:[#allocation62_spill] sm:$0xff] %v2774_v33  ;;  %v1024_v12 = vmul.f32 %v2635_v36, %v476_v29  ;;  %v2796_v10 = vadd.f32 %v1010_v4, %v2486_v26  ;;  %v2799_v57 = vadd.f32 %v1017_v0, %v2489_v9  ;;  %v1141_v33 = vmul.f32 %v2619_v46, %v2635_v36  ;;  %v2836_v46 = vpop.f32.mrb[26].mxu1 }
 0x124   :  { %v2805_v8 = vmul.f32 %v2674_v32, %v2477_v18  ;;  %v2808_v24 = vadd.f32 %v1031_v3, %v2498_v1  ;;  %v2811_v29 = vadd.f32 %v790_v35, %v2501_v59  ;;  %v2814_v14 = vadd.f32 %v907_v21, %v2504_v16  ;;  %v2834_v16 = vpop.f32.mrb[26].mxu0  ;;  %v2848_v35 = vpop.f32.mrb[27].mxu1 }
 0x125   :  { %v2817_v4 = vadd.f32 %v1024_v12, %v2507_v28  ;;  %v2820_v26 = vadd.f32 %v1141_v33, %v2514_v23  ;;  %v2824_v9 = vmul.f32 %v2463_v5, %v2674_v32  ;;  %v2828_v1 = vmul.f32 %v2674_v32, %v2528_v47  ;;  %v2846_v3 = vpop.f32.mrb[27].mxu0 }
 0x126   :  { %4196 = vst [vmem:[#allocation64_spill] sm:$0xff] %v2805_v8  ;;  %v2832_v59 = vmul.f32 %v2511_v22, %v2674_v32  ;;  %v1361_v28 = vmul.f32 %v2674_v32, %v2581_v34  ;;  %v1368_v23 = vmul.f32 %v2566_v15, %v2674_v32  ;;  %v1375_v33 = vmul.f32 %v2674_v32, %v2635_v36 }
 0x127   :  { %4197 = vst [vmem:[#allocation65_spill] sm:$0xff] %v2824_v9  ;;  %4198 = vst [vmem:[#allocation66_spill] sm:$0xff] %v2828_v1  ;;  %v1382_v0 = vmul.f32 %v2621_v38, %v2674_v32  ;;  %v2852_v21 = vmul.f32 %v2477_v18, %v2692_v50  ;;  %v2856_v12 = vmul.f32 %v2463_v5, %v2692_v50 }
 0x128   :  { %4199 = vst [vmem:[#allocation67_spill] sm:$0xff] %v2832_v59  ;;  %v2860_v1 = vmul.f32 %v2528_v47, %v2692_v50  ;;  %v2864_v59 = vmul.f32 %v2511_v22, %v2692_v50  ;;  %v2867_v32 = vadd.f32 %v1361_v28, %v2541_v27  ;;  %v2870_v8 = vadd.f32 %v1368_v23, %v2554_v53  ;;  %v2886_v53 = vpop.f32.mrb[28].mxu0  ;;  %v2888_v28 = vpop.f32.mrb[28].mxu1 }
 0x129   :  { %4200 = vst [vmem:[#allocation68_spill] sm:$0xff] %v2852_v21  ;;  %4201 = vst [vmem:[#allocation69_spill] sm:$0xff] %v2856_v12  ;;  %v2873_v21 = vadd.f32 %v1375_v33, %v2557_v30  ;;  %v2876_v9 = vadd.f32 %v1382_v0, %v2560_v37  ;;  %v1244_v12 = vmul.f32 %v2581_v34, %v2692_v50  ;;  %v2908_v0 = vpop.f32.mrb[29].mxu1 }
 0x12a   :  { %4202 = vst [vmem:[#allocation70_spill] sm:$0xff] %v2860_v1  ;;  %4203 = vst [vmem:[#allocation71_spill] sm:$0xff] %v2864_v59  ;;  %v1251_v1 = vmul.f32 %v2566_v15, %v2692_v50  ;;  %v1258_v59 = vmul.f32 %v2635_v36, %v2692_v50  ;;  %v1265_v27 = vmul.f32 %v2621_v38, %v2692_v50  ;;  %v2906_v50 = vpop.f32.mrb[29].mxu0 }
 0x12b   :  { %4204 = vst [vmem:[#allocation72_spill] sm:$0xff] %v2876_v9  ;;  %4205 = vst [vmem:[#allocation73_spill] sm:$0xff] %v2888_v28  ;;  %v2892_v30 = vmul.f32 %v2734_v58, %v2477_v18  ;;  %v2896_v37 = vmul.f32 %v2463_v5, %v2734_v58  ;;  %v2900_v23 = vmul.f32 %v2734_v58, %v2528_v47 }
 0x12c   :  { %v2904_v33 = vmul.f32 %v2511_v22, %v2734_v58  ;;  %4210 = vst [vmem:[#allocation78_spill] sm:$0xff] %v2908_v0  ;;  %v2911_v28 = vadd.f32 %v1244_v12, %v2569_v31  ;;  %v2920_v9 = vadd.f32 %v1265_v27, %v2600_v54  ;;  %v1609_v0 = vmul.f32 %v2734_v58, %v2635_v36  ;;  %v2948_v12 = vpop.f32.mrb[30].mxu1 }
 0x12d   :  { %4206 = vst [vmem:[#allocation74_spill] sm:$0xff] %v2892_v30  ;;  %4207 = vst [vmem:[#allocation75_spill] sm:$0xff] %v2896_v37  ;;  %v2914_v30 = vadd.f32 %v1251_v1, %v2584_v41  ;;  %v2917_v37 = vadd.f32 %v1258_v59, %v2597_v40  ;;  %v1616_v31 = vmul.f32 %v2621_v38, %v2734_v58  ;;  %v2946_v59 = vpop.f32.mrb[30].mxu0 }
 0x12e   :  { %4208 = vst [vmem:[#allocation76_spill] sm:$0xff] %v2900_v23  ;;  %4209 = vst [vmem:[#allocation77_spill] sm:$0xff] %v2904_v33  ;;  %v1595_v23 = vmul.f32 %v2734_v58, %v2581_v34  ;;  %v1602_v33 = vmul.f32 %v2566_v15, %v2734_v58  ;;  %v2932_v41 = vmul.f32 %v2477_v18, %v2746_v17  ;;  %v2962_v27 = vpop.f32.mrb[31].mxu0 }
 0x12f   :  { %v2936_v54 = vmul.f32 %v2463_v5, %v2746_v17  ;;  %v2940_v40 = vmul.f32 %v2528_v47, %v2746_v17  ;;  %v2944_v1 = vmul.f32 %v2511_v22, %v2746_v17  ;;  %4214 = vst [vmem:[#allocation82_spill] sm:$0xff] %v2948_v12  ;;  %v2957_v5 = vadd.f32 %v1609_v0, %v2627_v49  ;;  %v2964_v22 = vpop.f32.mrb[31].mxu1  ;;  %v3002_v0 = vpop.f32.mrb[32].mxu0 }
 0x130   :  { %4211 = vst [vmem:[#allocation79_spill] sm:$0xff] %v2932_v41  ;;  %v2951_v58 = vadd.f32 %v1595_v23, %v2607_v43  ;;  %v2954_v18 = vadd.f32 %v1602_v33, %v2624_v39  ;;  %v2960_v47 = vadd.f32 %v1616_v31, %v2638_v62  ;;  %4215 = vst [vmem:[#allocation83_spill] sm:$0xff] %v2964_v22  ;;  %v3004_v31 = vpop.f32.mrb[32].mxu1 }
 0x131   :  { %4212 = vst [vmem:[#allocation80_spill] sm:$0xff] %v2940_v40  ;;  %4213 = vst [vmem:[#allocation81_spill] sm:$0xff] %v2944_v1  ;;  %v1478_v40 = vmul.f32 %v2581_v34, %v2746_v17  ;;  %v1485_v43 = vmul.f32 %v2566_v15, %v2746_v17  ;;  %v1492_v39 = vmul.f32 %v2635_v36, %v2746_v17 }
 0x132   :  { %v1499_v49 = vmul.f32 %v2621_v38, %v2746_v17  ;;  %v2976_v62 = vmul.f32 %v2781_v44, %v2694_v51  ;;  %v2980_v23 = vmul.f32 %v2676_v42, %v2781_v44  ;;  %v2984_v34 = vmul.f32 %v2781_v44, %v2748_v60  ;;  %4218 = vst [vmem:[#allocation86_spill] sm:$0xff] %v3004_v31 }
 0x133   :  { %v2988_v15 = vmul.f32 %v2736_v56, %v2781_v44  ;;  %v2991_v36 = vadd.f32 %v1478_v40, %v2647_v48  ;;  %v2994_v38 = vadd.f32 %v1485_v43, %v2662_v6  ;;  %v2997_v17 = vadd.f32 %v1492_v39, %v2665_v20  ;;  %v3022_v40 = vpop.f32.mrb[33].mxu1 }
 0x134   :  { %4216 = vst [vmem:[#allocation84_spill] sm:$0xff] %v2984_v34  ;;  %v3000_v33 = vadd.f32 %v1499_v49, %v2668_v55  ;;  %v902_v12 = vmul.f32 %v2783_v61, %v2781_v44  ;;  %v3010_v48 = vmul.f32 %v2694_v51, %v2791_v63  ;;  %v3014_v6 = vmul.f32 %v2676_v42, %v2791_v63  ;;  %v3020_v55 = vpop.f32.mrb[33].mxu0 }
 0x135   :  { %4217 = vst [vmem:[#allocation85_spill] sm:$0xff] %v2988_v15  ;;  %v3018_v20 = vmul.f32 %v2748_v60, %v2791_v63  ;;  %4220 = vst [vmem:[#allocation88_spill] sm:$0xff] %v3022_v40  ;;  %v3026_v43 = vmul.f32 %v2736_v56, %v2791_v63  ;;  %v785_v39 = vmul.f32 %v2783_v61, %v2791_v63 }
 0x136   :  { %v778_v49 = vmul.f32 %v2793_v13, %v2791_v63  ;;  %v895_v31 = vmul.f32 %v2781_v44, %v2793_v13  ;;  %v3035_v22 = vadd.f32 %v902_v12, %v2707_v2  ;;  %v3039_v34 = vmul.f32 %v2834_v16, %v2694_v51 }
 0x137   :  { %4219 = vst [vmem:[#allocation87_spill] sm:$0xff] %v3018_v20  ;;  %4221 = vst [vmem:[#allocation89_spill] sm:$0xff] %v3026_v43  ;;  %v3043_v40 = vmul.f32 %v2676_v42, %v2834_v16  ;;  %v3047_v20 = vmul.f32 %v2834_v16, %v2748_v60  ;;  %v3050_v1 = vadd.f32 %v785_v39, %v2722_v45 }
 0x138   :  { %4222 = vst [vmem:[#allocation90_spill] sm:$0xff] %v3035_v22  ;;  %4223 = vst [vmem:[#allocation91_spill] sm:$0xff] %v3039_v34  ;;  %v3053_v15 = vadd.f32 %v778_v49, %v2725_v52  ;;  %v3056_v2 = vadd.f32 %v895_v31, %v2728_v7  ;;  %v3060_v12 = vmul.f32 %v2736_v56, %v2834_v16  ;;  %v3062_v22 = vpop.f32.mrb[34].mxu0  ;;  %v4237_v34 = vld [vmem:[#allocation62_spill] sm:$0xff] }
 0x139   :  { %4224 = vst [vmem:[#allocation92_spill] sm:$0xff] %v3047_v20  ;;  %4225 = vst [vmem:[#allocation93_spill] sm:$0xff] %v3050_v1  ;;  %v1129_v43 = vmul.f32 %v2834_v16, %v2793_v13  ;;  %v1136_v20 = vmul.f32 %v2783_v61, %v2834_v16  ;;  %v799_v45 = vmul.f32 %v2836_v46, %v2791_v63  ;;  %v3072_v7 = vpop.f32.mrb[35].mxu0 }
 0x13a   :  { %4226 = vst [vmem:[#allocation94_spill] sm:$0xff] %v3053_v15  ;;  %4227 = vst [vmem:[#allocation95_spill] sm:$0xff] %v3056_v2  ;;  %v916_v52 = vmul.f32 %v2836_v46, %v2781_v44  ;;  %v1150_v31 = vmul.f32 %v2836_v46, %v2834_v16  ;;  %v3078_v39 = vmul.f32 %v2694_v51, %v2846_v3  ;;  %v3088_v2 = vpop.f32.mrb[34].mxu1 }
 0x13b   :  { %4228 = vst [vmem:[#allocation96_spill] sm:$0xff] %v3060_v12  ;;  %4229 = vst [vmem:[#allocation97_spill] sm:$0xff] %v3062_v22  ;;  %v3082_v49 = vmul.f32 %v2676_v42, %v2846_v3  ;;  %v3086_v1 = vmul.f32 %v2748_v60, %v2846_v3  ;;  %v3091_v15 = vadd.f32 %v1129_v43, %v2762_v19  ;;  %v4235_v22 = vld [vmem:[#allocation61_spill] sm:$0xff] }
 0x13c   :  { %4230 = vst [vmem:[#allocation98_spill] sm:$0xff] %v3072_v7  ;;  %4231 = vst [vmem:[#allocation99_spill] sm:$0xff] %v3078_v39  ;;  %v3094_v7 = vadd.f32 %v1136_v20, %v2765_v25  ;;  %v3097_v12 = vadd.f32 %v799_v45, %v2768_v11  ;;  %v3100_v41 = vadd.f32 %v916_v52, %v4235_v22 }
 0x13d   :  { %4232 = vst [vmem:[#allocation100_spill] sm:$0xff] %v3086_v1  ;;  %4233 = vst [vmem:[#allocation101_spill] sm:$0xff] %v3088_v2  ;;  %v3103_v39 = vadd.f32 %v1150_v31, %v4237_v34  ;;  %v3107_v1 = vmul.f32 %v2736_v56, %v2846_v3  ;;  %v1012_v19 = vmul.f32 %v2793_v13, %v2846_v3  ;;  %v4247_v2 = vld [vmem:[#allocation72_spill] sm:$0xff] }
 0x13e   :  { %4234 = vst [vmem:[#allocation102_spill] sm:$0xff] %v3097_v12  ;;  %4236 = vst [vmem:[#allocation61_spill] sm:$0xff] %v3100_v41  ;;  %v1019_v25 = vmul.f32 %v2783_v61, %v2846_v3  ;;  %v1033_v11 = vmul.f32 %v2836_v46, %v2846_v3  ;;  %v792_v22 = vmul.f32 %v2848_v35, %v2791_v63  ;;  %v4282_v41 = vld [vmem:[#allocation41_spill] sm:$0xff] }
 0x13f   :  { %4238 = vst [vmem:[#allocation62_spill] sm:$0xff] %v3103_v39  ;;  %v909_v34 = vmul.f32 %v2781_v44, %v2848_v35  ;;  %v1026_v20 = vmul.f32 %v2848_v35, %v2846_v3  ;;  %v3122_v43 = vadd.f32 %v1012_v19, %v2796_v10  ;;  %v1143_v52 = vmul.f32 %v2834_v16, %v2848_v35 }
 0x140   :  { %v3125_v45 = vadd.f32 %v1019_v25, %v2799_v57  ;;  %v3131_v31 = vmul.f32 %v2886_v53, %v2694_v51  ;;  %v3134_v63 = vadd.f32 %v1033_v11, %v2808_v24  ;;  %v3137_v44 = vadd.f32 %v792_v22, %v2811_v29 }
 0x141   :  { %v3140_v3 = vadd.f32 %v909_v34, %v2814_v14  ;;  %v3143_v10 = vadd.f32 %v1026_v20, %v2817_v4  ;;  %v3146_v57 = vadd.f32 %v1143_v52, %v2820_v26  ;;  %v3150_v16 = vmul.f32 %v2676_v42, %v2886_v53 }
 0x142   :  { %4239 = vst [vmem:[#allocation103_spill] sm:$0xff] %v3134_v63  ;;  %4240 = vst [vmem:[#allocation104_spill] sm:$0xff] %v3137_v44  ;;  %v3154_v24 = vmul.f32 %v2886_v53, %v2748_v60  ;;  %v3158_v29 = vmul.f32 %v2736_v56, %v2886_v53  ;;  %v1363_v14 = vmul.f32 %v2886_v53, %v2793_v13  ;;  %v3196_v63 = vpop.f32.mrb[35].mxu1 }
 0x143   :  { %4241 = vst [vmem:[#allocation105_spill] sm:$0xff] %v3140_v3  ;;  %4242 = vst [vmem:[#allocation106_spill] sm:$0xff] %v3143_v10  ;;  %v1370_v4 = vmul.f32 %v2783_v61, %v2886_v53  ;;  %v1377_v26 = vmul.f32 %v2886_v53, %v2848_v35  ;;  %v1384_v19 = vmul.f32 %v2836_v46, %v2886_v53 }
 0x144   :  { %4243 = vst [vmem:[#allocation107_spill] sm:$0xff] %v3146_v57  ;;  %v3170_v25 = vmul.f32 %v2694_v51, %v2906_v50  ;;  %v3174_v11 = vmul.f32 %v2676_v42, %v2906_v50  ;;  %v3178_v22 = vmul.f32 %v2748_v60, %v2906_v50  ;;  %v3182_v34 = vmul.f32 %v2736_v56, %v2906_v50 }
 0x145   :  { %v3185_v20 = vadd.f32 %v1363_v14, %v2867_v32  ;;  %v3188_v53 = vadd.f32 %v1370_v4, %v2870_v8  ;;  %v3191_v52 = vadd.f32 %v1377_v26, %v2873_v21  ;;  %v3194_v39 = vadd.f32 %v1384_v19, %v4247_v2  ;;  %4249 = vst [vmem:[#allocation111_spill] sm:$0xff] %v3196_v63 }
 0x146   :  { %v1246_v57 = vmul.f32 %v2793_v13, %v2906_v50  ;;  %v1253_v10 = vmul.f32 %v2783_v61, %v2906_v50  ;;  %v1260_v32 = vmul.f32 %v2848_v35, %v2906_v50  ;;  %v1267_v8 = vmul.f32 %v2836_v46, %v2906_v50 }
 0x147   :  { %4244 = vst [vmem:[#allocation108_spill] sm:$0xff] %v3185_v20  ;;  %4245 = vst [vmem:[#allocation109_spill] sm:$0xff] %v3188_v53  ;;  %v3208_v21 = vmul.f32 %v2946_v59, %v2694_v51  ;;  %v1576_v2 = vmul.f32 %v2676_v42, %v2946_v59  ;;  %v3214_v14 = vmul.f32 %v2946_v59, %v2748_v60 }
 0x148   :  { %4246 = vst [vmem:[#allocation110_spill] sm:$0xff] %v3191_v52  ;;  %4248 = vst [vmem:[#allocation72_spill] sm:$0xff] %v3194_v39  ;;  %v3218_v4 = vmul.f32 %v2736_v56, %v2946_v59  ;;  %v3221_v26 = vadd.f32 %v1246_v57, %v2911_v28  ;;  %v3224_v50 = vadd.f32 %v1253_v10, %v2914_v30 }
 0x149   :  { %4250 = vst [vmem:[#allocation112_spill] sm:$0xff] %v3214_v14  ;;  %v3227_v19 = vadd.f32 %v1260_v32, %v2917_v37  ;;  %v3230_v63 = vadd.f32 %v1267_v8, %v2920_v9  ;;  %v1597_v39 = vmul.f32 %v2946_v59, %v2793_v13  ;;  %v1604_v52 = vmul.f32 %v2783_v61, %v2946_v59  ;;  %v4262_v8 = vld [vmem:[#allocation7_spill] sm:$0xff] }
 0x14a   :  { %4251 = vst [vmem:[#allocation113_spill] sm:$0xff] %v3221_v26  ;;  %4252 = vst [vmem:[#allocation114_spill] sm:$0xff] %v3224_v50  ;;  %v1611_v53 = vmul.f32 %v2946_v59, %v2848_v35  ;;  %v1618_v28 = vmul.f32 %v2836_v46, %v2946_v59  ;;  %v3242_v30 = vmul.f32 %v2694_v51, %v2962_v27  ;;  %v4271_v50 = vld [vmem:[#allocation10_spill] sm:$0xff] }
 0x14b   :  { %4253 = vst [vmem:[#allocation115_spill] sm:$0xff] %v3227_v19  ;;  %4254 = vst [vmem:[#allocation116_spill] sm:$0xff] %v3230_v63  ;;  %v1459_v9 = vmul.f32 %v2676_v42, %v2962_v27  ;;  %v3248_v37 = vmul.f32 %v2748_v60, %v2962_v27  ;;  %v3252_v10 = vmul.f32 %v2736_v56, %v2962_v27  ;;  %v4270_v19 = vld [vmem:[#allocation24_spill] sm:$0xff] }
 0x14c   :  { %v3255_v57 = vadd.f32 %v1597_v39, %v2951_v58  ;;  %v3258_v59 = vadd.f32 %v1604_v52, %v2954_v18  ;;  %v3261_v51 = vadd.f32 %v1611_v53, %v2957_v5  ;;  %v3264_v32 = vadd.f32 %v1618_v28, %v2960_v47  ;;  %v4259_v18 = vld [vmem:[#allocation6_spill] sm:$0xff]  ;;  %v4260_v5 = vld [vmem:[#allocation5_spill] sm:$0xff]  ;;  %v4261_v47 = vld [vmem:[#allocation8_spill] sm:$0xff] }
 0x14d   :  { %v1480_v42 = vmul.f32 %v2793_v13, %v2962_v27  ;;  %v1487_v60 = vmul.f32 %v2783_v61, %v2962_v27  ;;  %v1494_v56 = vmul.f32 %v2848_v35, %v2962_v27  ;;  %v1501_v58 = vmul.f32 %v2836_v46, %v2962_v27  ;;  %v4267_v28 = vld [vmem:[#allocation18_spill] sm:$0xff] }
 0x14e   :  { %4255 = vst [vmem:[#allocation117_spill] sm:$0xff] %v3255_v57  ;;  %4256 = vst [vmem:[#allocation118_spill] sm:$0xff] %v3258_v59  ;;  %v752_v39 = vmul.f32 %v3002_v0, %v4259_v18  ;;  %v869_v53 = vmul.f32 %v3002_v0, %v4260_v5  ;;  %v986_v52 = vmul.f32 %v3002_v0, %v4261_v47  ;;  %v4269_v57 = vld [vmem:[#allocation28_spill] sm:$0xff] }
 0x14f   :  { %4257 = vst [vmem:[#allocation119_spill] sm:$0xff] %v3261_v51  ;;  %4258 = vst [vmem:[#allocation120_spill] sm:$0xff] %v3264_v32  ;;  %v1103_v13 = vmul.f32 %v3002_v0, %v4262_v8  ;;  %v3283_v61 = vadd.f32 %v1480_v42, %v2991_v36  ;;  %v3286_v35 = vadd.f32 %v1487_v60, %v2994_v38  ;;  %v4268_v51 = vld [vmem:[#allocation15_spill] sm:$0xff]  ;;  %v4272_v42 = vld [vmem:[#allocation9_spill] sm:$0xff] }
 0x150   :  { %v3289_v46 = vadd.f32 %v1494_v56, %v2997_v17  ;;  %v3292_v27 = vadd.f32 %v1501_v58, %v3000_v33  ;;  %v754_v32 = vadd.f32 %v4267_v28, %v752_v39  ;;  %v871_v59 = vadd.f32 %v4268_v51, %v869_v53  ;;  %v4273_v60 = vld [vmem:[#allocation12_spill] sm:$0xff]  ;;  %v4274_v56 = vld [vmem:[#allocation11_spill] sm:$0xff] }
 0x151   :  { %4263 = vst [vmem:[#allocation6_spill] sm:$0xff] %v3283_v61  ;;  %4264 = vst [vmem:[#allocation5_spill] sm:$0xff] %v3286_v35  ;;  %v988_v63 = vadd.f32 %v4269_v57, %v986_v52  ;;  %v1105_v14 = vadd.f32 %v4270_v19, %v1103_v13  ;;  %v1220_v36 = vmul.f32 %v3002_v0, %v4271_v50  ;;  %v4275_v58 = vld [vmem:[#allocation51_spill] sm:$0xff]  ;;  %v4279_v13 = vld [vmem:[#allocation38_spill] sm:$0xff] }
 0x152   :  { %4265 = vst [vmem:[#allocation8_spill] sm:$0xff] %v3289_v46  ;;  %4266 = vst [vmem:[#allocation7_spill] sm:$0xff] %v3292_v27  ;;  %v1337_v38 = vmul.f32 %v3002_v0, %v4272_v42  ;;  %v1454_v17 = vmul.f32 %v3002_v0, %v4273_v60  ;;  %v1571_v33 = vmul.f32 %v3002_v0, %v4274_v56  ;;  %v4276_v28 = vld [vmem:[#allocation47_spill] sm:$0xff]  ;;  %v4280_v46 = vld [vmem:[#allocation34_spill] sm:$0xff] }
 0x153   :  { %v756_v39 = vadd.f32 %v4275_v58, %v754_v32  ;;  %v873_v51 = vadd.f32 %v4276_v28, %v871_v59  ;;  %v4277_v53 = vld [vmem:[#allocation59_spill] sm:$0xff]  ;;  %v1222_v27 = vadd.f32 %v4279_v13, %v1220_v36  ;;  %v4281_v61 = vld [vmem:[#allocation44_spill] sm:$0xff]  ;;  %v4284_v36 = vld [vmem:[#allocation65_spill] sm:$0xff] }
 0x154   :  { %v990_v57 = vadd.f32 %v4277_v53, %v988_v63  ;;  %v4278_v52 = vld [vmem:[#allocation55_spill] sm:$0xff]  ;;  %v1339_v35 = vadd.f32 %v4280_v46, %v1337_v38  ;;  %v1456_v20 = vadd.f32 %v4281_v61, %v1454_v17  ;;  %v1573_v12 = vadd.f32 %v4282_v41, %v1571_v33  ;;  %v4288_v33 = vld [vmem:[#allocation14_spill] sm:$0xff] }
 0x155   :  { %v1107_v19 = vadd.f32 %v4278_v52, %v1105_v14  ;;  %v3315_v26 = vadd.f32 %v3014_v6, %v756_v39  ;;  %v3318_v0 = vadd.f32 %v2980_v23, %v873_v51  ;;  %v4283_v14 = vld [vmem:[#allocation69_spill] sm:$0xff]  ;;  %v4285_v38 = vld [vmem:[#allocation75_spill] sm:$0xff]  ;;  %v745_v6 = vmul.f32 %v3020_v55, %v4259_v18 }
 0x156   :  { %v3321_v59 = vadd.f32 %v3082_v49, %v990_v57  ;;  %v1224_v32 = vadd.f32 %v4283_v14, %v1222_v27  ;;  %v1341_v46 = vadd.f32 %v4284_v36, %v1339_v35  ;;  %v1458_v61 = vadd.f32 %v2936_v54, %v1456_v20  ;;  %v4287_v20 = vld [vmem:[#allocation17_spill] sm:$0xff]  ;;  %v4289_v39 = vld [vmem:[#allocation27_spill] sm:$0xff]  ;;  %v4293_v14 = vld [vmem:[#allocation58_spill] sm:$0xff] }
 0x157   :  { %v3324_v63 = vadd.f32 %v3043_v40, %v1107_v19  ;;  %v1575_v41 = vadd.f32 %v4285_v38, %v1573_v12  ;;  %v862_v23 = vmul.f32 %v4260_v5, %v3020_v55  ;;  %v979_v49 = vmul.f32 %v3020_v55, %v4261_v47  ;;  %v4290_v51 = vld [vmem:[#allocation23_spill] sm:$0xff]  ;;  %v4292_v19 = vld [vmem:[#allocation46_spill] sm:$0xff] }
 0x158   :  { %v1096_v40 = vmul.f32 %v4262_v8, %v3020_v55  ;;  %v3339_v27 = vadd.f32 %v3174_v11, %v1224_v32  ;;  %v3342_v35 = vadd.f32 %v3150_v16, %v1341_v46  ;;  %v3344_v54 = vadd.f32 %v1459_v9, %v1458_v61  ;;  %v4291_v9 = vld [vmem:[#allocation50_spill] sm:$0xff]  ;;  %v4295_v61 = vld [vmem:[#allocation37_spill] sm:$0xff] }
 0x159   :  { %v3346_v12 = vadd.f32 %v1576_v2, %v1575_v41  ;;  %v747_v17 = vadd.f32 %v4287_v20, %v745_v6  ;;  %v864_v58 = vadd.f32 %v4288_v33, %v862_v23  ;;  %v981_v28 = vadd.f32 %v4289_v39, %v979_v49  ;;  %v4294_v36 = vld [vmem:[#allocation54_spill] sm:$0xff]  ;;  %v4296_v41 = vld [vmem:[#allocation32_spill] sm:$0xff]  ;;  %v4297_v23 = vld [vmem:[#allocation43_spill] sm:$0xff] }
 0x15a   :  { %v1098_v53 = vadd.f32 %v4290_v51, %v1096_v40  ;;  %v1213_v57 = vmul.f32 %v3020_v55, %v4271_v50  ;;  %v1330_v11 = vmul.f32 %v4272_v42, %v3020_v55  ;;  %v1447_v16 = vmul.f32 %v3020_v55, %v4273_v60  ;;  %v4298_v40 = vld [vmem:[#allocation40_spill] sm:$0xff]  ;;  %v4300_v39 = vld [vmem:[#allocation91_spill] sm:$0xff] }
 0x15b   :  { %4286 = vst [vmem:[#allocation18_spill] sm:$0xff] %v3346_v12  ;;  %v1564_v2 = vmul.f32 %v4274_v56, %v3020_v55  ;;  %v749_v52 = vadd.f32 %v4291_v9, %v747_v17  ;;  %v866_v13 = vadd.f32 %v4292_v19, %v864_v58  ;;  %v983_v32 = vadd.f32 %v4293_v14, %v981_v28  ;;  %v4299_v17 = vld [vmem:[#allocation99_spill] sm:$0xff]  ;;  %v4301_v51 = vld [vmem:[#allocation68_spill] sm:$0xff]  ;;  %v4304_v19 = vld [vmem:[#allocation74_spill] sm:$0xff] }
 0x15c   :  { %v1100_v46 = vadd.f32 %v4294_v36, %v1098_v53  ;;  %v1215_v38 = vadd.f32 %v4295_v61, %v1213_v57  ;;  %v1332_v6 = vadd.f32 %v4296_v41, %v1330_v11  ;;  %v1449_v49 = vadd.f32 %v4297_v23, %v1447_v16  ;;  %v4302_v57 = vld [vmem:[#allocation64_spill] sm:$0xff]  ;;  %v4303_v9 = vld [vmem:[#allocation79_spill] sm:$0xff] }
 0x15d   :  { %v1566_v20 = vadd.f32 %v4298_v40, %v1564_v2  ;;  %v3369_v33 = vadd.f32 %v3010_v48, %v749_v52  ;;  %v3372_v55 = vadd.f32 %v2976_v62, %v866_v13  ;;  %v3375_v58 = vadd.f32 %v4299_v17, %v983_v32  ;;  %v4305_v48 = vld [vmem:[#allocation97_spill] sm:$0xff] }
 0x15e   :  { %v3378_v28 = vadd.f32 %v4300_v39, %v1100_v46  ;;  %v1217_v53 = vadd.f32 %v4301_v51, %v1215_v38  ;;  %v1334_v11 = vadd.f32 %v4302_v57, %v1332_v6  ;;  %v1451_v16 = vadd.f32 %v4303_v9, %v1449_v49  ;;  %v4307_v38 = vld [vmem:[#allocation19_spill] sm:$0xff]  ;;  %v4308_v6 = vld [vmem:[#allocation16_spill] sm:$0xff]  ;;  %v4309_v49 = vld [vmem:[#allocation29_spill] sm:$0xff] }
 0x15f   :  { %v1568_v2 = vadd.f32 %v4304_v19, %v1566_v20  ;;  %v766_v52 = vmul.f32 %v4305_v48, %v4259_v18  ;;  %v883_v62 = vmul.f32 %v4305_v48, %v4260_v5  ;;  %v1000_v13 = vmul.f32 %v4305_v48, %v4261_v47  ;;  %v4310_v20 = vld [vmem:[#allocation26_spill] sm:$0xff]  ;;  %v4311_v39 = vld [vmem:[#allocation53_spill] sm:$0xff] }
 0x160   :  { %v1117_v14 = vmul.f32 %v4305_v48, %v4262_v8  ;;  %v3393_v32 = vadd.f32 %v3170_v25, %v1217_v53  ;;  %v3396_v36 = vadd.f32 %v3131_v31, %v1334_v11  ;;  %v3399_v46 = vadd.f32 %v3242_v30, %v1451_v16  ;;  %v4312_v53 = vld [vmem:[#allocation49_spill] sm:$0xff]  ;;  %v4313_v11 = vld [vmem:[#allocation63_spill] sm:$0xff] }
 0x161   :  { %v3402_v61 = vadd.f32 %v3208_v21, %v1568_v2  ;;  %v768_v41 = vadd.f32 %v4307_v38, %v766_v52  ;;  %v885_v23 = vadd.f32 %v4308_v6, %v883_v62  ;;  %v1002_v40 = vadd.f32 %v4309_v49, %v1000_v13  ;;  %v4314_v16 = vld [vmem:[#allocation57_spill] sm:$0xff]  ;;  %v4315_v2 = vld [vmem:[#allocation39_spill] sm:$0xff]  ;;  %v4318_v6 = vld [vmem:[#allocation42_spill] sm:$0xff] }
 0x162   :  { %v1119_v17 = vadd.f32 %v4310_v20, %v1117_v14  ;;  %v1234_v25 = vmul.f32 %v4305_v48, %v4271_v50  ;;  %v1351_v31 = vmul.f32 %v4305_v48, %v4272_v42  ;;  %v1468_v30 = vmul.f32 %v4305_v48, %v4273_v60  ;;  %v4316_v62 = vld [vmem:[#allocation35_spill] sm:$0xff]  ;;  %v4317_v14 = vld [vmem:[#allocation45_spill] sm:$0xff] }
 0x163   :  { %4306 = vst [vmem:[#allocation15_spill] sm:$0xff] %v3402_v61  ;;  %v1585_v21 = vmul.f32 %v4305_v48, %v4274_v56  ;;  %v770_v51 = vadd.f32 %v4311_v39, %v768_v41  ;;  %v887_v57 = vadd.f32 %v4312_v53, %v885_v23  ;;  %v1004_v9 = vadd.f32 %v4313_v11, %v1002_v40  ;;  %v4319_v20 = vld [vmem:[#allocation89_spill] sm:$0xff]  ;;  %v4321_v23 = vld [vmem:[#allocation96_spill] sm:$0xff]  ;;  %v4323_v39 = vld [vmem:[#allocation67_spill] sm:$0xff] }
 0x164   :  { %v1121_v19 = vadd.f32 %v4314_v16, %v1119_v17  ;;  %v1236_v52 = vadd.f32 %v4315_v2, %v1234_v25  ;;  %v1353_v13 = vadd.f32 %v4316_v62, %v1351_v31  ;;  %v1470_v38 = vadd.f32 %v4317_v14, %v1468_v30  ;;  %v4320_v48 = vld [vmem:[#allocation85_spill] sm:$0xff]  ;;  %v4322_v17 = vld [vmem:[#allocation71_spill] sm:$0xff]  ;;  %v4327_v62 = vld [vmem:[#allocation20_spill] sm:$0xff] }
 0x165   :  { %v1587_v49 = vadd.f32 %v4318_v6, %v1585_v21  ;;  %v3425_v61 = vadd.f32 %v4319_v20, %v770_v51  ;;  %v3428_v12 = vadd.f32 %v4320_v48, %v887_v57  ;;  %v3431_v41 = vadd.f32 %v3107_v1, %v1004_v9  ;;  %v4324_v53 = vld [vmem:[#allocation81_spill] sm:$0xff]  ;;  %v4326_v51 = vld [vmem:[#allocation98_spill] sm:$0xff] }
 0x166   :  { %v3434_v40 = vadd.f32 %v4321_v23, %v1121_v19  ;;  %v1238_v25 = vadd.f32 %v4322_v17, %v1236_v52  ;;  %v1355_v31 = vadd.f32 %v4323_v39, %v1353_v13  ;;  %v1472_v30 = vadd.f32 %v4324_v53, %v1470_v38  ;;  %v4325_v11 = vld [vmem:[#allocation77_spill] sm:$0xff]  ;;  %v4328_v14 = vld [vmem:[#allocation22_spill] sm:$0xff]  ;;  %v4332_v23 = vld [vmem:[#allocation52_spill] sm:$0xff] }
 0x167   :  { %v1589_v21 = vadd.f32 %v4325_v11, %v1587_v49  ;;  %v759_v16 = vmul.f32 %v4326_v51, %v4259_v18  ;;  %v801_v57 = vmax.f32 %v3369_v33, %v3315_v26  ;;  %v876_v1 = vmul.f32 %v4260_v5, %v4326_v51  ;;  %v4329_v6 = vld [vmem:[#allocation25_spill] sm:$0xff] }
 0x168   :  { %v918_v9 = vmax.f32 %v3372_v55, %v3318_v0  ;;  %v3449_v19 = vadd.f32 %v3182_v34, %v1238_v25  ;;  %v3452_v2 = vadd.f32 %v3158_v29, %v1355_v31  ;;  %v3455_v52 = vadd.f32 %v3252_v10, %v1472_v30  ;;  %v4330_v49 = vld [vmem:[#allocation13_spill] sm:$0xff]  ;;  %v4333_v25 = vld [vmem:[#allocation48_spill] sm:$0xff]  ;;  %v4334_v30 = vld [vmem:[#allocation31_spill] sm:$0xff] }
 0x169   :  { %v3458_v18 = vadd.f32 %v3218_v4, %v1589_v21  ;;  %v761_v13 = vadd.f32 %v4327_v62, %v759_v16  ;;  %v878_v38 = vadd.f32 %v4328_v14, %v876_v1  ;;  %v993_v5 = vmul.f32 %v4326_v51, %v4261_v47  ;;  %v4331_v20 = vld [vmem:[#allocation21_spill] sm:$0xff]  ;;  %v4335_v16 = vld [vmem:[#allocation87_spill] sm:$0xff]  ;;  %v4336_v62 = vld [vmem:[#allocation84_spill] sm:$0xff] }
 0x16a   :  { %v994_v34 = vmul.f32 %v4330_v49, %v4329_v6  ;;  %v1035_v29 = vmax.f32 %v3375_v58, %v3321_v59  ;;  %v1110_v10 = vmul.f32 %v4262_v8, %v4326_v51  ;;  %v1111_v4 = vmul.f32 %v4331_v20, %v4330_v49  ;;  %v4337_v14 = vld [vmem:[#allocation60_spill] sm:$0xff] }
 0x16b   :  { %v1152_v48 = vmax.f32 %v3378_v28, %v3324_v63  ;;  %v763_v17 = vadd.f32 %v4332_v23, %v761_v13  ;;  %v880_v39 = vadd.f32 %v4333_v25, %v878_v38  ;;  %v1227_v31 = vmul.f32 %v4326_v51, %v4271_v50  ;;  %v4338_v50 = vld [vmem:[#allocation30_spill] sm:$0xff]  ;;  %v4339_v6 = vld [vmem:[#allocation56_spill] sm:$0xff] }
 0x16c   :  { %v995_v47 = vadd.f32 %v994_v34, %v993_v5  ;;  %v1112_v53 = vadd.f32 %v1111_v4, %v1110_v10  ;;  %v1228_v11 = vmul.f32 %v4330_v49, %v4334_v30  ;;  %v1269_v8 = vmax.f32 %v3393_v32, %v3339_v27 }
 0x16d   :  { %v1344_v21 = vmul.f32 %v4272_v42, %v4326_v51  ;;  %v3485_v1 = vadd.f32 %v4335_v16, %v763_v17  ;;  %v3488_v13 = vadd.f32 %v4336_v62, %v880_v39  ;;  %v1345_v5 = vmul.f32 %v4338_v50, %v4330_v49  ;;  %v4340_v17 = vld [vmem:[#allocation100_spill] sm:$0xff]  ;;  %v4342_v16 = vld [vmem:[#allocation70_spill] sm:$0xff] }
 0x16e   :  { %v997_v38 = vadd.f32 %v4337_v14, %v995_v47  ;;  %v1114_v34 = vadd.f32 %v4339_v6, %v1112_v53  ;;  %v1229_v10 = vadd.f32 %v1228_v11, %v1227_v31  ;;  %v1386_v20 = vmax.f32 %v3396_v36, %v3342_v35  ;;  %v4341_v47 = vld [vmem:[#allocation92_spill] sm:$0xff]  ;;  %v4344_v14 = vld [vmem:[#allocation66_spill] sm:$0xff] }
 0x16f   :  { %v1461_v42 = vmul.f32 %v4326_v51, %v4273_v60  ;;  %v802_v4 = vmax.f32 %v801_v57, %v3485_v1  ;;  %v919_v23 = vmax.f32 %v918_v9, %v3488_v13  ;;  %v1346_v39 = vadd.f32 %v1345_v5, %v1344_v21  ;;  %v4343_v31 = vld [vmem:[#allocation36_spill] sm:$0xff] }
 0x170   :  { %v3501_v25 = vadd.f32 %v4340_v17, %v997_v38  ;;  %v3504_v30 = vadd.f32 %v4341_v47, %v1114_v34  ;;  %v1231_v53 = vadd.f32 %v4342_v16, %v1229_v10  ;;  %v1462_v11 = vmul.f32 %v4330_v49, %v4343_v31  ;;  %v4345_v34 = vld [vmem:[#allocation94_spill] sm:$0xff]  ;;  %v4346_v17 = vld [vmem:[#allocation95_spill] sm:$0xff] }
 0x171   :  { %v1503_v62 = vmax.f32 %v3399_v46, %v3344_v54  ;;  %v803_v60 = vmax.f32 %v802_v4, %v3425_v61  ;;  %v920_v57 = vmax.f32 %v919_v23, %v3428_v12  ;;  %v1348_v38 = vadd.f32 %v4344_v14, %v1346_v39 }
 0x172   :  { %v1036_v9 = vmax.f32 %v1035_v29, %v3501_v25  ;;  %v1153_v21 = vmax.f32 %v1152_v48, %v3504_v30  ;;  %v3517_v50 = vadd.f32 %v3178_v22, %v1231_v53  ;;  %v1463_v5 = vadd.f32 %v1462_v11, %v1461_v42  ;;  %v4347_v48 = vld [vmem:[#allocation80_spill] sm:$0xff]  ;;  %v4348_v22 = vld [vmem:[#allocation33_spill] sm:$0xff] }
 0x173   :  { %v1578_v6 = vmul.f32 %v4274_v56, %v4326_v51  ;;  %v804_v10 = vmax.f32 %v803_v60, %v4345_v34  ;;  %v921_v47 = vmax.f32 %v920_v57, %v4346_v17  ;;  %v1350_v23 = vadd.f32 %v3154_v24, %v1348_v38  ;;  %v4349_v53 = vld [vmem:[#allocation93_spill] sm:$0xff]  ;;  %v4350_v56 = vld [vmem:[#allocation90_spill] sm:$0xff] }
 0x174   :  { %v1037_v4 = vmax.f32 %v1036_v9, %v3431_v41  ;;  %v1154_v29 = vmax.f32 %v1153_v21, %v3434_v40  ;;  %v1270_v39 = vmax.f32 %v1269_v8, %v3517_v50  ;;  %v1465_v16 = vadd.f32 %v4347_v48, %v1463_v5  ;;  %v4353_v48 = vld [vmem:[#allocation102_spill] sm:$0xff] }
 0x175   :  { %v1579_v42 = vmul.f32 %v4348_v22, %v4330_v49  ;;  %v805_v31 = vmax.f32 %v804_v10, %v4349_v53  ;;  %v922_v51 = vmax.f32 %v921_v47, %v4350_v56  ;;  %v1387_v60 = vmax.f32 %v1386_v20, %v1350_v23  ;;  %v4351_v10 = vld [vmem:[#allocation113_spill] sm:$0xff] }
 0x176   :  { %v1038_v11 = vmax.f32 %v1037_v4, %v3122_v43  ;;  %v1155_v57 = vmax.f32 %v1154_v29, %v3091_v15  ;;  %v1271_v24 = vmax.f32 %v1270_v39, %v3449_v19  ;;  %v1467_v9 = vadd.f32 %v3248_v37, %v1465_v16  ;;  %v4352_v4 = vld [vmem:[#allocation76_spill] sm:$0xff]  ;;  %v4354_v37 = vld [vmem:[#allocation61_spill] sm:$0xff]  ;;  %v4355_v16 = vld [vmem:[#allocation106_spill] sm:$0xff] }
 0x177   :  { %v1580_v14 = vadd.f32 %v1579_v42, %v1578_v6  ;;  %v806_v8 = vmax.f32 %v805_v31, %v3137_v44  ;;  %v923_v38 = vmax.f32 %v922_v51, %v3140_v3  ;;  %v1388_v21 = vmax.f32 %v1387_v60, %v3452_v2  ;;  %v4356_v42 = vld [vmem:[#allocation108_spill] sm:$0xff]  ;;  %v4357_v51 = vld [vmem:[#allocation107_spill] sm:$0xff]  ;;  %v4358_v60 = vld [vmem:[#allocation114_spill] sm:$0xff] }
 0x178   :  { %v1039_v49 = vmax.f32 %v1038_v11, %v3125_v45  ;;  %v1156_v5 = vmax.f32 %v1155_v57, %v3094_v7  ;;  %v1272_v47 = vmax.f32 %v1271_v24, %v4351_v10  ;;  %v1504_v20 = vmax.f32 %v1503_v62, %v1467_v9  ;;  %v4359_v24 = vld [vmem:[#allocation112_spill] sm:$0xff] }
 0x179   :  { %v1582_v29 = vadd.f32 %v4352_v4, %v1580_v14  ;;  %v3544_v39 = vmax.f32 %v806_v8, %v4353_v48  ;;  %v3547_v6 = vmax.f32 %v923_v38, %v4354_v37  ;;  %v1389_v31 = vmax.f32 %v1388_v21, %v4356_v42  ;;  %v4360_v38 = vld [vmem:[#allocation103_spill] sm:$0xff]  ;;  %v4367_v42 = vld [vmem:[#allocation110_spill] sm:$0xff] }
 0x17a   :  { %v1040_v22 = vmax.f32 %v1039_v49, %v4355_v16  ;;  %v1157_v11 = vmax.f32 %v1156_v5, %v4357_v51  ;;  %v1273_v3 = vmax.f32 %v1272_v47, %v4358_v60  ;;  %v1505_v57 = vmax.f32 %v1504_v20, %v3455_v52  ;;  %v4361_v49 = vld [vmem:[#allocation109_spill] sm:$0xff]  ;;  %v4362_v16 = vld [vmem:[#allocation62_spill] sm:$0xff]  ;;  %v4363_v47 = vld [vmem:[#allocation115_spill] sm:$0xff] }
 0x17b   :  { %v3555_v62 = vadd.f32 %v4359_v24, %v1582_v29  ;;  %v818_v14 = vsub.f32 %v3485_v1, %v3544_v39  ;;  %v935_v8 = vsub.f32 %v3488_v13, %v3547_v6  ;;  %v1390_v21 = vmax.f32 %v1389_v31, %v4361_v49  ;;  %v4364_v20 = vld [vmem:[#allocation6_spill] sm:$0xff]  ;;  %v4366_v24 = vld [vmem:[#allocation15_spill] sm:$0xff] }
 0x17c   :  { %v3562_v4 = vmax.f32 %v1040_v22, %v4360_v38  ;;  %v3566_v5 = vmax.f32 %v1157_v11, %v4362_v16  ;;  %v1274_v51 = vmax.f32 %v1273_v3, %v4363_v47  ;;  %v1506_v44 = vmax.f32 %v1505_v57, %v4364_v20  ;;  %v4365_v29 = vld [vmem:[#allocation18_spill] sm:$0xff]  ;;  %v4368_v38 = vld [vmem:[#allocation116_spill] sm:$0xff]  ;;  %v4369_v16 = vld [vmem:[#allocation5_spill] sm:$0xff] }
 0x17d   :  { %v1620_v37 = vmax.f32 %v4366_v24, %v4365_v29  ;;  %v819_v48 = vmul.f32 1.442695, %v818_v14  ;;  %v936_v1 = vmul.f32 1.442695, %v935_v8  ;;  %v1391_v22 = vmax.f32 %v1390_v21, %v4367_v42  ;;  %v4370_v20 = vld [vmem:[#allocation72_spill] sm:$0xff] }
 0x17e   :  { %v1052_v13 = vsub.f32 %v3501_v25, %v3562_v4  ;;  %v1169_v31 = vsub.f32 %v3504_v30, %v3566_v5  ;;  %v3578_v11 = vmax.f32 %v1274_v51, %v4368_v38  ;;  %v1507_v3 = vmax.f32 %v1506_v44, %v4369_v16  ;;  %v4371_v21 = vld [vmem:[#allocation8_spill] sm:$0xff] }
 0x17f   :  { %v1621_v57 = vmax.f32 %v1620_v37, %v3555_v62  ;;  %1978 = vpow2.f32 %v819_v48  ;;  %v3583_v14 = vmax.f32 %v1391_v22, %v4370_v20  ;;  %v812_v25 = vsub.f32 %v3315_v26, %v3544_v39  ;;  %v4372_v22 = vld [vmem:[#allocation7_spill] sm:$0xff] }
 0x180   :  { %v1053_v47 = vmul.f32 1.442695, %v1052_v13  ;;  %1980 = vpow2.f32 %v936_v1  ;;  %v1170_v8 = vmul.f32 1.442695, %v1169_v31  ;;  %v1286_v30 = vsub.f32 %v3517_v50, %v3578_v11  ;;  %v4374_v31 = vld [vmem:[#allocation117_spill] sm:$0xff] }
 0x181   :  { %v1508_v51 = vmax.f32 %v1507_v3, %v4371_v21  ;;  %v1403_v44 = vsub.f32 %v1350_v23, %v3583_v14  ;;  %v1622_v37 = vmax.f32 %v1621_v57, %v3458_v18  ;;  %v813_v48 = vmul.f32 1.442695, %v812_v25  ;;  %v4375_v57 = vld [vmem:[#allocation118_spill] sm:$0xff] }
 0x182   :  { %1982 = vpow2.f32 %v1053_v47  ;;  %v1287_v13 = vmul.f32 1.442695, %v1286_v30  ;;  %v929_v26 = vsub.f32 %v3318_v0, %v3547_v6  ;;  %v1046_v50 = vsub.f32 %v3321_v59, %v3562_v4 }
 0x183   :  { %1984 = vpow2.f32 %v1170_v8  ;;  %v3593_v42 = vmax.f32 %v1508_v51, %v4372_v22  ;;  %v1404_v1 = vmul.f32 1.442695, %v1403_v44  ;;  %v1623_v20 = vmax.f32 %v1622_v37, %v4374_v31  ;;  %v4376_v44 = vld [vmem:[#allocation119_spill] sm:$0xff] }
 0x184   :  { %1986 = vpow2.f32 %v813_v48  ;;  %v930_v47 = vmul.f32 1.442695, %v929_v26  ;;  %v1163_v3 = vsub.f32 %v3324_v63, %v3566_v5  ;;  %v1047_v8 = vmul.f32 1.442695, %v1046_v50  ;;  %v4378_v26 = vld [vmem:[#allocation120_spill] sm:$0xff] }
 0x185   :  { %4373 = vst [vmem:[#allocation28_spill] sm:$0xff] %v3593_v42  ;;  %1988 = vpow2.f32 %v1287_v13  ;;  %v1520_v23 = vsub.f32 %v1467_v9, %v3593_v42  ;;  %v1624_v25 = vmax.f32 %v1623_v20, %v4375_v57  ;;  %v1280_v0 = vsub.f32 %v3339_v27, %v3578_v11 }
 0x186   :  { %1990 = vpow2.f32 %v1404_v1  ;;  %v1164_v51 = vmul.f32 1.442695, %v1163_v3  ;;  %v1397_v59 = vsub.f32 %v3342_v35, %v3583_v14  ;;  %v1514_v63 = vsub.f32 %v3344_v54, %v3593_v42 }
 0x187   :  { %v1521_v30 = vmul.f32 1.442695, %v1520_v23  ;;  %1992 = vpow2.f32 %v930_v47  ;;  %v1625_v37 = vmax.f32 %v1624_v25, %v4376_v44  ;;  %v1281_v9 = vmul.f32 1.442695, %v1280_v0 }
 0x188   :  { %1994 = vpow2.f32 %v1047_v8  ;;  %v1398_v48 = vmul.f32 1.442695, %v1397_v59  ;;  %v808_v20 = vsub.f32 %v3369_v33, %v3544_v39  ;;  %v925_v27 = vsub.f32 %v3372_v55, %v3547_v6 }
 0x189   :  { %1996 = vpow2.f32 %v1521_v30  ;;  %v3615_v13 = vpop.eup %1978  ;;  %v3618_v1 = vmax.f32 %v1625_v37, %v4378_v26  ;;  %v1515_v35 = vmul.f32 1.442695, %v1514_v63  ;;  %v1042_v50 = vsub.f32 %v3375_v58, %v3562_v4 }
 0x18a   :  { %4377 = vst [vmem:[#allocation24_spill] sm:$0xff] %v3615_v13  ;;  %1998 = vpow2.f32 %v1164_v51  ;;  %v3622_v23 = vpop.eup %1980  ;;  %v809_v54 = vmul.f32 1.442695, %v808_v20  ;;  %v926_v47 = vmul.f32 1.442695, %v925_v27  ;;  %v1159_v33 = vsub.f32 %v3378_v28, %v3566_v5 }
 0x18b   :  { %4379 = vst [vmem:[#allocation10_spill] sm:$0xff] %v3618_v1  ;;  %4380 = vst [vmem:[#allocation9_spill] sm:$0xff] %v3622_v23  ;;  %2000 = vpow2.f32 %v1281_v9  ;;  %v1637_v55 = vsub.f32 %v3555_v62, %v3618_v1  ;;  %v1631_v25 = vsub.f32 %v4365_v29, %v3618_v1  ;;  %v1043_v8 = vmul.f32 1.442695, %v1042_v50  ;;  %v4383_v29 = vld [vmem:[#allocation73_spill] sm:$0xff] }
 0x18c   :  { %v3626_v3 = vpop.eup %1982  ;;  %2002 = vpow2.f32 %v1398_v48  ;;  %v1160_v58 = vmul.f32 1.442695, %v1159_v33  ;;  %v1276_v30 = vsub.f32 %v3393_v32, %v3578_v11  ;;  %v1393_v28 = vsub.f32 %v3396_v36, %v3583_v14 }
 0x18d   :  { %4381 = vst [vmem:[#allocation12_spill] sm:$0xff] %v3626_v3  ;;  %v3632_v0 = vpop.eup %1984  ;;  %2004 = vpow2.f32 %v1515_v35  ;;  %v1638_v59 = vmul.f32 1.442695, %v1637_v55  ;;  %v1632_v37 = vmul.f32 1.442695, %v1631_v25  ;;  %v1510_v62 = vsub.f32 %v3399_v46, %v3593_v42 }
 0x18e   :  { %4382 = vst [vmem:[#allocation11_spill] sm:$0xff] %v3632_v0  ;;  %v1987_v51 = vpop.eup %1986  ;;  %2006 = vpow2.f32 %v809_v54  ;;  %v1277_v48 = vmul.f32 1.442695, %v1276_v30  ;;  %v1394_v20 = vmul.f32 1.442695, %v1393_v28  ;;  %v1627_v36 = vsub.f32 %v4366_v24, %v3618_v1 }
 0x18f   :  { %v3640_v9 = vpop.eup %1988  ;;  %v816_v63 = vmul.f32 %v1987_v51, %v4383_v29  ;;  %2008 = vpow2.f32 %v926_v47  ;;  %v1511_v32 = vmul.f32 1.442695, %v1510_v62  ;;  %v824_v35 = vsub.f32 %v3425_v61, %v3544_v39 }
 0x190   :  { %v3643_v27 = vpop.eup %1990  ;;  %2010 = vpow2.f32 %v1638_v59  ;;  %v941_v46 = vsub.f32 %v3428_v12, %v3547_v6  ;;  %v1058_v54 = vsub.f32 %v3431_v41, %v3562_v4  ;;  %v1175_v47 = vsub.f32 %v3434_v40, %v3566_v5 }
 0x191   :  { %4384 = vst [vmem:[#allocation51_spill] sm:$0xff] %v3643_v27  ;;  %v1993_v50 = vpop.eup %1992  ;;  %2012 = vpow2.f32 %v1632_v37  ;;  %v1628_v25 = vmul.f32 1.442695, %v1627_v36  ;;  %v825_v24 = vmul.f32 1.442695, %v824_v35  ;;  %v1292_v41 = vsub.f32 %v3449_v19, %v3578_v11 }
 0x192   :  { %v1995_v33 = vpop.eup %1994  ;;  %v933_v55 = vmul.f32 %v1993_v50, %v4383_v29  ;;  %2014 = vpow2.f32 %v1043_v8  ;;  %v942_v28 = vmul.f32 1.442695, %v941_v46  ;;  %v1059_v59 = vmul.f32 1.442695, %v1058_v54 }
 0x193   :  { %v3656_v30 = vpop.eup %1996  ;;  %v1050_v61 = vmul.f32 %v1995_v33, %v4383_v29  ;;  %2016 = vpow2.f32 %v1160_v58  ;;  %v1176_v37 = vmul.f32 1.442695, %v1175_v47  ;;  %v1409_v40 = vsub.f32 %v3452_v2, %v3583_v14 }
 0x194   :  { %4385 = vst [vmem:[#allocation47_spill] sm:$0xff] %v3656_v30  ;;  %v1999_v12 = vpop.eup %1998  ;;  %2018 = vpow2.f32 %v1277_v48  ;;  %v1526_v36 = vsub.f32 %v3455_v52, %v3593_v42  ;;  %v1643_v58 = vsub.f32 %v3458_v18, %v3618_v1  ;;  %v1293_v46 = vmul.f32 1.442695, %v1292_v41  ;;  %v4386_v52 = vld [vmem:[#allocation83_spill] sm:$0xff] }
 0x195   :  { %v2001_v62 = vpop.eup %2000  ;;  %v1167_v8 = vmul.f32 %v1999_v12, %v4383_v29  ;;  %2020 = vpow2.f32 %v1394_v20  ;;  %v1410_v54 = vmul.f32 1.442695, %v1409_v40  ;;  %v822_v26 = vmul.f32 %v3615_v13, %v4386_v52 }
 0x196   :  { %v2003_v35 = vpop.eup %2002  ;;  %v1284_v48 = vmul.f32 %v2001_v62, %v4383_v29  ;;  %2022 = vpow2.f32 %v1511_v32  ;;  %v1527_v2 = vmul.f32 1.442695, %v1526_v36  ;;  %v1644_v44 = vmul.f32 1.442695, %v1643_v58  ;;  %v4387_v32 = vld [vmem:[#allocation78_spill] sm:$0xff] }
 0x197   :  { %v2005_v19 = vpop.eup %2004  ;;  %v1401_v47 = vmul.f32 %v2003_v35, %v4383_v29  ;;  %2024 = vpow2.f32 %v1628_v25  ;;  %v939_v18 = vmul.f32 %v3622_v23, %v4386_v52  ;;  %v1056_v25 = vmul.f32 %v3626_v3, %v4386_v52 }
 0x198   :  { %v2007_v21 = vpop.eup %2006  ;;  %v1518_v20 = vmul.f32 %v2005_v19, %v4383_v29  ;;  %2026 = vpow2.f32 %v825_v24  ;;  %v1173_v13 = vmul.f32 %v3632_v0, %v4386_v52 }
 0x199   :  { %v2009_v22 = vpop.eup %2008  ;;  %v811_v41 = vmul.f32 %v2007_v21, %v4387_v32  ;;  %v3676_v40 = vadd.f32 %v2007_v21, %v1987_v51  ;;  %2028 = vpow2.f32 %v942_v28  ;;  %v1290_v21 = vmul.f32 %v3640_v9, %v4386_v52 }
 0x19a   :  { %v3680_v36 = vpop.eup %2010  ;;  %v928_v58 = vmul.f32 %v2009_v22, %v4387_v32  ;;  %v3683_v24 = vadd.f32 %v2009_v22, %v1993_v50  ;;  %2030 = vpow2.f32 %v1059_v59  ;;  %v1407_v51 = vmul.f32 %v3643_v27, %v4386_v52 }
 0x19b   :  { %4388 = vst [vmem:[#allocation59_spill] sm:$0xff] %v3676_v40  ;;  %4389 = vst [vmem:[#allocation55_spill] sm:$0xff] %v3680_v36  ;;  %v2013_v23 = vpop.eup %2012  ;;  %v817_v38 = vadd.f32 %v816_v63, %v811_v41  ;;  %2032 = vpow2.f32 %v1176_v37  ;;  %v1524_v22 = vmul.f32 %v3656_v30, %v4386_v52 }
 0x19c   :  { %v2015_v28 = vpop.eup %2014  ;;  %v1635_v3 = vmul.f32 %v2013_v23, %v4383_v29  ;;  %v934_v40 = vadd.f32 %v933_v55, %v928_v58  ;;  %2034 = vpow2.f32 %v1293_v46 }
 0x19d   :  { %v2017_v50 = vpop.eup %2016  ;;  %v1045_v59 = vmul.f32 %v2015_v28, %v4387_v32  ;;  %v3695_v0 = vadd.f32 %v2015_v28, %v1995_v33  ;;  %2036 = vpow2.f32 %v1410_v54  ;;  %v3697_v63 = vadd.f32 %v822_v26, %v817_v38 }
 0x19e   :  { %v2019_v37 = vpop.eup %2018  ;;  %v1162_v41 = vmul.f32 %v2017_v50, %v4387_v32  ;;  %v3700_v27 = vadd.f32 %v2017_v50, %v1999_v12  ;;  %2038 = vpow2.f32 %v1527_v2  ;;  %v3702_v29 = vadd.f32 %v939_v18, %v934_v40 }
 0x19f   :  { %v2021_v55 = vpop.eup %2020  ;;  %v1051_v46 = vadd.f32 %v1050_v61, %v1045_v59  ;;  %v1279_v58 = vmul.f32 %v2019_v37, %v4387_v32  ;;  %v3705_v30 = vadd.f32 %v2019_v37, %v2001_v62  ;;  %2040 = vpow2.f32 %v1644_v44  ;;  %v4391_v37 = vld [vmem:[#allocation82_spill] sm:$0xff] }
 0x1a0   :  { %v2023_v33 = vpop.eup %2022  ;;  %v1168_v28 = vadd.f32 %v1167_v8, %v1162_v41  ;;  %v1396_v38 = vmul.f32 %v2021_v55, %v4387_v32  ;;  %v3708_v26 = vadd.f32 %v2021_v55, %v2003_v35  ;;  %v1641_v12 = vmul.f32 %v3680_v36, %v4386_v52 }
 0x1a1   :  { %v2025_v54 = vpop.eup %2024  ;;  %v1285_v2 = vadd.f32 %v1284_v48, %v1279_v58  ;;  %v1513_v18 = vmul.f32 %v2023_v33, %v4387_v32  ;;  %v3713_v40 = vadd.f32 %v2023_v33, %v2005_v19  ;;  %v3715_v61 = vadd.f32 %v1056_v25, %v1051_v46 }
 0x1a2   :  { %v3717_v62 = vpop.eup %2026  ;;  %v1402_v44 = vadd.f32 %v1401_v47, %v1396_v38  ;;  %v1630_v8 = vmul.f32 %v2025_v54, %v4387_v32  ;;  %v3720_v50 = vadd.f32 %v2025_v54, %v2013_v23  ;;  %v3722_v35 = vadd.f32 %v1173_v13, %v1168_v28 }
 0x1a3   :  { %v3724_v59 = vpop.eup %2028  ;;  %v1519_v52 = vadd.f32 %v1518_v20, %v1513_v18  ;;  %v3728_v48 = vmul.f32 %v3717_v62, %v4391_v37  ;;  %v3730_v19 = vadd.f32 %v1290_v21, %v1285_v2  ;;  %v836_v25 = vsub.f32 %v4349_v53, %v3544_v39 }
 0x1a4   :  { %4390 = vst [vmem:[#allocation38_spill] sm:$0xff] %v3720_v50  ;;  %v3734_v41 = vpop.eup %2030  ;;  %v1636_v47 = vadd.f32 %v1635_v3, %v1630_v8  ;;  %v3738_v23 = vmul.f32 %v3724_v59, %v4391_v37  ;;  %v3740_v13 = vadd.f32 %v1407_v51, %v1402_v44  ;;  %v953_v20 = vsub.f32 %v4350_v56, %v3547_v6 }
 0x1a5   :  { %v3744_v32 = vpop.eup %2032  ;;  %v3748_v21 = vmul.f32 %v3734_v41, %v4391_v37  ;;  %v3750_v55 = vadd.f32 %v1524_v22, %v1519_v52  ;;  %v837_v53 = vmul.f32 1.442695, %v836_v25  ;;  %v1070_v3 = vsub.f32 %v3125_v45, %v3562_v4 }
 0x1a6   :  { %v3754_v46 = vpop.eup %2034  ;;  %v3758_v51 = vmul.f32 %v3744_v32, %v4391_v37  ;;  %v3760_v58 = vadd.f32 %v1641_v12, %v1636_v47  ;;  %v954_v56 = vmul.f32 1.442695, %v953_v20  ;;  %v1187_v33 = vsub.f32 %v3094_v7, %v3566_v5 }
 0x1a7   :  { %v3764_v28 = vpop.eup %2036  ;;  %v3768_v22 = vmul.f32 %v3754_v46, %v4391_v37  ;;  %2042 = vpow2.f32 %v837_v53  ;;  %v1071_v45 = vmul.f32 1.442695, %v1070_v3  ;;  %v1304_v38 = vsub.f32 %v4358_v60, %v3578_v11 }
 0x1a8   :  { %4392 = vst [vmem:[#allocation34_spill] sm:$0xff] %v3760_v58  ;;  %v3772_v54 = vpop.eup %2038  ;;  %v3776_v12 = vmul.f32 %v3764_v28, %v4391_v37  ;;  %2044 = vpow2.f32 %v954_v56  ;;  %v1188_v2 = vmul.f32 1.442695, %v1187_v33  ;;  %v1421_v7 = vsub.f32 %v4361_v49, %v3583_v14 }
 0x1a9   :  { %4393 = vst [vmem:[#allocation44_spill] sm:$0xff] %v3772_v54  ;;  %v3780_v18 = vpop.eup %2040  ;;  %v3784_v44 = vmul.f32 %v3772_v54, %v4391_v37  ;;  %2046 = vpow2.f32 %v1071_v45  ;;  %v1305_v8 = vmul.f32 1.442695, %v1304_v38  ;;  %v1538_v60 = vsub.f32 %v4369_v16, %v3593_v42  ;;  %v4397_v38 = vld [vmem:[#allocation108_spill] sm:$0xff] }
 0x1aa   :  { %4394 = vst [vmem:[#allocation41_spill] sm:$0xff] %v3780_v18  ;;  %v3790_v52 = vmul.f32 %v3780_v18, %v4391_v37  ;;  %2048 = vpow2.f32 %v1188_v2  ;;  %v1422_v25 = vmul.f32 1.442695, %v1421_v7  ;;  %v1655_v49 = vsub.f32 %v4375_v57, %v3618_v1  ;;  %v4398_v7 = vld [vmem:[#allocation6_spill] sm:$0xff] }
 0x1ab   :  { %4395 = vst [vmem:[#allocation69_spill] sm:$0xff] %v3784_v44  ;;  %2050 = vpow2.f32 %v1305_v8  ;;  %v1539_v47 = vmul.f32 1.442695, %v1538_v60  ;;  %v830_v20 = vsub.f32 %v4345_v34, %v3544_v39  ;;  %v947_v53 = vsub.f32 %v4346_v17, %v3547_v6  ;;  %v4399_v60 = vld [vmem:[#allocation102_spill] sm:$0xff] }
 0x1ac   :  { %4396 = vst [vmem:[#allocation65_spill] sm:$0xff] %v3790_v52  ;;  %2052 = vpow2.f32 %v1422_v25  ;;  %v1656_v3 = vmul.f32 1.442695, %v1655_v49  ;;  %v1064_v16 = vsub.f32 %v3122_v43, %v3562_v4  ;;  %v1181_v37 = vsub.f32 %v3091_v15, %v3566_v5 }
 0x1ad   :  { %2054 = vpow2.f32 %v1539_v47  ;;  %v831_v56 = vmul.f32 1.442695, %v830_v20  ;;  %v948_v33 = vmul.f32 1.442695, %v947_v53  ;;  %v1298_v57 = vsub.f32 %v4351_v10, %v3578_v11  ;;  %v4400_v10 = vld [vmem:[#allocation61_spill] sm:$0xff] }
 0x1ae   :  { %2056 = vpow2.f32 %v1656_v3  ;;  %v1065_v45 = vmul.f32 1.442695, %v1064_v16  ;;  %v1182_v34 = vmul.f32 1.442695, %v1181_v37  ;;  %v1415_v17 = vsub.f32 %v4397_v38, %v3583_v14  ;;  %v4401_v3 = vld [vmem:[#allocation103_spill] sm:$0xff] }
 0x1af   :  { %2058 = vpow2.f32 %v831_v56  ;;  %v1299_v2 = vmul.f32 1.442695, %v1298_v57  ;;  %v1532_v43 = vsub.f32 %v4398_v7, %v3593_v42  ;;  %v1649_v15 = vsub.f32 %v4374_v31, %v3618_v1  ;;  %v4402_v56 = vld [vmem:[#allocation86_spill] sm:$0xff] }
 0x1b0   :  { %2060 = vpow2.f32 %v948_v33  ;;  %v1416_v8 = vmul.f32 1.442695, %v1415_v17  ;;  %v848_v25 = vsub.f32 %v4399_v60, %v3544_v39  ;;  %v965_v49 = vsub.f32 %v4400_v10, %v3547_v6  ;;  %v4403_v7 = vld [vmem:[#allocation62_spill] sm:$0xff]  ;;  %v4405_v10 = vld [vmem:[#allocation72_spill] sm:$0xff] }
 0x1b1   :  { %v3814_v47 = vpop.eup %2042  ;;  %2062 = vpow2.f32 %v1065_v45  ;;  %v1533_v20 = vmul.f32 1.442695, %v1532_v43  ;;  %v1650_v53 = vmul.f32 1.442695, %v1649_v15  ;;  %v1082_v16 = vsub.f32 %v4401_v3, %v3562_v4 }
 0x1b2   :  { %v3818_v37 = vpop.eup %2044  ;;  %v3822_v31 = vmul.f32 %v3814_v47, %v4402_v56  ;;  %2064 = vpow2.f32 %v1182_v34  ;;  %v849_v33 = vmul.f32 1.442695, %v848_v25  ;;  %v966_v57 = vmul.f32 1.442695, %v965_v49  ;;  %v4404_v34 = vld [vmem:[#allocation116_spill] sm:$0xff] }
 0x1b3   :  { %v3824_v38 = vpop.eup %2046  ;;  %v3828_v17 = vmul.f32 %v3818_v37, %v4402_v56  ;;  %2066 = vpow2.f32 %v1299_v2  ;;  %v1083_v45 = vmul.f32 1.442695, %v1082_v16  ;;  %v1199_v43 = vsub.f32 %v4403_v7, %v3566_v5  ;;  %v4406_v7 = vld [vmem:[#allocation7_spill] sm:$0xff] }
 0x1b4   :  { %v3832_v15 = vpop.eup %2048  ;;  %v3836_v60 = vmul.f32 %v3824_v38, %v4402_v56  ;;  %2068 = vpow2.f32 %v1416_v8  ;;  %v1316_v25 = vsub.f32 %v4404_v34, %v3578_v11  ;;  %v1433_v49 = vsub.f32 %v4405_v10, %v3583_v14 }
 0x1b5   :  { %v3842_v3 = vpop.eup %2050  ;;  %v3846_v2 = vmul.f32 %v3832_v15, %v4402_v56  ;;  %2070 = vpow2.f32 %v1533_v20  ;;  %v1200_v16 = vmul.f32 1.442695, %v1199_v43  ;;  %v1550_v52 = vsub.f32 %v4406_v7, %v3593_v42  ;;  %v4409_v43 = vld [vmem:[#allocation120_spill] sm:$0xff] }
 0x1b6   :  { %v3850_v58 = vpop.eup %2052  ;;  %v3854_v8 = vmul.f32 %v3842_v3, %v4402_v56  ;;  %2072 = vpow2.f32 %v1650_v53  ;;  %v1317_v34 = vmul.f32 1.442695, %v1316_v25  ;;  %v1434_v10 = vmul.f32 1.442695, %v1433_v49  ;;  %v4411_v53 = vld [vmem:[#allocation59_spill] sm:$0xff]  ;;  %v4412_v25 = vld [vmem:[#allocation24_spill] sm:$0xff] }
 0x1b7   :  { %4407 = vst [vmem:[#allocation75_spill] sm:$0xff] %v3850_v58  ;;  %v3856_v18 = vpop.eup %2054  ;;  %v3860_v36 = vmul.f32 %v3850_v58, %v4402_v56  ;;  %2074 = vpow2.f32 %v849_v33  ;;  %v1551_v20 = vmul.f32 1.442695, %v1550_v52  ;;  %v1667_v7 = vsub.f32 %v4409_v43, %v3618_v1  ;;  %v4414_v43 = vld [vmem:[#allocation104_spill] sm:$0xff] }
 0x1b8   :  { %4408 = vst [vmem:[#allocation17_spill] sm:$0xff] %v3856_v18  ;;  %v3864_v50 = vpop.eup %2056  ;;  %v3868_v42 = vmul.f32 %v3856_v18, %v4402_v56  ;;  %2076 = vpow2.f32 %v966_v57  ;;  %v821_v49 = vadd.f32 %v4412_v25, %v4411_v53  ;;  %v829_v54 = vadd.f32 %v3728_v48, %v3697_v63  ;;  %v4415_v18 = vld [vmem:[#allocation88_spill] sm:$0xff]  ;;  %v4416_v53 = vld [vmem:[#allocation9_spill] sm:$0xff] }
 0x1b9   :  { %v2059_v58 = vpop.eup %2058  ;;  %v3876_v52 = vmul.f32 %v3864_v50, %v4402_v56  ;;  %2078 = vpow2.f32 %v1083_v45  ;;  %v1668_v33 = vmul.f32 1.442695, %v1667_v7  ;;  %v842_v1 = vsub.f32 %v4414_v43, %v3544_v39 }
 0x1ba   :  { %4410 = vst [vmem:[#allocation14_spill] sm:$0xff] %v3868_v42  ;;  %v2061_v44 = vpop.eup %2060  ;;  %v834_v42 = vmul.f32 %v2059_v58, %v4415_v18  ;;  %2080 = vpow2.f32 %v1200_v16  ;;  %v827_v57 = vadd.f32 %v3717_v62, %v821_v49  ;;  %v938_v25 = vadd.f32 %v4416_v53, %v3683_v24 }
 0x1bb   :  { %4413 = vst [vmem:[#allocation27_spill] sm:$0xff] %v3876_v52  ;;  %v2063_v63 = vpop.eup %2062  ;;  %v951_v48 = vmul.f32 %v2061_v44, %v4415_v18  ;;  %2082 = vpow2.f32 %v1317_v34  ;;  %v843_v56 = vmul.f32 1.442695, %v842_v1  ;;  %v946_v45 = vadd.f32 %v3738_v23, %v3702_v29 }
 0x1bc   :  { %v2065_v7 = vpop.eup %2064  ;;  %v1068_v39 = vmul.f32 %v2063_v63, %v4415_v18  ;;  %2084 = vpow2.f32 %v1434_v10  ;;  %v833_v43 = vadd.f32 %v2059_v58, %v827_v57  ;;  %v835_v52 = vadd.f32 %v834_v42, %v829_v54 }
 0x1bd   :  { %v3888_v16 = vpop.eup %2066  ;;  %v1185_v62 = vmul.f32 %v2065_v7, %v4415_v18  ;;  %2086 = vpow2.f32 %v1551_v20  ;;  %v944_v24 = vadd.f32 %v3724_v59, %v938_v25  ;;  %v952_v49 = vadd.f32 %v951_v48, %v946_v45  ;;  %v4418_v20 = vld [vmem:[#allocation12_spill] sm:$0xff]  ;;  %v4419_v25 = vld [vmem:[#allocation106_spill] sm:$0xff] }
 0x1be   :  { %v3892_v53 = vpop.eup %2068  ;;  %v1302_v1 = vmul.f32 %v3888_v16, %v4415_v18  ;;  %2088 = vpow2.f32 %v1668_v33  ;;  %v839_v29 = vadd.f32 %v3814_v47, %v833_v43  ;;  %v3898_v23 = vadd.f32 %v3822_v31, %v835_v52  ;;  %v4417_v47 = vld [vmem:[#allocation105_spill] sm:$0xff] }
 0x1bf   :  { %v3900_v42 = vpop.eup %2070  ;;  %v1419_v58 = vmul.f32 %v3892_v53, %v4415_v18  ;;  %2090 = vpow2.f32 %v843_v56  ;;  %v950_v54 = vadd.f32 %v2061_v44, %v944_v24  ;;  %v3905_v59 = vadd.f32 %v3828_v17, %v952_v49  ;;  %v4420_v56 = vld [vmem:[#allocation11_spill] sm:$0xff] }
 0x1c0   :  { %v3907_v34 = vpop.eup %2072  ;;  %v3911_v10 = vmul.f32 %v3900_v42, %v4415_v18  ;;  %v959_v31 = vsub.f32 %v4417_v47, %v3547_v6  ;;  %v1055_v52 = vadd.f32 %v4418_v20, %v3695_v0  ;;  %v1063_v33 = vadd.f32 %v3748_v21, %v3715_v61  ;;  %v4421_v0 = vld [vmem:[#allocation101_spill] sm:$0xff] }
 0x1c1   :  { %v2075_v57 = vpop.eup %2074  ;;  %v3921_v44 = vmul.f32 %v3907_v34, %v4415_v18  ;;  %v3924_v17 = vadd.f32 %v3818_v37, %v950_v54  ;;  %v1076_v48 = vsub.f32 %v4419_v25, %v3562_v4  ;;  %v1172_v6 = vadd.f32 %v4420_v56, %v3700_v27 }
 0x1c2   :  { %v3930_v45 = vpop.eup %2076  ;;  %v852_v43 = vmul.f32 %v2075_v57, %v4421_v0  ;;  %v960_v24 = vmul.f32 1.442695, %v959_v31  ;;  %v1061_v61 = vadd.f32 %v3734_v41, %v1055_v52  ;;  %v1069_v21 = vadd.f32 %v1068_v39, %v1063_v33 }
 0x1c3   :  { %v3934_v49 = vpop.eup %2078  ;;  %v3938_v18 = vmul.f32 %v3930_v45, %v4421_v0  ;;  %v1077_v37 = vmul.f32 1.442695, %v1076_v48  ;;  %v1178_v4 = vadd.f32 %v3744_v32, %v1172_v6  ;;  %v1180_v27 = vadd.f32 %v3758_v51, %v3722_v35 }
 0x1c4   :  { %v3943_v54 = vpop.eup %2080  ;;  %v3947_v47 = vmul.f32 %v3934_v49, %v4421_v0  ;;  %2092 = vpow2.f32 %v960_v24  ;;  %v1067_v41 = vadd.f32 %v2063_v63, %v1061_v61  ;;  %v1075_v39 = vadd.f32 %v3836_v60, %v1069_v21  ;;  %v4422_v63 = vld [vmem:[#allocation107_spill] sm:$0xff] }
 0x1c5   :  { %v3950_v31 = vpop.eup %2082  ;;  %v3954_v20 = vmul.f32 %v3943_v54, %v4421_v0  ;;  %2094 = vpow2.f32 %v1077_v37  ;;  %v1184_v32 = vadd.f32 %v2065_v7, %v1178_v4  ;;  %v1186_v52 = vadd.f32 %v1185_v62, %v1180_v27  ;;  %v4423_v24 = vld [vmem:[#allocation115_spill] sm:$0xff] }
 0x1c6   :  { %v3956_v35 = vpop.eup %2084  ;;  %v3960_v51 = vmul.f32 %v3950_v31, %v4421_v0  ;;  %v1073_v33 = vadd.f32 %v3824_v38, %v1067_v41  ;;  %v1193_v60 = vsub.f32 %v4422_v63, %v3566_v5  ;;  %v1289_v25 = vadd.f32 %v3640_v9, %v3705_v30  ;;  %v4425_v27 = vld [vmem:[#allocation111_spill] sm:$0xff] }
 0x1c7   :  { %v3967_v48 = vpop.eup %2086  ;;  %v3971_v7 = vmul.f32 %v3956_v35, %v4421_v0  ;;  %v1190_v62 = vadd.f32 %v3832_v15, %v1184_v32  ;;  %v3975_v56 = vadd.f32 %v3846_v2, %v1186_v52  ;;  %v1297_v38 = vadd.f32 %v3768_v22, %v3730_v19  ;;  %v4424_v19 = vld [vmem:[#allocation51_spill] sm:$0xff] }
 0x1c8   :  { %v3979_v6 = vpop.eup %2088  ;;  %v3983_v5 = vmul.f32 %v3967_v48, %v4421_v0  ;;  %v1194_v9 = vmul.f32 1.442695, %v1193_v60  ;;  %v1295_v30 = vadd.f32 %v3754_v46, %v1289_v25  ;;  %v1310_v61 = vsub.f32 %v4423_v24, %v3578_v11  ;;  %v4426_v60 = vld [vmem:[#allocation110_spill] sm:$0xff] }
 0x1c9   :  { %v2091_v21 = vpop.eup %2090  ;;  %v3990_v15 = vmul.f32 %v3979_v6, %v4421_v0  ;;  %v1303_v2 = vadd.f32 %v1302_v1, %v1297_v38  ;;  %v1406_v22 = vadd.f32 %v4424_v19, %v3708_v26  ;;  %v1414_v37 = vadd.f32 %v3776_v12, %v3740_v13 }
 0x1ca   :  { %v845_v4 = vadd.f32 %v2091_v21, %v839_v29  ;;  %v846_v41 = vmul.f32 %v2091_v21, %v4425_v27  ;;  %2096 = vpow2.f32 %v1194_v9  ;;  %v1301_v46 = vadd.f32 %v3888_v16, %v1295_v30  ;;  %v4427_v16 = vld [vmem:[#allocation47_spill] sm:$0xff] }
 0x1cb   :  { %v1309_v11 = vadd.f32 %v3854_v8, %v1303_v2  ;;  %v1311_v32 = vmul.f32 1.442695, %v1310_v61  ;;  %v1412_v52 = vadd.f32 %v3764_v28, %v1406_v22  ;;  %v1420_v0 = vadd.f32 %v1419_v58, %v1414_v37  ;;  %v4429_v9 = vld [vmem:[#allocation75_spill] sm:$0xff]  ;;  %v4431_v2 = vld [vmem:[#allocation28_spill] sm:$0xff] }
 0x1cc   :  { %v847_v1 = vadd.f32 %v846_v41, %v3898_v23  ;;  %v851_v63 = vadd.f32 %v2075_v57, %v845_v4  ;;  %v1307_v26 = vadd.f32 %v3842_v3, %v1301_v46  ;;  %v1427_v13 = vsub.f32 %v4426_v60, %v3583_v14  ;;  %v4428_v23 = vld [vmem:[#allocation69_spill] sm:$0xff]  ;;  %v4433_v4 = vld [vmem:[#allocation14_spill] sm:$0xff]  ;;  %v4435_v46 = vld [vmem:[#allocation55_spill] sm:$0xff] }
 0x1cd   :  { %2098 = vpow2.f32 %v1311_v32  ;;  %v1418_v12 = vadd.f32 %v3892_v53, %v1412_v52  ;;  %v1426_v29 = vadd.f32 %v3860_v36, %v1420_v0  ;;  %v1523_v8 = vadd.f32 %v4427_v16, %v3713_v40  ;;  %v4430_v53 = vld [vmem:[#allocation44_spill] sm:$0xff]  ;;  %v4439_v60 = vld [vmem:[#allocation65_spill] sm:$0xff]  ;;  %v4440_v16 = vld [vmem:[#allocation10_spill] sm:$0xff] }
 0x1ce   :  { %v2093_v25 = vpop.eup %2092  ;;  %v853_v38 = vadd.f32 %v852_v43, %v847_v1  ;;  %2100 = vrcp.f32 %v851_v63  ;;  %v1428_v28 = vmul.f32 1.442695, %v1427_v13  ;;  %v1531_v58 = vadd.f32 %v4428_v23, %v3750_v55  ;;  %v4437_v1 = vld [vmem:[#allocation41_spill] sm:$0xff] }
 0x1cf   :  { %v2095_v57 = vpop.eup %2094  ;;  %v962_v3 = vadd.f32 %v2093_v25, %v3924_v17  ;;  %v963_v14 = vmul.f32 %v2093_v25, %v4425_v27  ;;  %v1424_v30 = vadd.f32 %v4429_v9, %v1418_v12  ;;  %v1529_v24 = vadd.f32 %v4430_v53, %v1523_v8  ;;  %v4432_v17 = vld [vmem:[#allocation8_spill] sm:$0xff]  ;;  %v4441_v8 = vld [vmem:[#allocation119_spill] sm:$0xff] }
 0x1d0   :  { %v1079_v36 = vadd.f32 %v2095_v57, %v1073_v33  ;;  %v1080_v61 = vmul.f32 %v2095_v57, %v4425_v27  ;;  %2102 = vpow2.f32 %v1428_v28  ;;  %v1537_v40 = vadd.f32 %v3911_v10, %v1531_v58  ;;  %v4434_v33 = vld [vmem:[#allocation38_spill] sm:$0xff]  ;;  %v4436_v10 = vld [vmem:[#allocation17_spill] sm:$0xff]  ;;  %v4442_v53 = vld [vmem:[#allocation27_spill] sm:$0xff] }
 0x1d1   :  { %v964_v43 = vadd.f32 %v963_v14, %v3905_v59  ;;  %v968_v21 = vadd.f32 %v3930_v45, %v962_v3  ;;  %v1535_v55 = vadd.f32 %v3900_v42, %v1529_v24  ;;  %v1544_v19 = vsub.f32 %v4432_v17, %v4431_v2 }
 0x1d2   :  { %v1081_v22 = vadd.f32 %v1080_v61, %v1075_v39  ;;  %v1085_v37 = vadd.f32 %v3934_v49, %v1079_v36  ;;  %v1543_v41 = vadd.f32 %v4433_v4, %v1537_v40  ;;  %v1640_v32 = vadd.f32 %v4435_v46, %v4434_v33  ;;  %v4438_v39 = vld [vmem:[#allocation34_spill] sm:$0xff] }
 0x1d3   :  { %v970_v52 = vadd.f32 %v3938_v18, %v964_v43  ;;  %2104 = vrcp.f32 %v968_v21  ;;  %v1541_v59 = vadd.f32 %v4436_v10, %v1535_v55  ;;  %v1545_v0 = vmul.f32 1.442695, %v1544_v19 }
 0x1d4   :  { %v2097_v45 = vpop.eup %2096  ;;  %v1087_v42 = vadd.f32 %v3947_v47, %v1081_v22  ;;  %2106 = vrcp.f32 %v1085_v37  ;;  %v1646_v63 = vadd.f32 %v4437_v1, %v1640_v32  ;;  %v1648_v49 = vadd.f32 %v4439_v60, %v4438_v39 }
 0x1d5   :  { %v1196_v13 = vadd.f32 %v2097_v45, %v1190_v62  ;;  %v1197_v12 = vmul.f32 %v2097_v45, %v4425_v27  ;;  %2108 = vpow2.f32 %v1545_v0  ;;  %v1661_v18 = vsub.f32 %v4441_v8, %v4440_v16 }
 0x1d6   :  { %v1652_v25 = vadd.f32 %v3907_v34, %v1646_v63  ;;  %v1654_v28 = vadd.f32 %v3921_v44, %v1648_v49 }
 0x1d7   :  { %v2099_v23 = vpop.eup %2098  ;;  %v1198_v47 = vadd.f32 %v1197_v12, %v3975_v56  ;;  %v1202_v58 = vadd.f32 %v3943_v54, %v1196_v13  ;;  %v1662_v57 = vmul.f32 1.442695, %v1661_v18 }
 0x1d8   :  { %v2101_v3 = vpop.eup %2100  ;;  %v1313_v14 = vadd.f32 %v2099_v23, %v1307_v26  ;;  %v1314_v62 = vmul.f32 %v2099_v23, %v4425_v27  ;;  %v1658_v9 = vadd.f32 %v3864_v50, %v1652_v25  ;;  %v1660_v24 = vadd.f32 %v4442_v53, %v1654_v28 }
 0x1d9   :  { %v855_v36 = vmul.f32 %v2101_v3, %v853_v38  ;;  %v1204_v61 = vadd.f32 %v3954_v20, %v1198_v47  ;;  %2110 = vrcp.f32 %v1202_v58 }
 0x1da   :  { %v2103_v34 = vpop.eup %2102  ;;  %v1315_v44 = vadd.f32 %v1314_v62, %v1309_v11  ;;  %v1319_v40 = vadd.f32 %v3950_v31, %v1313_v14  ;;  %2112 = vpow2.f32 %v1662_v57 }
 0x1db   :  { %v856_v56 = vrot.slane %v855_v36, 4  ;;  %v1430_v54 = vadd.f32 %v2103_v34, %v1424_v30  ;;  %v1431_v43 = vmul.f32 %v2103_v34, %v4425_v27 }
 0x1dc   :  { %v1321_v26 = vadd.f32 %v3960_v51, %v1315_v44  ;;  %2114 = vrcp.f32 %v1319_v40 }
 0x1dd   :  { %v2105_v21 = vpop.eup %2104  ;;  %v857_v50 = vadd.f32 %v856_v56, %v855_v36  ;;  %v1432_v55 = vadd.f32 %v1431_v43, %v1426_v29  ;;  %v1436_v38 = vadd.f32 %v3956_v35, %v1430_v54 }
 0x1de   :  { %v2107_v2 = vpop.eup %2106  ;;  %v972_v20 = vmul.f32 %v2105_v21, %v970_v52 }
 0x1df   :  { %v2109_v17 = vpop.eup %2108  ;;  %v858_v19 = vrot.slane %v857_v50, 2  ;;  %v1089_v11 = vmul.f32 %v2107_v2, %v1087_v42  ;;  %v1438_v31 = vadd.f32 %v3971_v7, %v1432_v55  ;;  %2116 = vrcp.f32 %v1436_v38 }
 0x1e0   :  { %v973_v22 = vrot.slane %v972_v20, 4  ;;  %v1547_v30 = vadd.f32 %v2109_v17, %v1541_v59  ;;  %v1548_v37 = vmul.f32 %v2109_v17, %v4425_v27 }
 0x1e1   :  { %v859_v4 = vadd.f32 %v858_v19, %v857_v50  ;;  %v1090_v51 = vrot.slane %v1089_v11, 4 }
 0x1e2   :  { %v974_v33 = vadd.f32 %v973_v22, %v972_v20  ;;  %v1549_v46 = vadd.f32 %v1548_v37, %v1543_v41  ;;  %v1553_v29 = vadd.f32 %v3967_v48, %v1547_v30 }
 0x1e3   :  { %v2111_v32 = vpop.eup %2110  ;;  %v860_v35 = vrot.slane %v859_v4, 1  ;;  %v1091_v10 = vadd.f32 %v1090_v51, %v1089_v11 }
 0x1e4   :  { %v2113_v52 = vpop.eup %2112  ;;  %v975_v0 = vrot.slane %v974_v33, 2  ;;  %v1206_v45 = vmul.f32 %v2111_v32, %v1204_v61  ;;  %v1555_v42 = vadd.f32 %v3983_v5, %v1549_v46  ;;  %2118 = vrcp.f32 %v1553_v29 }
 0x1e5   :  { %v1092_v7 = vrot.slane %v1091_v10, 2  ;;  %v1664_v1 = vadd.f32 %v2113_v52, %v1658_v9  ;;  %v1665_v59 = vmul.f32 %v2113_v52, %v4425_v27  ;;  %v861_v12 = vadd.f32 %v860_v35, %v859_v4 }
 0x1e6   :  { %v2115_v63 = vpop.eup %2114  ;;  %v976_v39 = vadd.f32 %v975_v0, %v974_v33  ;;  %v1207_v60 = vrot.slane %v1206_v45, 4 }
 0x1e7   :  { %v1093_v49 = vadd.f32 %v1092_v7, %v1091_v10  ;;  %v1323_v41 = vmul.f32 %v2115_v63, %v1321_v26  ;;  %v1666_v13 = vadd.f32 %v1665_v59, %v1660_v24  ;;  %v1670_v48 = vadd.f32 %v3979_v6, %v1664_v1 }
 0x1e8   :  { %v977_v16 = vrot.slane %v976_v39, 1  ;;  %v1208_v8 = vadd.f32 %v1207_v60, %v1206_v45 }
 0x1e9   :  { %v2117_v18 = vpop.eup %2116  ;;  %v1094_v25 = vrot.slane %v1093_v49, 1  ;;  %v1324_v28 = vrot.slane %v1323_v41, 4  ;;  %v1672_v5 = vadd.f32 %v3990_v15, %v1666_v13  ;;  %2120 = vrcp.f32 %v1670_v48 }
 0x1ea   :  { %v978_v23 = vadd.f32 %v977_v16, %v976_v39  ;;  %v1209_v47 = vrot.slane %v1208_v8, 2  ;;  %v1440_v27 = vmul.f32 %v2117_v18, %v1438_v31 }
 0x1eb   :  { %v1095_v58 = vadd.f32 %v1094_v25, %v1093_v49  ;;  %v1325_v57 = vadd.f32 %v1324_v28, %v1323_v41 }
 0x1ec   :  { %v1210_v3 = vadd.f32 %v1209_v47, %v1208_v8  ;;  %v1441_v14 = vrot.slane %v1440_v27, 4  ;;  %v1681_v62 = vsel %vm316_vm0, %v861_v12, %v978_v23 }
 0x1ed   :  { %v1326_v6 = vrot.slane %v1325_v57, 2  ;;  %v1683_v9 = vsel %vm1682_vm4, %v1681_v62, %v1095_v58 }
 0x1ee   :  { %v2119_v53 = vpop.eup %2118  ;;  %v1211_v24 = vrot.slane %v1210_v3, 1  ;;  %v1442_v36 = vadd.f32 %v1441_v14, %v1440_v27 }
 0x1ef   :  { %v1327_v61 = vadd.f32 %v1326_v6, %v1325_v57  ;;  %v1557_v34 = vmul.f32 %v2119_v53, %v1555_v42 }
 0x1f0   :  { %v1212_v15 = vadd.f32 %v1211_v24, %v1210_v3  ;;  %v1443_v44 = vrot.slane %v1442_v36, 2 }
 0x1f1   :  { %v1328_v40 = vrot.slane %v1327_v61, 1  ;;  %v1558_v56 = vrot.slane %v1557_v34, 4 }
 0x1f2   :  { %v1444_v54 = vadd.f32 %v1443_v44, %v1442_v36  ;;  %v1685_v43 = vsel %vm1684_vm5, %v1683_v9, %v1212_v15 }
 0x1f3   :  { %v2121_v26 = vpop.eup %2120  ;;  %v1329_v21 = vadd.f32 %v1328_v40, %v1327_v61  ;;  %v1559_v50 = vadd.f32 %v1558_v56, %v1557_v34 }
 0x1f4   :  { %v1445_v55 = vrot.slane %v1444_v54, 1  ;;  %v1674_v38 = vmul.f32 %v2121_v26, %v1672_v5 }
 0x1f5   :  { %v1560_v2 = vrot.slane %v1559_v50, 2  ;;  %v1687_v20 = vsel %vm1686_vm6, %v1685_v43, %v1329_v21 }
 0x1f6   :  { %v1446_v17 = vadd.f32 %v1445_v55, %v1444_v54  ;;  %v1675_v19 = vrot.slane %v1674_v38, 4 }
 0x1f7   :  { %v1561_v11 = vadd.f32 %v1560_v2, %v1559_v50 }
 0x1f8   :  { %v1676_v31 = vadd.f32 %v1675_v19, %v1674_v38  ;;  %v1689_v22 = vsel %vm1688_vm7, %v1687_v20, %v1446_v17 }
 0x1f9   :  { %v1562_v30 = vrot.slane %v1561_v11, 1 }
 0x1fa   :  { %v1677_v37 = vrot.slane %v1676_v31, 2 }
 0x1fb   :  { %v1563_v4 = vadd.f32 %v1562_v30, %v1561_v11 }
 0x1fc   :  { %v1678_v51 = vadd.f32 %v1677_v37, %v1676_v31 }
 0x1fd   :  { %v1691_v33 = vsel %vm1690_vm8, %v1689_v22, %v1563_v4 }
 0x1fe   :  { %v1679_v46 = vrot.slane %v1678_v51, 1 }
 0x200   :  { %v1680_v29 = vadd.f32 %v1679_v46, %v1678_v51 }
 0x202   :  { %v1693_v32 = vsel %vm1692_vm9, %v1691_v33, %v1680_v29 }
 0x203   :  { %v1779_v35 = vmul.f32 -1.442695, %v1693_v32 }
 0x205   :  { %2122 = vpow2.f32 %v1779_v35 }
 0x20f   :  { %v2123_v10 = vpop.eup %2122 }
 0x210   :  { %v1697_v52 = vadd.f32 1.0, %v2123_v10 }
 0x212   :  { %2124 = vrcp.f32 %v1697_v52 }
 0x21c   :  { %v2125_v0 = vpop.eup %2124 }
 0x21d   :  { %1700 = vst [vmem:[%s4059_s2] sm:$0xff] %v2125_v0 }
 0x21e   :  { %1705 = vsyncpa [#allocation3], 1 }

</bundles_post_ra>
